<compile_context>
chip_gen: v5e
topology: v5e:2x2
jax: 0.10.0
libtpu: 0.0.40
codegen_flags: <defaults>
</compile_context>

<pallas_src>
import functools
import math

import jax
import jax.numpy as jnp
from jax import lax
from jax.experimental import pallas as pl
from jax.experimental.pallas import tpu as pltpu

_LOG2PI = math.log(2.0 * math.pi)


# --------------------------------------------------------------------------- #
# Kernel
# --------------------------------------------------------------------------- #
def _rnn_actor_kernel(obs_ref, eps_ref, h0_ref, c0_ref,
                      wih_ref, whh_ref, bg_ref, whead_ref, bhead_ref,
                      action_ref, logp_ref, hT_ref, cT_ref,
                      gx_ref, hseq_ref, h_scr, c_scr,
                      *, hidden_size, action_dim, act_pad, t_total,
                      mask_tail, unroll, mm_dtype):
    H = hidden_size
    A = action_dim
    Ap = act_pad
    Tc, Bb, _ = gx_ref.shape          # time-chunk length, batch rows per chunk
    L = Tc * Bb                       # flattened rows of this chunk (t-major)

    ti = pl.program_id(1)             # time-chunk index (serial "arbitrary" axis)

    # ---- persistent h/c carry: (re)initialize on the first time chunk -------
    @pl.when(ti == 0)
    def _():
        h_scr[...] = h0_ref[...]
        c_scr[...] = c0_ref[...]

    # ---- Phase 1 (batched, off the serial path): input->gate projection -----
    gx = (jnp.dot(obs_ref[...], wih_ref[...],
                  preferred_element_type=jnp.float32) + bg_ref[...])   # [L, 4H]
    gx_ref[...] = gx.reshape(Tc, Bb, 4 * H).astype(gx_ref.dtype)

    whh = whh_ref[...]                # hoisted; reused every serial step
    # TODO(synk): keep W_hh resident in the MXU via pltpu.matmul_push_rhs.

    # ---- Phase 2 (serial): LSTM cell recurrence only ------------------------
    def step(t, carry):
        h, c = carry
        gates = (gx_ref[t].astype(jnp.float32)
                 + jnp.dot(h.astype(mm_dtype), whh,
                           preferred_element_type=jnp.float32))        # [Bb, 4H]
        # gate columns were pre-permuted to (i, f, o, g) in the wrapper:
        sig = jax.nn.sigmoid(gates[:, :3 * H])
        i_g = sig[:, :H]
        f_g = sig[:, H:2 * H]
        o_g = sig[:, 2 * H:3 * H]
        g_g = jnp.tanh(gates[:, 3 * H:])
        c_new = f_g * c + i_g * g_g
        h_new = o_g * jnp.tanh(c_new)
        if mask_tail:                 # freeze the carry on zero-padded timesteps
            valid = (ti * Tc + t) < t_total
            h_new = jnp.where(valid, h_new, h)
            c_new = jnp.where(valid, c_new, c)
        hseq_ref[t] = h_new.astype(hseq_ref.dtype)
        return h_new, c_new

    hT, cT = lax.fori_loop(0, Tc, step, (h_scr[...], c_scr[...]), unroll=unroll)
    h_scr[...] = hT
    c_scr[...] = cT
    hT_ref[...] = hT
    cT_ref[...] = cT

    # ---- Phase 3 (batched): heads + sample + tanh + log-prob, lane-dense ----
    h_flat = hseq_ref[...].reshape(L, H)
    heads = (jnp.dot(h_flat, whead_ref[...],
                     preferred_element_type=jnp.float32) + bhead_ref[...])  # [L, 2Ap]
    heads_t = heads.T                                   # [2Ap, L] full-tile transpose
    mean = heads_t[:A]                                  # [A, L]
    log_std = jnp.clip(heads_t[Ap:Ap + A], -20.0, 2.0)  # tile-aligned slice
    std = jnp.exp(log_std)

    eps = eps_ref[...]                                  # [A, L] already lane-dense
    raw = mean + std * eps
    act = jnp.tanh(raw)
    # Normal(mean, std).log_prob(raw): z = (raw - mean)/std == eps exactly.
    lp = (-0.5 * eps * eps - log_std - 0.5 * _LOG2PI
          - jnp.log(1.0 - act * act + 1e-6))            # [A, L]

    action_ref[...] = act                               # lane-dense store
    logp_ref[...] = jnp.sum(lp, axis=0, keepdims=True)  # [1, L] sublane reduce


# --------------------------------------------------------------------------- #
# Wrapper helpers
# --------------------------------------------------------------------------- #
def _round_up(x, m):
    return ((x + m - 1) // m) * m


def _vmem_capacity_bytes():
    try:
        return int(pltpu.get_tpu_info().vmem_capacity_bytes)
    except Exception:
        return 64 * 2 ** 20        # v7x-safe fallback


def _choose_time_chunk(T, Bb, D, H, Ap, mm_bytes, requested=None):
    """Largest time chunk whose working set fits a safe VMEM budget and whose
    flattened lane dimension (Tc*Bb) stays a multiple of 128 (or the full T)."""
    if requested is None:
        budget = _vmem_capacity_bytes() // 4            # headroom for 2x buffering
        per_t = Bb * (5 * H * mm_bytes                  # gx + hseq scratch rows
                      + 2 * D * mm_bytes                # obs block (double buffered)
                      + 10 * Ap * 4                     # heads / transposes / eps / act
                      + 16 * 4)
        requested = max(1, budget // max(per_t, 1))
    tc = max(1, min(int(requested), T))
    if tc >= T:
        return T
    g = max(1, 128 // math.gcd(Bb, 128))                # keep Tc*Bb % 128 == 0
    tc = max(g, (tc // g) * g)
    return T if tc >= T else tc


# --------------------------------------------------------------------------- #
# Forward wrapper (PyTorch RNNActor.forward semantics, batch_first)
# --------------------------------------------------------------------------- #
def rnn_actor_forward(params, obs_seq, hidden, eps, *,
                      matmul_dtype=jnp.bfloat16,
                      time_chunk=None, num_batch_chunks=None):
    """obs_seq: [B, T, obs_dim]; hidden: (h, c) each [1, B, H]; eps: [B, T, A]."""
    B, T, D = obs_seq.shape
    H = params["w_hh"].shape[0]
    A = params["w_mean"].shape[1]
    Ap = _round_up(A, 128)                              # one 128-lane tile per head
    mm_bytes = jnp.dtype(matmul_dtype).itemsize
    f32 = jnp.float32

    # Batch chunking: leading 'parallel' grid axis (v7x megacore uses both TCs).
    if num_batch_chunks is None:
        num_batch_chunks = 2 if B >= 256 else 1
    nB = max(1, int(num_batch_chunks))
    Bb = _round_up(max(1, -(-B // nB)), 16)             # rows per chunk (sublane ok)
    Bp = Bb * nB

    # Time chunking: trailing 'arbitrary' grid axis; h/c carried in VMEM scratch.
    Tc = _choose_time_chunk(T, Bb, D, H, Ap, mm_bytes, time_chunk)
    nT = -(-T // Tc)
    Tp = nT * Tc
    L = Tc * Bb

    # ---- pack inputs: time-major per batch chunk, lane-dense eps ------------
    def pad_bt(x):                                      # [B, T, F] -> [Bp, Tp, F]
        return jnp.pad(x, ((0, Bp - B), (0, Tp - T), (0, 0)))

    obs_p = pad_bt(obs_seq.astype(f32))
    eps_p = pad_bt(eps.astype(f32))
    # obs: [nB, Tp*Bb, D]   (rows ordered t-major, batch-minor inside a chunk)
    obs_k = (obs_p.reshape(nB, Bb, Tp, D).transpose(0, 2, 1, 3)
             .reshape(nB, Tp * Bb, D).astype(matmul_dtype))
    # eps: [nB, A, Tp*Bb]   (lane-dense: long flattened axis on lanes)
    eps_k = (eps_p.reshape(nB, Bb, Tp, A).transpose(0, 3, 2, 1)
             .reshape(nB, A, Tp * Bb))

    h0 = jnp.pad(hidden[0][0].astype(f32), ((0, Bp - B), (0, 0)))
    c0 = jnp.pad(hidden[1][0].astype(f32), ((0, Bp - B), (0, 0)))

    # ---- fuse / reorder / pad parameters ------------------------------------
    def reorder_gates(w):                               # (i, f, g, o) -> (i, f, o, g)
        i, f, g, o = jnp.split(w, 4, axis=-1)
        return jnp.concatenate([i, f, o, g], axis=-1)

    w_ih = reorder_gates(params["w_ih"]).astype(matmul_dtype)              # [D, 4H]
    w_hh = reorder_gates(params["w_hh"]).astype(matmul_dtype)              # [H, 4H]
    b_gate = reorder_gates(params["b_ih"] + params["b_hh"]).astype(f32)    # [1, 4H]
    w_head = jnp.zeros((H, 2 * Ap), f32)
    w_head = w_head.at[:, :A].set(params["w_mean"])
    w_head = w_head.at[:, Ap:Ap + A].set(params["w_logstd"]).astype(matmul_dtype)
    b_head = jnp.zeros((1, 2 * Ap), f32)
    b_head = b_head.at[:, :A].set(params["b_mean"])
    b_head = b_head.at[:, Ap:Ap + A].set(params["b_logstd"])

    unroll = min(Tc, 8 if Bb <= 64 else 4)              # smaller unroll at large Bb

    # rough per-core VMEM need -> explicit scoped-VMEM limit with headroom
    est = (Tc * Bb * 5 * H * mm_bytes                   # gx + hseq scratch
           + 2 * L * D * mm_bytes                       # obs blocks (double buffered)
           + 8 * Bb * H * 4                             # h0/c0/hT/cT blocks + carry
           + 4 * (2 * A + 1) * L * 4                    # eps/action/logp blocks
           + 4 * L * 2 * Ap * 4                         # heads + transpose temporaries
           + (D + H) * 4 * H * mm_bytes + H * 2 * Ap * mm_bytes + 32 * H)
    vmem_limit = int(min(max(int(est * 1.5), 16 * 2 ** 20), 64 * 2 ** 20))

    kernel = functools.partial(
        _rnn_actor_kernel, hidden_size=H, action_dim=A, act_pad=Ap,
        t_total=T, mask_tail=(Tp != T), unroll=unroll, mm_dtype=matmul_dtype)

    grid_spec = pltpu.PrefetchScalarGridSpec(
        num_scalar_prefetch=0,
        grid=(nB, nT),
        in_specs=[
            pl.BlockSpec((None, L, D), lambda bi, ti: (bi, ti, 0)),        # obs
            pl.BlockSpec((None, A, L), lambda bi, ti: (bi, 0, ti)),        # eps
            pl.BlockSpec((Bb, H), lambda bi, ti: (bi, 0)),                 # h0
            pl.BlockSpec((Bb, H), lambda bi, ti: (bi, 0)),                 # c0
            pl.BlockSpec((D, 4 * H), lambda bi, ti: (0, 0)),               # w_ih
            pl.BlockSpec((H, 4 * H), lambda bi, ti: (0, 0)),               # w_hh
            pl.BlockSpec((1, 4 * H), lambda bi, ti: (0, 0)),               # b_gate
            pl.BlockSpec((H, 2 * Ap), lambda bi, ti: (0, 0)),              # w_head
            pl.BlockSpec((1, 2 * Ap), lambda bi, ti: (0, 0)),              # b_head
        ],
        out_specs=[
            pl.BlockSpec((None, A, L), lambda bi, ti: (bi, 0, ti)),        # action
            pl.BlockSpec((None, 1, L), lambda bi, ti: (bi, 0, ti)),        # log_prob
            pl.BlockSpec((Bb, H), lambda bi, ti: (bi, 0)),                 # hT
            pl.BlockSpec((Bb, H), lambda bi, ti: (bi, 0)),                 # cT
        ],
        scratch_shapes=[
            pltpu.VMEM((Tc, Bb, 4 * H), matmul_dtype),   # gx: input->gate projections
            pltpu.VMEM((Tc, Bb, H), matmul_dtype),       # hseq: per-step hidden states
            pltpu.VMEM((Bb, H), f32),                    # h carry (persists over chunks)
            pltpu.VMEM((Bb, H), f32),                    # c carry
        ],
    )

    action_k, logp_k, hT, cT = pl.pallas_call(
        kernel,
        out_shape=(
            jax.ShapeDtypeStruct((nB, A, Tp * Bb), f32),
            jax.ShapeDtypeStruct((nB, 1, Tp * Bb), f32),
            jax.ShapeDtypeStruct((Bp, H), f32),
            jax.ShapeDtypeStruct((Bp, H), f32),
        ),
        grid_spec=grid_spec,
        compiler_params=pltpu.CompilerParams(
            dimension_semantics=("parallel", "arbitrary"),
            vmem_limit_bytes=vmem_limit),
    )(obs_k, eps_k, h0, c0, w_ih, w_hh, b_gate, w_head, b_head)

    # ---- unpack lane-dense / chunked layouts back to PyTorch batch_first ----
    action = (action_k.reshape(nB, A, Tp, Bb).transpose(0, 3, 2, 1)
              .reshape(Bp, Tp, A)[:B, :T, :])
    log_prob = (logp_k.reshape(nB, Tp, Bb).transpose(0, 2, 1)
                .reshape(Bp, Tp)[:B, :T][..., None])
    return action, log_prob, (hT[:B][None, ...], cT[:B][None, ...])


# --------------------------------------------------------------------------- #
# Parameters + pure-JAX reference
# --------------------------------------------------------------------------- #
def init_params(key, obs_dim, action_dim, hidden_size):
    """Deterministic synthetic init mirroring PyTorch shapes (weights pre-transposed)."""
    ks = jax.random.split(key, 8)
    k = 1.0 / math.sqrt(hidden_size)
    u = lambda kk, shape: jax.random.uniform(kk, shape, jnp.float32, -k, k)
    return {
        "w_ih": u(ks[0], (obs_dim, 4 * hidden_size)),
        "w_hh": u(ks[1], (hidden_size, 4 * hidden_size)),
        "b_ih": u(ks[2], (1, 4 * hidden_size)),
        "b_hh": u(ks[3], (1, 4 * hidden_size)),
        "w_mean": u(ks[4], (hidden_size, action_dim)),
        "b_mean": u(ks[5], (1, action_dim)),
        "w_logstd": u(ks[6], (hidden_size, action_dim)),
        "b_logstd": u(ks[7], (1, action_dim)),
    }


def _reference_forward(params, obs_seq, hidden, eps):
    """Pure-JAX reference of the same math (PyTorch gate order), for validation."""
    B, T, _ = obs_seq.shape
    H = params["w_hh"].shape[0]
    h, c = hidden[0][0], hidden[1][0]
    bias = params["b_ih"] + params["b_hh"]
    actions, logps = [], []
    for t in range(T):
        g = obs_seq[:, t, :] @ params["w_ih"] + h @ params["w_hh"] + bias
        i_g = jax.nn.sigmoid(g[:, 0:H]); f_g = jax.nn.sigmoid(g[:, H:2 * H])
        g_g = jnp.tanh(g[:, 2 * H:3 * H]); o_g = jax.nn.sigmoid(g[:, 3 * H:4 * H])
        c = f_g * c + i_g * g_g
        h = o_g * jnp.tanh(c)
        mean = h @ params["w_mean"] + params["b_mean"]
        log_std = jnp.clip(h @ params["w_logstd"] + params["b_logstd"], -20.0, 2.0)
        std = jnp.exp(log_std)
        raw = mean + std * eps[:, t, :]
        a = jnp.tanh(raw)
        z = (raw - mean) / std
        lp = -0.5 * z * z - log_std - 0.5 * _LOG2PI - jnp.log(1.0 - a * a + 1e-6)
        actions.append(a); logps.append(jnp.sum(lp, -1, keepdims=True))
    return jnp.stack(actions, 1), jnp.stack(logps, 1), (h[None], c[None])


# --------------------------------------------------------------------------- #
# Self-test
# --------------------------------------------------------------------------- #
if __name__ == "__main__":
    OBS, H, A = 16, 128, 4          # H=128 matches the module default

    key = jax.random.PRNGKey(0)
    k_param, k_obs, k_eps, k_obs2, k_eps2 = jax.random.split(key, 5)
    params = init_params(k_param, OBS, A, H)

    # --- case 1: single chunk, f32 matmuls vs pure-JAX reference -------------
    B, T = 2, 8
    obs_seq = jax.random.normal(k_obs, (B, T, OBS), jnp.float32)
    eps = jax.random.normal(k_eps, (B, T, A), jnp.float32)      # rsample noise
    hidden = (jnp.zeros((1, B, H), jnp.float32), jnp.zeros((1, B, H), jnp.float32))
    a_ref, lp_ref, (h_ref, c_ref) = _reference_forward(params, obs_seq, hidden, eps)

    act, lp, (hT, cT) = jax.block_until_ready(
        rnn_actor_forward(params, obs_seq, hidden, eps, matmul_dtype=jnp.float32))
    assert act.shape == (B, T, A) and lp.shape == (B, T, 1)
    assert hT.shape == (1, B, H) and cT.shape == (1, B, H)
    assert jnp.allclose(act, a_ref, atol=1e-3, rtol=1e-3)
    assert jnp.allclose(lp, lp_ref, atol=5e-3, rtol=5e-3)
    assert jnp.allclose(hT, h_ref, atol=1e-3, rtol=1e-3)
    assert jnp.allclose(cT, c_ref, atol=1e-3, rtol=1e-3)

    # --- case 2: bf16 MXU operands (default perf path), looser tolerance -----
    act_bf, lp_bf, (h_bf, c_bf) = jax.block_until_ready(
        rnn_actor_forward(params, obs_seq, hidden, eps))
    assert jnp.allclose(act_bf, a_ref, atol=5e-2, rtol=5e-2)
    assert jnp.allclose(lp_bf, lp_ref, atol=2e-1, rtol=5e-2)
    assert jnp.allclose(h_bf, h_ref, atol=5e-2, rtol=5e-2)
    assert jnp.allclose(c_bf, c_ref, atol=5e-2, rtol=5e-2)

    # --- case 3: multi time-chunk grid + ragged tail + 2 'parallel' B chunks --
    B2, T2 = 3, 30
    obs2 = jax.random.normal(k_obs2, (B2, T2, OBS), jnp.float32)
    eps2 = jax.random.normal(k_eps2, (B2, T2, A), jnp.float32)
    hidden2 = (jnp.zeros((1, B2, H), jnp.float32), jnp.zeros((1, B2, H), jnp.float32))
    a2_ref, lp2_ref, (h2_ref, c2_ref) = _reference_forward(params, obs2, hidden2, eps2)
    act2, lp2, (h2, c2) = jax.block_until_ready(
        rnn_actor_forward(params, obs2, hidden2, eps2, matmul_dtype=jnp.float32,
                          time_chunk=8, num_batch_chunks=2))
    assert act2.shape == (B2, T2, A) and lp2.shape == (B2, T2, 1)
    assert jnp.allclose(act2, a2_ref, atol=1e-3, rtol=1e-3)
    assert jnp.allclose(lp2, lp2_ref, atol=5e-3, rtol=5e-3)
    assert jnp.allclose(h2, h2_ref, atol=1e-3, rtol=1e-3)
    assert jnp.allclose(c2, c2_ref, atol=1e-3, rtol=1e-3)

    print("KERNEL_OK")
</pallas_src>

<mosaic_0001>
module attributes {stable_mosaic.version = 11 : i64} {
  func.func @_rnn_actor_kernel(%arg0: i32, %arg1: i32, %arg2: memref<1x128x16xf32, #tpu.memory_space<vmem>>, %arg3: memref<1x4x128xf32, #tpu.memory_space<vmem>>, %arg4: memref<16x128xf32, #tpu.memory_space<vmem>>, %arg5: memref<16x128xf32, #tpu.memory_space<vmem>>, %arg6: memref<16x512xf32, #tpu.memory_space<vmem>>, %arg7: memref<128x512xf32, #tpu.memory_space<vmem>>, %arg8: memref<1x512xf32, #tpu.memory_space<vmem>>, %arg9: memref<128x256xf32, #tpu.memory_space<vmem>>, %arg10: memref<1x256xf32, #tpu.memory_space<vmem>>, %arg11: memref<1x4x128xf32, #tpu.memory_space<vmem>>, %arg12: memref<1x1x128xf32, #tpu.memory_space<vmem>>, %arg13: memref<16x128xf32, #tpu.memory_space<vmem>>, %arg14: memref<16x128xf32, #tpu.memory_space<vmem>>, %arg15: memref<8x16x512xf32, #tpu.memory_space<vmem>>, %arg16: memref<8x16x128xf32, #tpu.memory_space<vmem>>, %arg17: memref<16x128xf32, #tpu.memory_space<vmem>>, %arg18: memref<16x128xf32, #tpu.memory_space<vmem>>) attributes {dimension_semantics = [#tpu.dimension_semantics<parallel>, #tpu.dimension_semantics<arbitrary>], iteration_bounds = array<i64: 1, 1>, scalar_prefetch = 0 : i64, scratch_operands = 4 : i64, tpu.core_type = #tpu.core_type<tc>, window_params = [{transform_indices = @transform_0, window_bounds = array<i64: 1, 128, 16>}, {transform_indices = @transform_1, window_bounds = array<i64: 1, 4, 128>}, {transform_indices = @transform_2, window_bounds = array<i64: 16, 128>}, {transform_indices = @transform_3, window_bounds = array<i64: 16, 128>}, {pipeline_mode = #tpu.pipeline_mode<synchronous>, transform_indices = @transform_4, window_bounds = array<i64: 16, 512>}, {pipeline_mode = #tpu.pipeline_mode<synchronous>, transform_indices = @transform_5, window_bounds = array<i64: 128, 512>}, {pipeline_mode = #tpu.pipeline_mode<synchronous>, transform_indices = @transform_6, window_bounds = array<i64: 1, 512>}, {pipeline_mode = #tpu.pipeline_mode<synchronous>, transform_indices = @transform_7, window_bounds = array<i64: 128, 256>}, {pipeline_mode = #tpu.pipeline_mode<synchronous>, transform_indices = @transform_8, window_bounds = array<i64: 1, 256>}, {transform_indices = @transform_9, window_bounds = array<i64: 1, 4, 128>}, {transform_indices = @transform_10, window_bounds = array<i64: 1, 1, 128>}, {transform_indices = @transform_11, window_bounds = array<i64: 16, 128>}, {transform_indices = @transform_12, window_bounds = array<i64: 16, 128>}]} {
    %c0_i32 = arith.constant 0 : i32
    %0 = arith.cmpi eq, %arg1, %c0_i32 : i32
    %1 = arith.extui %0 : i1 to i32
    %c0_i32_0 = arith.constant 0 : i32
    %2 = arith.cmpi ne, %1, %c0_i32_0 : i32
    scf.if %2 {
      %c0_97 = arith.constant 0 : index
      %c0_98 = arith.constant 0 : index
      %260 = vector.load %arg4[%c0_97, %c0_98] : memref<16x128xf32, #tpu.memory_space<vmem>>, vector<16x128xf32>
      %c0_99 = arith.constant 0 : index
      %c0_100 = arith.constant 0 : index
      %261 = vector.load %arg17[%c0_99, %c0_100] : memref<16x128xf32, #tpu.memory_space<vmem>>, vector<16x128xf32>
      tpu.vector_store %arg17[%c0_99, %c0_100], %260 {strides = array<i32>} : memref<16x128xf32, #tpu.memory_space<vmem>>, vector<16x128xf32>,
      %c0_101 = arith.constant 0 : index
      %c0_102 = arith.constant 0 : index
      %262 = vector.load %arg5[%c0_101, %c0_102] : memref<16x128xf32, #tpu.memory_space<vmem>>, vector<16x128xf32>
      %c0_103 = arith.constant 0 : index
      %c0_104 = arith.constant 0 : index
      %263 = vector.load %arg18[%c0_103, %c0_104] : memref<16x128xf32, #tpu.memory_space<vmem>>, vector<16x128xf32>
      tpu.vector_store %arg18[%c0_103, %c0_104], %262 {strides = array<i32>} : memref<16x128xf32, #tpu.memory_space<vmem>>, vector<16x128xf32>,
    } else {
    }
    %c0 = arith.constant 0 : index
    %c0_1 = arith.constant 0 : index
    %c0_2 = arith.constant 0 : index
    %3 = vector.load %arg2[%c0, %c0_1, %c0_2] : memref<1x128x16xf32, #tpu.memory_space<vmem>>, vector<1x128x16xf32>
    %4 = vector.shape_cast %3 : vector<1x128x16xf32> to vector<128x16xf32>
    %c0_3 = arith.constant 0 : index
    %c0_4 = arith.constant 0 : index
    %5 = vector.load %arg6[%c0_3, %c0_4] : memref<16x512xf32, #tpu.memory_space<vmem>>, vector<16x512xf32>
    %cst = arith.constant dense<0.000000e+00> : vector<128x512xf32>
    %6 = tpu.matmul %4, %5, %cst {dimension_numbers = #tpu.dot_dimension_numbers<[1], [0], [0], [1], [0, 0, 1, 1], [], []>} : vector<128x16xf32>, vector<16x512xf32>, vector<128x512xf32> -> vector<128x512xf32>
    %c0_5 = arith.constant 0 : index
    %c0_6 = arith.constant 0 : index
    %7 = vector.load %arg8[%c0_5, %c0_6] : memref<1x512xf32, #tpu.memory_space<vmem>>, vector<1x512xf32>
    %8 = vector.broadcast %7 : vector<1x512xf32> to vector<128x512xf32>
    %9 = arith.addf %6, %8 : vector<128x512xf32>
    %10 = vector.shape_cast %9 : vector<128x512xf32> to vector<8x16x512xf32>
    %c0_7 = arith.constant 0 : index
    %c0_8 = arith.constant 0 : index
    %c0_9 = arith.constant 0 : index
    %11 = vector.load %arg15[%c0_7, %c0_8, %c0_9] : memref<8x16x512xf32, #tpu.memory_space<vmem>>, vector<8x16x512xf32>
    tpu.vector_store %arg15[%c0_7, %c0_8, %c0_9], %10 {strides = array<i32>} : memref<8x16x512xf32, #tpu.memory_space<vmem>>, vector<8x16x512xf32>,
    %c0_10 = arith.constant 0 : index
    %c0_11 = arith.constant 0 : index
    %12 = vector.load %arg7[%c0_10, %c0_11] : memref<128x512xf32, #tpu.memory_space<vmem>>, vector<128x512xf32>
    %c0_12 = arith.constant 0 : index
    %c0_13 = arith.constant 0 : index
    %13 = vector.load %arg17[%c0_12, %c0_13] : memref<16x128xf32, #tpu.memory_space<vmem>>, vector<16x128xf32>
    %c0_14 = arith.constant 0 : index
    %c0_15 = arith.constant 0 : index
    %14 = vector.load %arg18[%c0_14, %c0_15] : memref<16x128xf32, #tpu.memory_space<vmem>>, vector<16x128xf32>
    %c0_i32_16 = arith.constant 0 : i32
    %15 = arith.index_cast %c0_i32_16 : i32 to index
    %c0_17 = arith.constant 0 : index
    %c0_18 = arith.constant 0 : index
    %16 = vector.load %arg15[%15, %c0_17, %c0_18] : memref<8x16x512xf32, #tpu.memory_space<vmem>>, vector<1x16x512xf32>
    %17 = vector.shape_cast %16 : vector<1x16x512xf32> to vector<16x512xf32>
    %cst_19 = arith.constant dense<0.000000e+00> : vector<16x512xf32>
    %18 = tpu.matmul %13, %12, %cst_19 {dimension_numbers = #tpu.dot_dimension_numbers<[1], [0], [0], [1], [0, 0, 1, 1], [], []>} : vector<16x128xf32>, vector<128x512xf32>, vector<16x512xf32> -> vector<16x512xf32>
    %19 = arith.addf %17, %18 : vector<16x512xf32>
    %20 = vector.extract_strided_slice %19 {offsets = [0, 0], sizes = [16, 384], strides = [1, 1]} : vector<16x512xf32> to vector<16x384xf32>
    %21 = arith.negf %20 : vector<16x384xf32>
    %22 = math.exp %21 : vector<16x384xf32>
    %cst_20 = arith.constant 1.000000e+00 : f32
    %23 = vector.broadcast %cst_20 : f32 to vector<16x384xf32>
    %24 = arith.addf %23, %22 : vector<16x384xf32>
    %25 = arith.divf %23, %24 : vector<16x384xf32>
    %26 = vector.extract_strided_slice %25 {offsets = [0, 0], sizes = [16, 128], strides = [1, 1]} : vector<16x384xf32> to vector<16x128xf32>
    %27 = vector.extract_strided_slice %25 {offsets = [0, 128], sizes = [16, 128], strides = [1, 1]} : vector<16x384xf32> to vector<16x128xf32>
    %28 = vector.extract_strided_slice %25 {offsets = [0, 256], sizes = [16, 128], strides = [1, 1]} : vector<16x384xf32> to vector<16x128xf32>
    %29 = vector.extract_strided_slice %19 {offsets = [0, 384], sizes = [16, 128], strides = [1, 1]} : vector<16x512xf32> to vector<16x128xf32>
    %30 = math.tanh %29 : vector<16x128xf32>
    %31 = arith.mulf %27, %14 : vector<16x128xf32>
    %32 = arith.mulf %26, %30 : vector<16x128xf32>
    %33 = arith.addf %31, %32 : vector<16x128xf32>
    %34 = math.tanh %33 : vector<16x128xf32>
    %35 = arith.mulf %28, %34 : vector<16x128xf32>
    %36 = arith.index_cast %c0_i32_16 : i32 to index
    %c0_21 = arith.constant 0 : index
    %c0_22 = arith.constant 0 : index
    %37 = vector.load %arg16[%36, %c0_21, %c0_22] : memref<8x16x128xf32, #tpu.memory_space<vmem>>, vector<1x16x128xf32>
    %38 = vector.shape_cast %37 : vector<1x16x128xf32> to vector<16x128xf32>
    %39 = vector.shape_cast %35 : vector<16x128xf32> to vector<1x16x128xf32>
    tpu.vector_store %arg16[%36, %c0_21, %c0_22], %39 {strides = array<i32>} : memref<8x16x128xf32, #tpu.memory_space<vmem>>, vector<1x16x128xf32>,
    %c1_i32 = arith.constant 1 : i32
    %40 = arith.index_cast %c1_i32 : i32 to index
    %c0_23 = arith.constant 0 : index
    %c0_24 = arith.constant 0 : index
    %41 = vector.load %arg15[%40, %c0_23, %c0_24] : memref<8x16x512xf32, #tpu.memory_space<vmem>>, vector<1x16x512xf32>
    %42 = vector.shape_cast %41 : vector<1x16x512xf32> to vector<16x512xf32>
    %cst_25 = arith.constant dense<0.000000e+00> : vector<16x512xf32>
    %43 = tpu.matmul %35, %12, %cst_25 {dimension_numbers = #tpu.dot_dimension_numbers<[1], [0], [0], [1], [0, 0, 1, 1], [], []>} : vector<16x128xf32>, vector<128x512xf32>, vector<16x512xf32> -> vector<16x512xf32>
    %44 = arith.addf %42, %43 : vector<16x512xf32>
    %45 = vector.extract_strided_slice %44 {offsets = [0, 0], sizes = [16, 384], strides = [1, 1]} : vector<16x512xf32> to vector<16x384xf32>
    %46 = arith.negf %45 : vector<16x384xf32>
    %47 = math.exp %46 : vector<16x384xf32>
    %cst_26 = arith.constant 1.000000e+00 : f32
    %48 = vector.broadcast %cst_26 : f32 to vector<16x384xf32>
    %49 = arith.addf %48, %47 : vector<16x384xf32>
    %50 = arith.divf %48, %49 : vector<16x384xf32>
    %51 = vector.extract_strided_slice %50 {offsets = [0, 0], sizes = [16, 128], strides = [1, 1]} : vector<16x384xf32> to vector<16x128xf32>
    %52 = vector.extract_strided_slice %50 {offsets = [0, 128], sizes = [16, 128], strides = [1, 1]} : vector<16x384xf32> to vector<16x128xf32>
    %53 = vector.extract_strided_slice %50 {offsets = [0, 256], sizes = [16, 128], strides = [1, 1]} : vector<16x384xf32> to vector<16x128xf32>
    %54 = vector.extract_strided_slice %44 {offsets = [0, 384], sizes = [16, 128], strides = [1, 1]} : vector<16x512xf32> to vector<16x128xf32>
    %55 = math.tanh %54 : vector<16x128xf32>
    %56 = arith.mulf %52, %33 : vector<16x128xf32>
    %57 = arith.mulf %51, %55 : vector<16x128xf32>
    %58 = arith.addf %56, %57 : vector<16x128xf32>
    %59 = math.tanh %58 : vector<16x128xf32>
    %60 = arith.mulf %53, %59 : vector<16x128xf32>
    %61 = arith.index_cast %c1_i32 : i32 to index
    %c0_27 = arith.constant 0 : index
    %c0_28 = arith.constant 0 : index
    %62 = vector.load %arg16[%61, %c0_27, %c0_28] : memref<8x16x128xf32, #tpu.memory_space<vmem>>, vector<1x16x128xf32>
    %63 = vector.shape_cast %62 : vector<1x16x128xf32> to vector<16x128xf32>
    %64 = vector.shape_cast %60 : vector<16x128xf32> to vector<1x16x128xf32>
    tpu.vector_store %arg16[%61, %c0_27, %c0_28], %64 {strides = array<i32>} : memref<8x16x128xf32, #tpu.memory_space<vmem>>, vector<1x16x128xf32>,
    %c2_i32 = arith.constant 2 : i32
    %65 = arith.index_cast %c2_i32 : i32 to index
    %c0_29 = arith.constant 0 : index
    %c0_30 = arith.constant 0 : index
    %66 = vector.load %arg15[%65, %c0_29, %c0_30] : memref<8x16x512xf32, #tpu.memory_space<vmem>>, vector<1x16x512xf32>
    %67 = vector.shape_cast %66 : vector<1x16x512xf32> to vector<16x512xf32>
    %cst_31 = arith.constant dense<0.000000e+00> : vector<16x512xf32>
    %68 = tpu.matmul %60, %12, %cst_31 {dimension_numbers = #tpu.dot_dimension_numbers<[1], [0], [0], [1], [0, 0, 1, 1], [], []>} : vector<16x128xf32>, vector<128x512xf32>, vector<16x512xf32> -> vector<16x512xf32>
    %69 = arith.addf %67, %68 : vector<16x512xf32>
    %70 = vector.extract_strided_slice %69 {offsets = [0, 0], sizes = [16, 384], strides = [1, 1]} : vector<16x512xf32> to vector<16x384xf32>
    %71 = arith.negf %70 : vector<16x384xf32>
    %72 = math.exp %71 : vector<16x384xf32>
    %cst_32 = arith.constant 1.000000e+00 : f32
    %73 = vector.broadcast %cst_32 : f32 to vector<16x384xf32>
    %74 = arith.addf %73, %72 : vector<16x384xf32>
    %75 = arith.divf %73, %74 : vector<16x384xf32>
    %76 = vector.extract_strided_slice %75 {offsets = [0, 0], sizes = [16, 128], strides = [1, 1]} : vector<16x384xf32> to vector<16x128xf32>
    %77 = vector.extract_strided_slice %75 {offsets = [0, 128], sizes = [16, 128], strides = [1, 1]} : vector<16x384xf32> to vector<16x128xf32>
    %78 = vector.extract_strided_slice %75 {offsets = [0, 256], sizes = [16, 128], strides = [1, 1]} : vector<16x384xf32> to vector<16x128xf32>
    %79 = vector.extract_strided_slice %69 {offsets = [0, 384], sizes = [16, 128], strides = [1, 1]} : vector<16x512xf32> to vector<16x128xf32>
    %80 = math.tanh %79 : vector<16x128xf32>
    %81 = arith.mulf %77, %58 : vector<16x128xf32>
    %82 = arith.mulf %76, %80 : vector<16x128xf32>
    %83 = arith.addf %81, %82 : vector<16x128xf32>
    %84 = math.tanh %83 : vector<16x128xf32>
    %85 = arith.mulf %78, %84 : vector<16x128xf32>
    %86 = arith.index_cast %c2_i32 : i32 to index
    %c0_33 = arith.constant 0 : index
    %c0_34 = arith.constant 0 : index
    %87 = vector.load %arg16[%86, %c0_33, %c0_34] : memref<8x16x128xf32, #tpu.memory_space<vmem>>, vector<1x16x128xf32>
    %88 = vector.shape_cast %87 : vector<1x16x128xf32> to vector<16x128xf32>
    %89 = vector.shape_cast %85 : vector<16x128xf32> to vector<1x16x128xf32>
    tpu.vector_store %arg16[%86, %c0_33, %c0_34], %89 {strides = array<i32>} : memref<8x16x128xf32, #tpu.memory_space<vmem>>, vector<1x16x128xf32>,
    %c3_i32 = arith.constant 3 : i32
    %90 = arith.index_cast %c3_i32 : i32 to index
    %c0_35 = arith.constant 0 : index
    %c0_36 = arith.constant 0 : index
    %91 = vector.load %arg15[%90, %c0_35, %c0_36] : memref<8x16x512xf32, #tpu.memory_space<vmem>>, vector<1x16x512xf32>
    %92 = vector.shape_cast %91 : vector<1x16x512xf32> to vector<16x512xf32>
    %cst_37 = arith.constant dense<0.000000e+00> : vector<16x512xf32>
    %93 = tpu.matmul %85, %12, %cst_37 {dimension_numbers = #tpu.dot_dimension_numbers<[1], [0], [0], [1], [0, 0, 1, 1], [], []>} : vector<16x128xf32>, vector<128x512xf32>, vector<16x512xf32> -> vector<16x512xf32>
    %94 = arith.addf %92, %93 : vector<16x512xf32>
    %95 = vector.extract_strided_slice %94 {offsets = [0, 0], sizes = [16, 384], strides = [1, 1]} : vector<16x512xf32> to vector<16x384xf32>
    %96 = arith.negf %95 : vector<16x384xf32>
    %97 = math.exp %96 : vector<16x384xf32>
    %cst_38 = arith.constant 1.000000e+00 : f32
    %98 = vector.broadcast %cst_38 : f32 to vector<16x384xf32>
    %99 = arith.addf %98, %97 : vector<16x384xf32>
    %100 = arith.divf %98, %99 : vector<16x384xf32>
    %101 = vector.extract_strided_slice %100 {offsets = [0, 0], sizes = [16, 128], strides = [1, 1]} : vector<16x384xf32> to vector<16x128xf32>
    %102 = vector.extract_strided_slice %100 {offsets = [0, 128], sizes = [16, 128], strides = [1, 1]} : vector<16x384xf32> to vector<16x128xf32>
    %103 = vector.extract_strided_slice %100 {offsets = [0, 256], sizes = [16, 128], strides = [1, 1]} : vector<16x384xf32> to vector<16x128xf32>
    %104 = vector.extract_strided_slice %94 {offsets = [0, 384], sizes = [16, 128], strides = [1, 1]} : vector<16x512xf32> to vector<16x128xf32>
    %105 = math.tanh %104 : vector<16x128xf32>
    %106 = arith.mulf %102, %83 : vector<16x128xf32>
    %107 = arith.mulf %101, %105 : vector<16x128xf32>
    %108 = arith.addf %106, %107 : vector<16x128xf32>
    %109 = math.tanh %108 : vector<16x128xf32>
    %110 = arith.mulf %103, %109 : vector<16x128xf32>
    %111 = arith.index_cast %c3_i32 : i32 to index
    %c0_39 = arith.constant 0 : index
    %c0_40 = arith.constant 0 : index
    %112 = vector.load %arg16[%111, %c0_39, %c0_40] : memref<8x16x128xf32, #tpu.memory_space<vmem>>, vector<1x16x128xf32>
    %113 = vector.shape_cast %112 : vector<1x16x128xf32> to vector<16x128xf32>
    %114 = vector.shape_cast %110 : vector<16x128xf32> to vector<1x16x128xf32>
    tpu.vector_store %arg16[%111, %c0_39, %c0_40], %114 {strides = array<i32>} : memref<8x16x128xf32, #tpu.memory_space<vmem>>, vector<1x16x128xf32>,
    %c4_i32 = arith.constant 4 : i32
    %115 = arith.index_cast %c4_i32 : i32 to index
    %c0_41 = arith.constant 0 : index
    %c0_42 = arith.constant 0 : index
    %116 = vector.load %arg15[%115, %c0_41, %c0_42] : memref<8x16x512xf32, #tpu.memory_space<vmem>>, vector<1x16x512xf32>
    %117 = vector.shape_cast %116 : vector<1x16x512xf32> to vector<16x512xf32>
    %cst_43 = arith.constant dense<0.000000e+00> : vector<16x512xf32>
    %118 = tpu.matmul %110, %12, %cst_43 {dimension_numbers = #tpu.dot_dimension_numbers<[1], [0], [0], [1], [0, 0, 1, 1], [], []>} : vector<16x128xf32>, vector<128x512xf32>, vector<16x512xf32> -> vector<16x512xf32>
    %119 = arith.addf %117, %118 : vector<16x512xf32>
    %120 = vector.extract_strided_slice %119 {offsets = [0, 0], sizes = [16, 384], strides = [1, 1]} : vector<16x512xf32> to vector<16x384xf32>
    %121 = arith.negf %120 : vector<16x384xf32>
    %122 = math.exp %121 : vector<16x384xf32>
    %cst_44 = arith.constant 1.000000e+00 : f32
    %123 = vector.broadcast %cst_44 : f32 to vector<16x384xf32>
    %124 = arith.addf %123, %122 : vector<16x384xf32>
    %125 = arith.divf %123, %124 : vector<16x384xf32>
    %126 = vector.extract_strided_slice %125 {offsets = [0, 0], sizes = [16, 128], strides = [1, 1]} : vector<16x384xf32> to vector<16x128xf32>
    %127 = vector.extract_strided_slice %125 {offsets = [0, 128], sizes = [16, 128], strides = [1, 1]} : vector<16x384xf32> to vector<16x128xf32>
    %128 = vector.extract_strided_slice %125 {offsets = [0, 256], sizes = [16, 128], strides = [1, 1]} : vector<16x384xf32> to vector<16x128xf32>
    %129 = vector.extract_strided_slice %119 {offsets = [0, 384], sizes = [16, 128], strides = [1, 1]} : vector<16x512xf32> to vector<16x128xf32>
    %130 = math.tanh %129 : vector<16x128xf32>
    %131 = arith.mulf %127, %108 : vector<16x128xf32>
    %132 = arith.mulf %126, %130 : vector<16x128xf32>
    %133 = arith.addf %131, %132 : vector<16x128xf32>
    %134 = math.tanh %133 : vector<16x128xf32>
    %135 = arith.mulf %128, %134 : vector<16x128xf32>
    %136 = arith.index_cast %c4_i32 : i32 to index
    %c0_45 = arith.constant 0 : index
    %c0_46 = arith.constant 0 : index
    %137 = vector.load %arg16[%136, %c0_45, %c0_46] : memref<8x16x128xf32, #tpu.memory_space<vmem>>, vector<1x16x128xf32>
    %138 = vector.shape_cast %137 : vector<1x16x128xf32> to vector<16x128xf32>
    %139 = vector.shape_cast %135 : vector<16x128xf32> to vector<1x16x128xf32>
    tpu.vector_store %arg16[%136, %c0_45, %c0_46], %139 {strides = array<i32>} : memref<8x16x128xf32, #tpu.memory_space<vmem>>, vector<1x16x128xf32>,
    %c5_i32 = arith.constant 5 : i32
    %140 = arith.index_cast %c5_i32 : i32 to index
    %c0_47 = arith.constant 0 : index
    %c0_48 = arith.constant 0 : index
    %141 = vector.load %arg15[%140, %c0_47, %c0_48] : memref<8x16x512xf32, #tpu.memory_space<vmem>>, vector<1x16x512xf32>
    %142 = vector.shape_cast %141 : vector<1x16x512xf32> to vector<16x512xf32>
    %cst_49 = arith.constant dense<0.000000e+00> : vector<16x512xf32>
    %143 = tpu.matmul %135, %12, %cst_49 {dimension_numbers = #tpu.dot_dimension_numbers<[1], [0], [0], [1], [0, 0, 1, 1], [], []>} : vector<16x128xf32>, vector<128x512xf32>, vector<16x512xf32> -> vector<16x512xf32>
    %144 = arith.addf %142, %143 : vector<16x512xf32>
    %145 = vector.extract_strided_slice %144 {offsets = [0, 0], sizes = [16, 384], strides = [1, 1]} : vector<16x512xf32> to vector<16x384xf32>
    %146 = arith.negf %145 : vector<16x384xf32>
    %147 = math.exp %146 : vector<16x384xf32>
    %cst_50 = arith.constant 1.000000e+00 : f32
    %148 = vector.broadcast %cst_50 : f32 to vector<16x384xf32>
    %149 = arith.addf %148, %147 : vector<16x384xf32>
    %150 = arith.divf %148, %149 : vector<16x384xf32>
    %151 = vector.extract_strided_slice %150 {offsets = [0, 0], sizes = [16, 128], strides = [1, 1]} : vector<16x384xf32> to vector<16x128xf32>
    %152 = vector.extract_strided_slice %150 {offsets = [0, 128], sizes = [16, 128], strides = [1, 1]} : vector<16x384xf32> to vector<16x128xf32>
    %153 = vector.extract_strided_slice %150 {offsets = [0, 256], sizes = [16, 128], strides = [1, 1]} : vector<16x384xf32> to vector<16x128xf32>
    %154 = vector.extract_strided_slice %144 {offsets = [0, 384], sizes = [16, 128], strides = [1, 1]} : vector<16x512xf32> to vector<16x128xf32>
    %155 = math.tanh %154 : vector<16x128xf32>
    %156 = arith.mulf %152, %133 : vector<16x128xf32>
    %157 = arith.mulf %151, %155 : vector<16x128xf32>
    %158 = arith.addf %156, %157 : vector<16x128xf32>
    %159 = math.tanh %158 : vector<16x128xf32>
    %160 = arith.mulf %153, %159 : vector<16x128xf32>
    %161 = arith.index_cast %c5_i32 : i32 to index
    %c0_51 = arith.constant 0 : index
    %c0_52 = arith.constant 0 : index
    %162 = vector.load %arg16[%161, %c0_51, %c0_52] : memref<8x16x128xf32, #tpu.memory_space<vmem>>, vector<1x16x128xf32>
    %163 = vector.shape_cast %162 : vector<1x16x128xf32> to vector<16x128xf32>
    %164 = vector.shape_cast %160 : vector<16x128xf32> to vector<1x16x128xf32>
    tpu.vector_store %arg16[%161, %c0_51, %c0_52], %164 {strides = array<i32>} : memref<8x16x128xf32, #tpu.memory_space<vmem>>, vector<1x16x128xf32>,
    %c6_i32 = arith.constant 6 : i32
    %165 = arith.index_cast %c6_i32 : i32 to index
    %c0_53 = arith.constant 0 : index
    %c0_54 = arith.constant 0 : index
    %166 = vector.load %arg15[%165, %c0_53, %c0_54] : memref<8x16x512xf32, #tpu.memory_space<vmem>>, vector<1x16x512xf32>
    %167 = vector.shape_cast %166 : vector<1x16x512xf32> to vector<16x512xf32>
    %cst_55 = arith.constant dense<0.000000e+00> : vector<16x512xf32>
    %168 = tpu.matmul %160, %12, %cst_55 {dimension_numbers = #tpu.dot_dimension_numbers<[1], [0], [0], [1], [0, 0, 1, 1], [], []>} : vector<16x128xf32>, vector<128x512xf32>, vector<16x512xf32> -> vector<16x512xf32>
    %169 = arith.addf %167, %168 : vector<16x512xf32>
    %170 = vector.extract_strided_slice %169 {offsets = [0, 0], sizes = [16, 384], strides = [1, 1]} : vector<16x512xf32> to vector<16x384xf32>
    %171 = arith.negf %170 : vector<16x384xf32>
    %172 = math.exp %171 : vector<16x384xf32>
    %cst_56 = arith.constant 1.000000e+00 : f32
    %173 = vector.broadcast %cst_56 : f32 to vector<16x384xf32>
    %174 = arith.addf %173, %172 : vector<16x384xf32>
    %175 = arith.divf %173, %174 : vector<16x384xf32>
    %176 = vector.extract_strided_slice %175 {offsets = [0, 0], sizes = [16, 128], strides = [1, 1]} : vector<16x384xf32> to vector<16x128xf32>
    %177 = vector.extract_strided_slice %175 {offsets = [0, 128], sizes = [16, 128], strides = [1, 1]} : vector<16x384xf32> to vector<16x128xf32>
    %178 = vector.extract_strided_slice %175 {offsets = [0, 256], sizes = [16, 128], strides = [1, 1]} : vector<16x384xf32> to vector<16x128xf32>
    %179 = vector.extract_strided_slice %169 {offsets = [0, 384], sizes = [16, 128], strides = [1, 1]} : vector<16x512xf32> to vector<16x128xf32>
    %180 = math.tanh %179 : vector<16x128xf32>
    %181 = arith.mulf %177, %158 : vector<16x128xf32>
    %182 = arith.mulf %176, %180 : vector<16x128xf32>
    %183 = arith.addf %181, %182 : vector<16x128xf32>
    %184 = math.tanh %183 : vector<16x128xf32>
    %185 = arith.mulf %178, %184 : vector<16x128xf32>
    %186 = arith.index_cast %c6_i32 : i32 to index
    %c0_57 = arith.constant 0 : index
    %c0_58 = arith.constant 0 : index
    %187 = vector.load %arg16[%186, %c0_57, %c0_58] : memref<8x16x128xf32, #tpu.memory_space<vmem>>, vector<1x16x128xf32>
    %188 = vector.shape_cast %187 : vector<1x16x128xf32> to vector<16x128xf32>
    %189 = vector.shape_cast %185 : vector<16x128xf32> to vector<1x16x128xf32>
    tpu.vector_store %arg16[%186, %c0_57, %c0_58], %189 {strides = array<i32>} : memref<8x16x128xf32, #tpu.memory_space<vmem>>, vector<1x16x128xf32>,
    %c7_i32 = arith.constant 7 : i32
    %190 = arith.index_cast %c7_i32 : i32 to index
    %c0_59 = arith.constant 0 : index
    %c0_60 = arith.constant 0 : index
    %191 = vector.load %arg15[%190, %c0_59, %c0_60] : memref<8x16x512xf32, #tpu.memory_space<vmem>>, vector<1x16x512xf32>
    %192 = vector.shape_cast %191 : vector<1x16x512xf32> to vector<16x512xf32>
    %cst_61 = arith.constant dense<0.000000e+00> : vector<16x512xf32>
    %193 = tpu.matmul %185, %12, %cst_61 {dimension_numbers = #tpu.dot_dimension_numbers<[1], [0], [0], [1], [0, 0, 1, 1], [], []>} : vector<16x128xf32>, vector<128x512xf32>, vector<16x512xf32> -> vector<16x512xf32>
    %194 = arith.addf %192, %193 : vector<16x512xf32>
    %195 = vector.extract_strided_slice %194 {offsets = [0, 0], sizes = [16, 384], strides = [1, 1]} : vector<16x512xf32> to vector<16x384xf32>
    %196 = arith.negf %195 : vector<16x384xf32>
    %197 = math.exp %196 : vector<16x384xf32>
    %cst_62 = arith.constant 1.000000e+00 : f32
    %198 = vector.broadcast %cst_62 : f32 to vector<16x384xf32>
    %199 = arith.addf %198, %197 : vector<16x384xf32>
    %200 = arith.divf %198, %199 : vector<16x384xf32>
    %201 = vector.extract_strided_slice %200 {offsets = [0, 0], sizes = [16, 128], strides = [1, 1]} : vector<16x384xf32> to vector<16x128xf32>
    %202 = vector.extract_strided_slice %200 {offsets = [0, 128], sizes = [16, 128], strides = [1, 1]} : vector<16x384xf32> to vector<16x128xf32>
    %203 = vector.extract_strided_slice %200 {offsets = [0, 256], sizes = [16, 128], strides = [1, 1]} : vector<16x384xf32> to vector<16x128xf32>
    %204 = vector.extract_strided_slice %194 {offsets = [0, 384], sizes = [16, 128], strides = [1, 1]} : vector<16x512xf32> to vector<16x128xf32>
    %205 = math.tanh %204 : vector<16x128xf32>
    %206 = arith.mulf %202, %183 : vector<16x128xf32>
    %207 = arith.mulf %201, %205 : vector<16x128xf32>
    %208 = arith.addf %206, %207 : vector<16x128xf32>
    %209 = math.tanh %208 : vector<16x128xf32>
    %210 = arith.mulf %203, %209 : vector<16x128xf32>
    %211 = arith.index_cast %c7_i32 : i32 to index
    %c0_63 = arith.constant 0 : index
    %c0_64 = arith.constant 0 : index
    %212 = vector.load %arg16[%211, %c0_63, %c0_64] : memref<8x16x128xf32, #tpu.memory_space<vmem>>, vector<1x16x128xf32>
    %213 = vector.shape_cast %212 : vector<1x16x128xf32> to vector<16x128xf32>
    %214 = vector.shape_cast %210 : vector<16x128xf32> to vector<1x16x128xf32>
    tpu.vector_store %arg16[%211, %c0_63, %c0_64], %214 {strides = array<i32>} : memref<8x16x128xf32, #tpu.memory_space<vmem>>, vector<1x16x128xf32>,
    %c8_i32 = arith.constant 8 : i32
    %c0_65 = arith.constant 0 : index
    %c0_66 = arith.constant 0 : index
    %215 = vector.load %arg17[%c0_65, %c0_66] : memref<16x128xf32, #tpu.memory_space<vmem>>, vector<16x128xf32>
    tpu.vector_store %arg17[%c0_65, %c0_66], %210 {strides = array<i32>} : memref<16x128xf32, #tpu.memory_space<vmem>>, vector<16x128xf32>,
    %c0_67 = arith.constant 0 : index
    %c0_68 = arith.constant 0 : index
    %216 = vector.load %arg18[%c0_67, %c0_68] : memref<16x128xf32, #tpu.memory_space<vmem>>, vector<16x128xf32>
    tpu.vector_store %arg18[%c0_67, %c0_68], %208 {strides = array<i32>} : memref<16x128xf32, #tpu.memory_space<vmem>>, vector<16x128xf32>,
    %c0_69 = arith.constant 0 : index
    %c0_70 = arith.constant 0 : index
    %217 = vector.load %arg13[%c0_69, %c0_70] : memref<16x128xf32, #tpu.memory_space<vmem>>, vector<16x128xf32>
    tpu.vector_store %arg13[%c0_69, %c0_70], %210 {strides = array<i32>} : memref<16x128xf32, #tpu.memory_space<vmem>>, vector<16x128xf32>,
    %c0_71 = arith.constant 0 : index
    %c0_72 = arith.constant 0 : index
    %218 = vector.load %arg14[%c0_71, %c0_72] : memref<16x128xf32, #tpu.memory_space<vmem>>, vector<16x128xf32>
    tpu.vector_store %arg14[%c0_71, %c0_72], %208 {strides = array<i32>} : memref<16x128xf32, #tpu.memory_space<vmem>>, vector<16x128xf32>,
    %c0_73 = arith.constant 0 : index
    %c0_74 = arith.constant 0 : index
    %c0_75 = arith.constant 0 : index
    %219 = vector.load %arg16[%c0_73, %c0_74, %c0_75] : memref<8x16x128xf32, #tpu.memory_space<vmem>>, vector<8x16x128xf32>
    %220 = vector.shape_cast %219 : vector<8x16x128xf32> to vector<128x128xf32>
    %c0_76 = arith.constant 0 : index
    %c0_77 = arith.constant 0 : index
    %221 = vector.load %arg9[%c0_76, %c0_77] : memref<128x256xf32, #tpu.memory_space<vmem>>, vector<128x256xf32>
    %cst_78 = arith.constant dense<0.000000e+00> : vector<128x256xf32>
    %222 = tpu.matmul %220, %221, %cst_78 {dimension_numbers = #tpu.dot_dimension_numbers<[1], [0], [0], [1], [0, 0, 1, 1], [], []>} : vector<128x128xf32>, vector<128x256xf32>, vector<128x256xf32> -> vector<128x256xf32>
    %c0_79 = arith.constant 0 : index
    %c0_80 = arith.constant 0 : index
    %223 = vector.load %arg10[%c0_79, %c0_80] : memref<1x256xf32, #tpu.memory_space<vmem>>, vector<1x256xf32>
    %224 = vector.broadcast %223 : vector<1x256xf32> to vector<128x256xf32>
    %225 = arith.addf %222, %224 : vector<128x256xf32>
    %226 = tpu.transpose %225, [1, 0] : vector<128x256xf32> -> vector<256x128xf32>
    %227 = vector.extract_strided_slice %226 {offsets = [0, 0], sizes = [4, 128], strides = [1, 1]} : vector<256x128xf32> to vector<4x128xf32>
    %228 = vector.extract_strided_slice %226 {offsets = [128, 0], sizes = [4, 128], strides = [1, 1]} : vector<256x128xf32> to vector<4x128xf32>
    %cst_81 = arith.constant -2.000000e+01 : f32
    %cst_82 = arith.constant 2.000000e+00 : f32
    %229 = vector.broadcast %cst_81 : f32 to vector<4x128xf32>
    %230 = arith.maximumf %229, %228 : vector<4x128xf32>
    %231 = vector.broadcast %cst_82 : f32 to vector<4x128xf32>
    %232 = arith.minimumf %231, %230 : vector<4x128xf32>
    %233 = math.exp %232 : vector<4x128xf32>
    %c0_83 = arith.constant 0 : index
    %c0_84 = arith.constant 0 : index
    %c0_85 = arith.constant 0 : index
    %234 = vector.load %arg3[%c0_83, %c0_84, %c0_85] : memref<1x4x128xf32, #tpu.memory_space<vmem>>, vector<1x4x128xf32>
    %235 = vector.shape_cast %234 : vector<1x4x128xf32> to vector<4x128xf32>
    %236 = arith.mulf %233, %235 : vector<4x128xf32>
    %237 = arith.addf %227, %236 : vector<4x128xf32>
    %238 = math.tanh %237 : vector<4x128xf32>
    %cst_86 = arith.constant -5.000000e-01 : f32
    %239 = vector.broadcast %cst_86 : f32 to vector<4x128xf32>
    %240 = arith.mulf %239, %235 : vector<4x128xf32>
    %241 = arith.mulf %240, %235 : vector<4x128xf32>
    %242 = arith.subf %241, %232 : vector<4x128xf32>
    %cst_87 = arith.constant 0.918938517 : f32
    %243 = vector.broadcast %cst_87 : f32 to vector<4x128xf32>
    %244 = arith.subf %242, %243 : vector<4x128xf32>
    %245 = arith.mulf %238, %238 : vector<4x128xf32>
    %cst_88 = arith.constant 1.000000e+00 : f32
    %246 = vector.broadcast %cst_88 : f32 to vector<4x128xf32>
    %247 = arith.subf %246, %245 : vector<4x128xf32>
    %cst_89 = arith.constant 9.99999997E-7 : f32
    %248 = vector.broadcast %cst_89 : f32 to vector<4x128xf32>
    %249 = arith.addf %247, %248 : vector<4x128xf32>
    %250 = math.log %249 : vector<4x128xf32>
    %251 = arith.subf %244, %250 : vector<4x128xf32>
    %c0_90 = arith.constant 0 : index
    %c0_91 = arith.constant 0 : index
    %c0_92 = arith.constant 0 : index
    %252 = vector.load %arg11[%c0_90, %c0_91, %c0_92] : memref<1x4x128xf32, #tpu.memory_space<vmem>>, vector<1x4x128xf32>
    %253 = vector.shape_cast %252 : vector<1x4x128xf32> to vector<4x128xf32>
    %254 = vector.shape_cast %238 : vector<4x128xf32> to vector<1x4x128xf32>
    tpu.vector_store %arg11[%c0_90, %c0_91, %c0_92], %254 {strides = array<i32>} : memref<1x4x128xf32, #tpu.memory_space<vmem>>, vector<1x4x128xf32>,
    %cst_93 = arith.constant dense<0.000000e+00> : vector<128xf32>
    %255 = vector.multi_reduction <add>, %251, %cst_93 [0] : vector<4x128xf32> to vector<128xf32>
    %256 = vector.shape_cast %255 : vector<128xf32> to vector<1x128xf32>
    %c0_94 = arith.constant 0 : index
    %c0_95 = arith.constant 0 : index
    %c0_96 = arith.constant 0 : index
    %257 = vector.load %arg12[%c0_94, %c0_95, %c0_96] : memref<1x1x128xf32, #tpu.memory_space<vmem>>, vector<1x1x128xf32>
    %258 = vector.shape_cast %257 : vector<1x1x128xf32> to vector<1x128xf32>
    %259 = vector.shape_cast %256 : vector<1x128xf32> to vector<1x1x128xf32>
    tpu.vector_store %arg12[%c0_94, %c0_95, %c0_96], %259 {strides = array<i32>} : memref<1x1x128xf32, #tpu.memory_space<vmem>>, vector<1x1x128xf32>,
    return
  }
  func.func @transform_0(%arg0: i32, %arg1: i32) -> (i32, i32, i32) {
    %c0_i32 = arith.constant 0 : i32
    %c0_i32_0 = arith.constant 0 : i32
    return %arg0, %arg1, %c0_i32 : i32, i32, i32
  }
  func.func @transform_1(%arg0: i32, %arg1: i32) -> (i32, i32, i32) {
    %c0_i32 = arith.constant 0 : i32
    %c0_i32_0 = arith.constant 0 : i32
    return %arg0, %c0_i32, %arg1 : i32, i32, i32
  }
  func.func @transform_2(%arg0: i32, %arg1: i32) -> (i32, i32) {
    %c0_i32 = arith.constant 0 : i32
    %c0_i32_0 = arith.constant 0 : i32
    return %arg0, %c0_i32 : i32, i32
  }
  func.func @transform_3(%arg0: i32, %arg1: i32) -> (i32, i32) {
    %c0_i32 = arith.constant 0 : i32
    %c0_i32_0 = arith.constant 0 : i32
    return %arg0, %c0_i32 : i32, i32
  }
  func.func @transform_4(%arg0: i32, %arg1: i32) -> (i32, i32) {
    %c0_i32 = arith.constant 0 : i32
    %c0_i32_0 = arith.constant 0 : i32
    %c0_i32_1 = arith.constant 0 : i32
    return %c0_i32, %c0_i32_0 : i32, i32
  }
  func.func @transform_5(%arg0: i32, %arg1: i32) -> (i32, i32) {
    %c0_i32 = arith.constant 0 : i32
    %c0_i32_0 = arith.constant 0 : i32
    %c0_i32_1 = arith.constant 0 : i32
    return %c0_i32, %c0_i32_0 : i32, i32
  }
  func.func @transform_6(%arg0: i32, %arg1: i32) -> (i32, i32) {
    %c0_i32 = arith.constant 0 : i32
    %c0_i32_0 = arith.constant 0 : i32
    %c0_i32_1 = arith.constant 0 : i32
    return %c0_i32, %c0_i32_0 : i32, i32
  }
  func.func @transform_7(%arg0: i32, %arg1: i32) -> (i32, i32) {
    %c0_i32 = arith.constant 0 : i32
    %c0_i32_0 = arith.constant 0 : i32
    %c0_i32_1 = arith.constant 0 : i32
    return %c0_i32, %c0_i32_0 : i32, i32
  }
  func.func @transform_8(%arg0: i32, %arg1: i32) -> (i32, i32) {
    %c0_i32 = arith.constant 0 : i32
    %c0_i32_0 = arith.constant 0 : i32
    %c0_i32_1 = arith.constant 0 : i32
    return %c0_i32, %c0_i32_0 : i32, i32
  }
  func.func @transform_9(%arg0: i32, %arg1: i32) -> (i32, i32, i32) {
    %c0_i32 = arith.constant 0 : i32
    %c0_i32_0 = arith.constant 0 : i32
    return %arg0, %c0_i32, %arg1 : i32, i32, i32
  }
  func.func @transform_10(%arg0: i32, %arg1: i32) -> (i32, i32, i32) {
    %c0_i32 = arith.constant 0 : i32
    %c0_i32_0 = arith.constant 0 : i32
    return %arg0, %c0_i32, %arg1 : i32, i32, i32
  }
  func.func @transform_11(%arg0: i32, %arg1: i32) -> (i32, i32) {
    %c0_i32 = arith.constant 0 : i32
    %c0_i32_0 = arith.constant 0 : i32
    return %arg0, %c0_i32 : i32, i32
  }
  func.func @transform_12(%arg0: i32, %arg1: i32) -> (i32, i32) {
    %c0_i32 = arith.constant 0 : i32
    %c0_i32_0 = arith.constant 0 : i32
    return %arg0, %c0_i32 : i32, i32
  }
}

</mosaic_0001>

<bundles_post_ra>
// kernel: tpu_custom_call.1
= control target key start
LH: loop header
LB: loop body
LE: loop exit
PB: predicated region body
PF: predicated region fallthrough
CT: control target
= control target key end

     0   :  { %18 = vsyncpa [#allocation7], 0  ;;  %s5500_s0 = inlined_call_operand.vmem [shape: f32[1,128,16], index: 0, kind: input, shape index: {}]   ;;  %s5501_s1 = inlined_call_operand.vmem [shape: f32[1,4,128], index: 1, kind: input, shape index: {}]   ;;  %s5502_s2 = inlined_call_operand.vmem [shape: f32[16,128], index: 2, kind: input, shape index: {}]   ;;  %s5503_s3 = inlined_call_operand.vmem [shape: f32[16,128], index: 3, kind: input, shape index: {}]   ;;  %s5504_s4 = inlined_call_operand.vmem [shape: f32[16,512], index: 4, kind: input, shape index: {}]   ;;  %s5505_s5 = inlined_call_operand.hbm [shape: f32[128,512], index: 5, kind: input, shape index: {}]   ;;  %s5506_s6 = inlined_call_operand.vmem [shape: f32[1,512], index: 6, kind: input, shape index: {}]   ;;  %s5507_s7 = inlined_call_operand.hbm [shape: f32[128,256], index: 7, kind: input, shape index: {}]   ;;  %s5508_s8 = inlined_call_operand.vmem [shape: f32[1,256], index: 8, kind: input, shape index: {}]   ;;  %s5509_s9 = inlined_call_operand.hbm [shape: f32[1,4,128], index: 9, kind: output, shape index: {0}]   ;;  %s5510_s10 = inlined_call_operand.hbm [shape: f32[1,1,128], index: 10, kind: output, shape index: {1}]   ;;  %s5511_s11 = inlined_call_operand.hbm [shape: f32[16,128], index: 11, kind: output, shape index: {2}]   ;;  %s5512_s12 = inlined_call_operand.hbm [shape: f32[16,128], index: 12, kind: output, shape index: {3}]  }
   0x1   :  { %19 = vsyncpa [#allocation10], 0 }
   0x2   :  { %20 = vsyncpa [#allocation8], 0 }
   0x3   :  { %21 = vsyncpa [#allocation13], 0 }
   0x4   :  { %22 = vsyncpa [#allocation16], 0  ;;  %s37_s23 = sshll.u32 %s5505_s5, 4  ;;  %s3486_s24 = smov [#allocation6]   ;;  %s38_s23 = int_to_ptr.hbm [resolvable:$true] %s37_s23 }
   0x5   :  { %s39_s25 = sshll.u32 %s3486_s24, 4  ;;  %s52_s28 = sshll.u32 %s5507_s7, 4  ;;  %s40_s25 = int_to_ptr.vmem [resolvable:$true] %s39_s25  ;;  %s53_s28 = int_to_ptr.hbm [resolvable:$true] %s52_s28 }
   0x6   :  { %s3487_s29 = smov 512   ;;  %s3488_s30 = smov 32  }
   0x7   :  { %45 = dma.hbm_to_vmem [thread:$0]  %s38_s23, 8192, %s40_s25, [#allocation7], %s3487_s29, %s3487_s29, %s3488_s30  }
   0x8   :  { %s3489_s13 = smov [#allocation9]   ;;  %s3490_s15 = smov 256  }
   0x9   :  { %s54_s14 = sshll.u32 %s3489_s13, 4  ;;  %s3491_s16 = smov 16   ;;  %s55_s14 = int_to_ptr.vmem [resolvable:$true] %s54_s14 }
   0xa   :  { %60 = dma.hbm_to_vmem [thread:$0]  %s53_s28, 4096, %s55_s14, [#allocation10], %s3490_s15, %s3490_s15, %s3491_s16  }
   0xb   :  { %3476 = dma.done.wait [#allocation7], 8192  }
   0xc   :  { %3477 = vsyncadd [#allocation7], 4294959104 }
   0xd   :  { %3478 = dma.done.wait [#allocation10], 4096  }
   0xe   :  { %3479 = vsyncadd [#allocation10], 4294963200  ;;  %v103_v0 = vld [vmem:[%s5504_s4 + $0x20] sm:$0xff]  ;;  %v104_v1 = vld [vmem:[%s5504_s4 + $0x28] sm:$0xff]  ;;  %vm117_vm0 = vcmask 130048   ;;  %s2785_s30 = sshll.u32 %s5512_s12, 4  ;;  %s2786_s30 = int_to_ptr.hbm [resolvable:$true] %s2785_s30 }
   0xf   :  { %v99_v2 = vld [vmem:[%s5504_s4] sm:$0xff]  ;;  %2926 = vmatpush.msra.mxu2 %v103_v0  ;;  %2928 = vmatpush.msra.mxu3 %v104_v1  ;;  %v100_v3 = vld [vmem:[%s5504_s4 + $0x8] sm:$0xff]  ;;  %v3584_v4 = vld [vmem:[%s5500_s0 + $0x38] sm:$0xff]  ;;  %s3492_s13 = smov [#allocation15]   ;;  %s3493_s15 = smov 128  }
  0x10   :  { %v105_v5 = vld [vmem:[%s5504_s4 + $0x30] sm:$0xff]  ;;  %v106_v6 = vld [vmem:[%s5504_s4 + $0x38] sm:$0xff]  ;;  %180 = vmatpush.msra.mxu0 %v103_v0  ;;  %245 = vmatpush.msra.mxu1 %v104_v1  ;;  %v3602_v8 = vld [vmem:[%s5500_s0 + $0x40] sm:$0xff]  ;;  %s2783_s14 = sshll.u32 %s3492_s13, 4  ;;  %s3494_s16 = smov 8   ;;  %s2784_s14 = int_to_ptr.vmem [resolvable:$true] %s2783_s14 }
  0x11   :  { %2927 = vmatpush.msra.mxu2 %v99_v2  ;;  %2929 = vmatpush.msra.mxu3 %v100_v3  ;;  %v101_v7 = vld [vmem:[%s5504_s4 + $0x10] sm:$0xff]  ;;  %v102_v9 = vld [vmem:[%s5504_s4 + $0x18] sm:$0xff]  ;;  %v3614_v10 = vld [vmem:[%s5500_s0 + $0x48] sm:$0xff]  ;;  %s3495_s17 = smov [#allocation11]   ;;  %s2751_s19 = sshll.u32 %s5509_s9, 4  ;;  %s2752_s19 = int_to_ptr.hbm [resolvable:$true] %s2751_s19 }
  0x12   :  { %2820 = vmatmul.msk.f32.vlgmr.msra.gmra.mxu2 %vm117_vm0, %v3584_v4  ;;  %2836 = vmatmul.msk.f32.vlgmr.msra.gmra.mxu3 %vm117_vm0, %v3584_v4  ;;  %v3623_v11 = vld [vmem:[%s5500_s0 + $0x50] sm:$0xff]  ;;  %v3632_v12 = vld [vmem:[%s5500_s0 + $0x58] sm:$0xff]  ;;  %v83_v13 = vld [vmem:[%s5500_s0] sm:$0xff]  ;;  %s2749_s18 = sshll.u32 %s3495_s17, 4  ;;  %s2762_s21 = sshll.u32 %s5510_s10, 4  ;;  %s2750_s18 = int_to_ptr.vmem [resolvable:$true] %s2749_s18  ;;  %s2763_s21 = int_to_ptr.hbm [resolvable:$true] %s2762_s21 }
  0x13   :  { %310 = vmatpush.msrb.mxu2 %v105_v5  ;;  %375 = vmatpush.msrb.mxu3 %v106_v6  ;;  %v3646_v14 = vld [vmem:[%s5500_s0 + $0x60] sm:$0xff]  ;;  %v3652_v15 = vld [vmem:[#allocation6 + $0x1f0] sm:$0xff]  ;;  %v3657_v16 = vld [vmem:[%s5500_s0 + $0x8] sm:$0xff]  ;;  %s3497_s22 = smov [#allocation14]  }
  0x14   :  { %181 = vmatpush.msra.mxu0 %v99_v2  ;;  %246 = vmatpush.msra.mxu1 %v100_v3  ;;  %v3667_v17 = vld [vmem:[%s5500_s0 + $0x68] sm:$0xff]  ;;  %v3673_v18 = vld [vmem:[#allocation6 + $0x1d0] sm:$0xff]  ;;  %v3675_v19 = vld [vmem:[#allocation6 + $0x1f8] sm:$0xff]  ;;  %s2770_s23 = sshll.u32 %s3497_s22, 4  ;;  %s2771_s23 = int_to_ptr.vmem [resolvable:$true] %s2770_s23 }
  0x15   :  { %311 = vmatpush.msrb.mxu2 %v101_v7  ;;  %376 = vmatpush.msrb.mxu3 %v102_v9  ;;  %v3680_v20 = vld [vmem:[%s5500_s0 + $0x10] sm:$0xff]  ;;  %v3699_v23 = vld [vmem:[#allocation6 + $0x1d8] sm:$0xff]  ;;  %v3723_v27 = vld [vmem:[#allocation6 + $0x1e0] sm:$0xff] }
  0x16   :  { %2813 = vmatmul.msk.f32.vlgmr.msra.gmra.mxu0 %vm117_vm0, %v83_v13  ;;  %2829 = vmatmul.msk.f32.vlgmr.msra.gmra.mxu1 %vm117_vm0, %v83_v13  ;;  %v3691_v21 = vld [vmem:[%s5500_s0 + $0x70] sm:$0xff]  ;;  %v3704_v24 = vld [vmem:[%s5500_s0 + $0x18] sm:$0xff]  ;;  %v3725_v28 = vld [vmem:[#allocation6 + $0x1e8] sm:$0xff] }
  0x17   :  { %612 = vmatpush.msra.mxu2 %v3652_v15  ;;  %635 = vmatpush.msra.mxu3 %v3675_v19  ;;  %v3697_v22 = vld [vmem:[#allocation6 + $0x1b0] sm:$0xff]  ;;  %v3715_v25 = vld [vmem:[%s5500_s0 + $0x78] sm:$0xff]  ;;  %v3731_v30 = vld [vmem:[#allocation6 + $0x1c0] sm:$0xff] }
  0x18   :  { %5615 = vst [vmem:[#allocation22_spill] sm:$0xff] %v3715_v25  ;;  %v3721_v26 = vld [vmem:[#allocation6 + $0x190] sm:$0xff]  ;;  %566 = vmatpush.msrb.mxu0 %v3723_v27  ;;  %v3729_v29 = vld [vmem:[#allocation6 + $0x1b8] sm:$0xff]  ;;  %v3733_v31 = vld [vmem:[#allocation6 + $0x1c8] sm:$0xff]  ;;  %589 = vmatpush.msrb.mxu1 %v3725_v28 }
  0x19   :  { %613 = vmatpush.msra.mxu2 %v3673_v18  ;;  %636 = vmatpush.msra.mxu3 %v3699_v23  ;;  %v3737_v32 = vld [vmem:[#allocation6 + $0x1a0] sm:$0xff]  ;;  %v3740_v33 = vld [vmem:[#allocation6 + $0x1a8] sm:$0xff]  ;;  %v3761_v37 = vld [vmem:[#allocation6 + $0x170] sm:$0xff] }
  0x1a   :  { %2821 = vmatmul.msk.f32.gmra.mxu2 %vm117_vm0, %v3602_v8  ;;  %2837 = vmatmul.msk.f32.gmra.mxu3 %vm117_vm0, %v3602_v8  ;;  %v3745_v34 = vld [vmem:[%s5500_s0 + $0x20] sm:$0xff]  ;;  %v3756_v36 = vld [vmem:[#allocation6 + $0x188] sm:$0xff]  ;;  %v3769_v40 = vld [vmem:[#allocation6 + $0x198] sm:$0xff] }
  0x1b   :  { %614 = vmatpush.msra.mxu2 %v3697_v22  ;;  %637 = vmatpush.msra.mxu3 %v3729_v29  ;;  %v3748_v35 = vld [vmem:[#allocation6 + $0x180] sm:$0xff]  ;;  %v3765_v39 = vld [vmem:[#allocation6 + $0x168] sm:$0xff]  ;;  %v3803_v48 = vld [vmem:[#allocation6 + $0x150] sm:$0xff] }
  0x1c   :  { %567 = vmatpush.msrb.mxu0 %v3731_v30  ;;  %590 = vmatpush.msrb.mxu1 %v3733_v31  ;;  %v3763_v38 = vld [vmem:[#allocation6 + $0x160] sm:$0xff]  ;;  %v3775_v42 = vld [vmem:[#allocation6 + $0x148] sm:$0xff]  ;;  %v3811_v51 = vld [vmem:[#allocation6 + $0x178] sm:$0xff] }
  0x1d   :  { %615 = vmatpush.msra.mxu2 %v3721_v26  ;;  %v3771_v41 = vld [vmem:[#allocation6 + $0x140] sm:$0xff]  ;;  %638 = vmatpush.msra.mxu3 %v3769_v40  ;;  %v3783_v44 = vld [vmem:[%s5500_s0 + $0x28] sm:$0xff]  ;;  %v3824_v54 = vld [vmem:[%s5500_s0 + $0x30] sm:$0xff] }
  0x1e   :  { %2814 = vmatmul.msk.f32.gmra.mxu0 %vm117_vm0, %v3657_v16  ;;  %2830 = vmatmul.msk.f32.gmra.mxu1 %vm117_vm0, %v3657_v16  ;;  %v3778_v43 = vld [vmem:[#allocation6 + $0x120] sm:$0xff]  ;;  %v3786_v45 = vld [vmem:[#allocation6 + $0x128] sm:$0xff]  ;;  %v3846_v59 = vld [vmem:[#allocation6 + $0x130] sm:$0xff] }
  0x1f   :  { %568 = vmatpush.msrb.mxu0 %v3737_v32  ;;  %591 = vmatpush.msrb.mxu1 %v3740_v33  ;;  %v3792_v46 = vld [vmem:[#allocation6 + $0x100] sm:$0xff]  ;;  %v3794_v47 = vld [vmem:[#allocation6 + $0x108] sm:$0xff]  ;;  %v3854_v62 = vld [vmem:[#allocation6 + $0x158] sm:$0xff] }
  0x20   :  { %616 = vmatpush.msra.mxu2 %v3761_v37  ;;  %v3805_v49 = vld [vmem:[#allocation6 + $0xe0] sm:$0xff]  ;;  %v3807_v50 = vld [vmem:[#allocation6 + $0xe8] sm:$0xff]  ;;  %639 = vmatpush.msra.mxu3 %v3811_v51  ;;  %v3885_v7 = vld [vmem:[#allocation6 + $0x110] sm:$0xff] }
  0x21   :  { %569 = vmatpush.msrb.mxu0 %v3748_v35  ;;  %592 = vmatpush.msrb.mxu1 %v3756_v36  ;;  %v3815_v52 = vld [vmem:[#allocation6 + $0xc0] sm:$0xff]  ;;  %v3817_v53 = vld [vmem:[#allocation6 + $0xc8] sm:$0xff]  ;;  %v3887_v9 = vld [vmem:[#allocation6 + $0x138] sm:$0xff] }
  0x22   :  { %2822 = vmatmul.msk.f32.gmra.mxu2 %vm117_vm0, %v3614_v10  ;;  %2838 = vmatmul.msk.f32.gmra.mxu3 %vm117_vm0, %v3614_v10  ;;  %v3826_v55 = vld [vmem:[#allocation6 + $0xa0] sm:$0xff]  ;;  %v3828_v56 = vld [vmem:[#allocation6 + $0xa8] sm:$0xff] }
  0x23   :  { %570 = vmatpush.msrb.mxu0 %v3763_v38  ;;  %593 = vmatpush.msrb.mxu1 %v3765_v39  ;;  %v3832_v57 = vld [vmem:[#allocation6 + $0x80] sm:$0xff]  ;;  %v3834_v58 = vld [vmem:[#allocation6 + $0x88] sm:$0xff] }
  0x24   :  { %617 = vmatpush.msra.mxu2 %v3803_v48  ;;  %v3848_v60 = vld [vmem:[#allocation6 + $0x60] sm:$0xff]  ;;  %v3850_v61 = vld [vmem:[#allocation6 + $0x68] sm:$0xff]  ;;  %640 = vmatpush.msra.mxu3 %v3854_v62 }
  0x25   :  { %571 = vmatpush.msrb.mxu0 %v3771_v41  ;;  %594 = vmatpush.msrb.mxu1 %v3775_v42  ;;  %v3858_v63 = vld [vmem:[#allocation6 + $0x40] sm:$0xff]  ;;  %v3860_v0 = vld [vmem:[#allocation6 + $0x48] sm:$0xff] }
  0x26   :  { %2815 = vmatmul.msk.f32.gmra.mxu0 %vm117_vm0, %v3680_v20  ;;  %2831 = vmatmul.msk.f32.gmra.mxu1 %vm117_vm0, %v3680_v20  ;;  %v3864_v1 = vld [vmem:[#allocation6 + $0x20] sm:$0xff]  ;;  %v3866_v2 = vld [vmem:[#allocation6 + $0x28] sm:$0xff] }
  0x27   :  { %572 = vmatpush.msrb.mxu0 %v3778_v43  ;;  %595 = vmatpush.msrb.mxu1 %v3786_v45  ;;  %v3870_v3 = vld [vmem:[#allocation6] sm:$0xff]  ;;  %v3872_v5 = vld [vmem:[#allocation6 + $0x8] sm:$0xff] }
  0x28   :  { %618 = vmatpush.msra.mxu2 %v3846_v59  ;;  %5616 = vst [vmem:[#allocation23_spill] sm:$0xff] %v3870_v3  ;;  %v3879_v6 = vld [vmem:[%s5502_s2] sm:$0xff]  ;;  %641 = vmatpush.msra.mxu3 %v3887_v9 }
  0x29   :  { %573 = vmatpush.msrb.mxu0 %v3792_v46  ;;  %596 = vmatpush.msrb.mxu1 %v3794_v47  ;;  %5617 = vst [vmem:[#allocation24_spill] sm:$0xff] %v3872_v5 }
  0x2a   :  { %2823 = vmatmul.msk.f32.gmra.mxu2 %vm117_vm0, %v3623_v11  ;;  %2839 = vmatmul.msk.f32.gmra.mxu3 %vm117_vm0, %v3623_v11  ;;  %5618 = vst [vmem:[#allocation25_spill] sm:$0xff] %v3879_v6 }
  0x2b   :  { %574 = vmatpush.msrb.mxu0 %v3805_v49  ;;  %597 = vmatpush.msrb.mxu1 %v3807_v50 }
  0x2c   :  { %619 = vmatpush.msra.mxu2 %v3885_v7 }
  0x2d   :  { %575 = vmatpush.msrb.mxu0 %v3815_v52  ;;  %598 = vmatpush.msrb.mxu1 %v3817_v53 }
  0x2e   :  { %2816 = vmatmul.msk.f32.gmra.mxu0 %vm117_vm0, %v3704_v24  ;;  %2832 = vmatmul.msk.f32.gmra.mxu1 %vm117_vm0, %v3704_v24 }
  0x2f   :  { %576 = vmatpush.msrb.mxu0 %v3826_v55  ;;  %599 = vmatpush.msrb.mxu1 %v3828_v56 }
  0x31   :  { %577 = vmatpush.msrb.mxu0 %v3832_v57  ;;  %600 = vmatpush.msrb.mxu1 %v3834_v58 }
  0x32   :  { %2824 = vmatmul.msk.f32.gmra.mxu2 %vm117_vm0, %v3632_v12  ;;  %2840 = vmatmul.msk.f32.gmra.mxu3 %vm117_vm0, %v3632_v12 }
  0x33   :  { %578 = vmatpush.msrb.mxu0 %v3848_v60  ;;  %601 = vmatpush.msrb.mxu1 %v3850_v61 }
  0x35   :  { %579 = vmatpush.msrb.mxu0 %v3858_v63  ;;  %602 = vmatpush.msrb.mxu1 %v3860_v0 }
  0x36   :  { %2817 = vmatmul.msk.f32.gmra.mxu0 %vm117_vm0, %v3745_v34  ;;  %2833 = vmatmul.msk.f32.gmra.mxu1 %vm117_vm0, %v3745_v34 }
  0x37   :  { %580 = vmatpush.msrb.mxu0 %v3864_v1  ;;  %603 = vmatpush.msrb.mxu1 %v3866_v2 }
  0x39   :  { %581 = vmatpush.msrb.mxu0 %v3870_v3  ;;  %604 = vmatpush.msrb.mxu1 %v3872_v5 }
  0x3a   :  { %2825 = vmatmul.msk.f32.gmra.mxu2 %vm117_vm0, %v3646_v14  ;;  %2841 = vmatmul.msk.f32.gmra.mxu3 %vm117_vm0, %v3646_v14 }
  0x3b   :  { %803 = vmatpush.msra.mxu0 %v3723_v27  ;;  %826 = vmatpush.msra.mxu1 %v3725_v28 }
  0x3d   :  { %804 = vmatpush.msra.mxu0 %v3731_v30  ;;  %827 = vmatpush.msra.mxu1 %v3733_v31 }
  0x3e   :  { %2818 = vmatmul.msk.f32.gmra.mxu0 %vm117_vm0, %v3783_v44  ;;  %2834 = vmatmul.msk.f32.gmra.mxu1 %vm117_vm0, %v3783_v44 }
  0x3f   :  { %805 = vmatpush.msra.mxu0 %v3737_v32  ;;  %828 = vmatpush.msra.mxu1 %v3740_v33 }
  0x41   :  { %806 = vmatpush.msra.mxu0 %v3748_v35  ;;  %829 = vmatpush.msra.mxu1 %v3756_v36 }
  0x42   :  { %2826 = vmatmul.msk.f32.gmra.mxu2 %vm117_vm0, %v3667_v17  ;;  %2842 = vmatmul.msk.f32.gmra.mxu3 %vm117_vm0, %v3667_v17 }
  0x43   :  { %807 = vmatpush.msra.mxu0 %v3763_v38  ;;  %830 = vmatpush.msra.mxu1 %v3765_v39 }
  0x45   :  { %808 = vmatpush.msra.mxu0 %v3771_v41  ;;  %831 = vmatpush.msra.mxu1 %v3775_v42 }
  0x46   :  { %2819 = vmatmul.msk.f32.gmra.mxu0 %vm117_vm0, %v3824_v54  ;;  %2835 = vmatmul.msk.f32.gmra.mxu1 %vm117_vm0, %v3824_v54 }
  0x47   :  { %809 = vmatpush.msra.mxu0 %v3778_v43  ;;  %832 = vmatpush.msra.mxu1 %v3786_v45 }
  0x49   :  { %810 = vmatpush.msra.mxu0 %v3792_v46  ;;  %833 = vmatpush.msra.mxu1 %v3794_v47 }
  0x4a   :  { %2827 = vmatmul.msk.f32.gmra.mxu2 %vm117_vm0, %v3691_v21  ;;  %2843 = vmatmul.msk.f32.gmra.mxu3 %vm117_vm0, %v3691_v21 }
  0x4b   :  { %811 = vmatpush.msra.mxu0 %v3805_v49  ;;  %834 = vmatpush.msra.mxu1 %v3807_v50 }
  0x4d   :  { %812 = vmatpush.msra.mxu0 %v3815_v52  ;;  %835 = vmatpush.msra.mxu1 %v3817_v53 }
  0x4e   :  { %582 = vmatmul.f32.vlgmr.msrb.gmra.mxu0 %v3879_v6  ;;  %605 = vmatmul.f32.vlgmr.msrb.gmra.mxu1 %v3879_v6  ;;  %v3960_v6 = vld [vmem:[#allocation6 + $0xb8] sm:$0xff] }
  0x4f   :  { %813 = vmatpush.msra.mxu0 %v3826_v55  ;;  %836 = vmatpush.msra.mxu1 %v3828_v56  ;;  %5621 = vst [vmem:[#allocation28_spill] sm:$0xff] %v3960_v6 }
  0x51   :  { %814 = vmatpush.msra.mxu0 %v3832_v57  ;;  %837 = vmatpush.msra.mxu1 %v3834_v58 }
  0x52   :  { %2828 = vmatmul.msk.f32.gmra.mxu2 %vm117_vm0, %v3715_v25  ;;  %2844 = vmatmul.msk.f32.gmra.mxu3 %vm117_vm0, %v3715_v25 }
  0x53   :  { %815 = vmatpush.msra.mxu0 %v3848_v60  ;;  %838 = vmatpush.msra.mxu1 %v3850_v61 }
  0x55   :  { %816 = vmatpush.msra.mxu0 %v3858_v63  ;;  %839 = vmatpush.msra.mxu1 %v3860_v0 }
  0x57   :  { %817 = vmatpush.msra.mxu0 %v3864_v1  ;;  %840 = vmatpush.msra.mxu1 %v3866_v2 }
  0x59   :  { %818 = vmatpush.msra.mxu0 %v3870_v3  ;;  %841 = vmatpush.msra.mxu1 %v3872_v5 }
  0x5a   :  { %2845 = vmatmul.msk.f32.vlgmr.msrb.gmra.mxu2 %vm117_vm0, %v83_v13  ;;  %2861 = vmatmul.msk.f32.vlgmr.msrb.gmra.mxu3 %vm117_vm0, %v83_v13  ;;  %v3902_v13 = vld [vmem:[%s5502_s2 + $0x8] sm:$0xff] }
  0x5b   :  { %5619 = vst [vmem:[#allocation26_spill] sm:$0xff] %v3902_v13  ;;  %585 = vmatmul.f32.gmra.mxu0 %v3902_v13  ;;  %608 = vmatmul.f32.gmra.mxu1 %v3902_v13  ;;  %v3944_v13 = vld [vmem:[#allocation6 + $0xd8] sm:$0xff] }
  0x5c   :  { %5620 = vst [vmem:[#allocation27_spill] sm:$0xff] %v3944_v13  ;;  %1041 = vmatpush.msrb.mxu0 %v3723_v27  ;;  %1064 = vmatpush.msrb.mxu1 %v3725_v28 }
  0x5e   :  { %1042 = vmatpush.msrb.mxu0 %v3731_v30  ;;  %1065 = vmatpush.msrb.mxu1 %v3733_v31  ;;  %v4022_v30 = vld [vmem:[#allocation6 + $0x58] sm:$0xff] }
  0x60   :  { %1043 = vmatpush.msrb.mxu0 %v3737_v32  ;;  %1066 = vmatpush.msrb.mxu1 %v3740_v33  ;;  %v4042_v33 = vld [vmem:[#allocation6 + $0x38] sm:$0xff] }
  0x62   :  { %2846 = vmatmul.msk.f32.gmra.mxu2 %vm117_vm0, %v3657_v16  ;;  %2862 = vmatmul.msk.f32.gmra.mxu3 %vm117_vm0, %v3657_v16  ;;  %v3908_v16 = vld [vmem:[#allocation6 + $0xf0] sm:$0xff] }
  0x63   :  { %620 = vmatpush.msra.mxu2 %v3908_v16  ;;  %1044 = vmatpush.msrb.mxu0 %v3748_v35 }
  0x64   :  { %1067 = vmatpush.msrb.mxu1 %v3756_v36 }
  0x65   :  { %1045 = vmatpush.msrb.mxu0 %v3763_v38  ;;  %v4053_v38 = vld [vmem:[#allocation6 + $0x18] sm:$0xff] }
  0x66   :  { %1068 = vmatpush.msrb.mxu1 %v3765_v39  ;;  %5633 = vst [vmem:[#allocation40_spill] sm:$0xff] %v4053_v38 }
  0x67   :  { %1046 = vmatpush.msrb.mxu0 %v3771_v41 }
  0x68   :  { %1069 = vmatpush.msrb.mxu1 %v3775_v42 }
  0x69   :  { %1047 = vmatpush.msrb.mxu0 %v3778_v43 }
  0x6a   :  { %2847 = vmatmul.msk.f32.gmra.mxu2 %vm117_vm0, %v3680_v20  ;;  %2863 = vmatmul.msk.f32.gmra.mxu3 %vm117_vm0, %v3680_v20  ;;  %v3910_v20 = vld [vmem:[#allocation6 + $0x118] sm:$0xff] }
  0x6b   :  { %642 = vmatpush.msra.mxu3 %v3910_v20  ;;  %1070 = vmatpush.msrb.mxu1 %v3786_v45  ;;  %v5641_v45 = vld [vmem:[#allocation28_spill] sm:$0xff] }
  0x6c   :  { %1048 = vmatpush.msrb.mxu0 %v3792_v46 }
  0x6d   :  { %1071 = vmatpush.msrb.mxu1 %v3794_v47 }
  0x6e   :  { %1049 = vmatpush.msrb.mxu0 %v3805_v49  ;;  %v5645_v49 = vld [vmem:[#allocation25_spill] sm:$0xff] }
  0x6f   :  { %1072 = vmatpush.msrb.mxu1 %v3807_v50 }
  0x70   :  { %1050 = vmatpush.msrb.mxu0 %v3815_v52 }
  0x71   :  { %1073 = vmatpush.msrb.mxu1 %v3817_v53 }
  0x72   :  { %2848 = vmatmul.msk.f32.gmra.mxu2 %vm117_vm0, %v3704_v24  ;;  %2864 = vmatmul.msk.f32.gmra.mxu3 %vm117_vm0, %v3704_v24  ;;  %v3926_v24 = vld [vmem:[#allocation6 + $0xd0] sm:$0xff] }
  0x73   :  { %621 = vmatpush.msra.mxu2 %v3926_v24  ;;  %1051 = vmatpush.msrb.mxu0 %v3826_v55 }
  0x74   :  { %1074 = vmatpush.msrb.mxu1 %v3828_v56 }
  0x75   :  { %1052 = vmatpush.msrb.mxu0 %v3832_v57 }
  0x76   :  { %1075 = vmatpush.msrb.mxu1 %v3834_v58 }
  0x77   :  { %1053 = vmatpush.msrb.mxu0 %v3848_v60 }
  0x78   :  { %1076 = vmatpush.msrb.mxu1 %v3850_v61 }
  0x79   :  { %1054 = vmatpush.msrb.mxu0 %v3858_v63 }
  0x7a   :  { %2849 = vmatmul.msk.f32.gmra.mxu2 %vm117_vm0, %v3745_v34  ;;  %2865 = vmatmul.msk.f32.gmra.mxu3 %vm117_vm0, %v3745_v34  ;;  %v3928_v34 = vld [vmem:[#allocation6 + $0xf8] sm:$0xff] }
  0x7b   :  { %643 = vmatpush.msra.mxu3 %v3928_v34  ;;  %1077 = vmatpush.msrb.mxu1 %v3860_v0 }
  0x7c   :  { %1055 = vmatpush.msrb.mxu0 %v3864_v1 }
  0x7d   :  { %644 = vmatpush.msra.mxu3 %v3944_v13  ;;  %1078 = vmatpush.msrb.mxu1 %v3866_v2 }
  0x7e   :  { %1056 = vmatpush.msrb.mxu0 %v3870_v3 }
  0x7f   :  { %645 = vmatpush.msra.mxu3 %v3960_v6  ;;  %v3980_v6 = vld [vmem:[#allocation6 + $0x98] sm:$0xff]  ;;  %1079 = vmatpush.msrb.mxu1 %v3872_v5 }
  0x81   :  { %646 = vmatpush.msra.mxu3 %v3980_v6 }
  0x82   :  { %2850 = vmatmul.msk.f32.gmra.mxu2 %vm117_vm0, %v3783_v44  ;;  %2866 = vmatmul.msk.f32.gmra.mxu3 %vm117_vm0, %v3783_v44  ;;  %v3942_v44 = vld [vmem:[#allocation6 + $0xb0] sm:$0xff] }
  0x83   :  { %622 = vmatpush.msra.mxu2 %v3942_v44 }
  0x8a   :  { %2851 = vmatmul.msk.f32.gmra.mxu2 %vm117_vm0, %v3824_v54  ;;  %2867 = vmatmul.msk.f32.gmra.mxu3 %vm117_vm0, %v3824_v54  ;;  %v3958_v54 = vld [vmem:[#allocation6 + $0x90] sm:$0xff] }
  0x8b   :  { %623 = vmatpush.msra.mxu2 %v3958_v54 }
  0x92   :  { %2852 = vmatmul.msk.f32.gmra.mxu2 %vm117_vm0, %v3584_v4  ;;  %2868 = vmatmul.msk.f32.gmra.mxu3 %vm117_vm0, %v3584_v4  ;;  %v3978_v4 = vld [vmem:[#allocation6 + $0x70] sm:$0xff] }
  0x93   :  { %624 = vmatpush.msra.mxu2 %v3978_v4 }
  0x95   :  { %v3966_v25 = vpop.f32.mrf.mxu2  ;;  %v3968_v13 = vpop.f32.mrf.mxu3 }
  0x96   :  { %5622 = vst [vmem:[#allocation29_spill] sm:$0xff] %v3966_v25 }
  0x97   :  { %5623 = vst [vmem:[#allocation30_spill] sm:$0xff] %v3968_v13 }
  0x9a   :  { %2853 = vmatmul.msk.f32.gmra.mxu2 %vm117_vm0, %v3602_v8  ;;  %2869 = vmatmul.msk.f32.gmra.mxu3 %vm117_vm0, %v3602_v8  ;;  %v4000_v8 = vld [vmem:[#allocation6 + $0x50] sm:$0xff] }
  0x9b   :  { %625 = vmatpush.msra.mxu2 %v4000_v8 }
  0x9d   :  { %v3986_v13 = vpop.f32.mrf.mxu2  ;;  %v3988_v25 = vpop.f32.mrf.mxu3 }
  0x9e   :  { %5624 = vst [vmem:[#allocation31_spill] sm:$0xff] %v3986_v13 }
  0x9f   :  { %5625 = vst [vmem:[#allocation32_spill] sm:$0xff] %v3988_v25  ;;  %v4002_v25 = vld [vmem:[#allocation6 + $0x78] sm:$0xff] }
  0xa0   :  { %647 = vmatpush.msra.mxu3 %v4002_v25 }
  0xa2   :  { %2854 = vmatmul.msk.f32.gmra.mxu2 %vm117_vm0, %v3614_v10  ;;  %2870 = vmatmul.msk.f32.gmra.mxu3 %vm117_vm0, %v3614_v10  ;;  %v4020_v10 = vld [vmem:[#allocation6 + $0x30] sm:$0xff] }
  0xa3   :  { %626 = vmatpush.msra.mxu2 %v4020_v10  ;;  %648 = vmatpush.msra.mxu3 %v4022_v30 }
  0xa5   :  { %v4008_v27 = vpop.f32.mrf.mxu2  ;;  %v4010_v28 = vpop.f32.mrf.mxu3  ;;  %649 = vmatpush.msra.mxu3 %v4042_v33 }
  0xa6   :  { %5626 = vst [vmem:[#allocation33_spill] sm:$0xff] %v4008_v27 }
  0xa7   :  { %5627 = vst [vmem:[#allocation34_spill] sm:$0xff] %v4010_v28  ;;  %650 = vmatpush.msra.mxu3 %v4053_v38 }
  0xa9   :  { %872 = vmatpush.msrb.mxu3 %v3675_v19 }
  0xaa   :  { %2855 = vmatmul.msk.f32.gmra.mxu2 %vm117_vm0, %v3623_v11  ;;  %2871 = vmatmul.msk.f32.gmra.mxu3 %vm117_vm0, %v3623_v11  ;;  %v4040_v11 = vld [vmem:[#allocation6 + $0x10] sm:$0xff] }
  0xab   :  { %5630 = vst [vmem:[#allocation37_spill] sm:$0xff] %v4040_v11  ;;  %627 = vmatpush.msra.mxu2 %v4040_v11  ;;  %873 = vmatpush.msrb.mxu3 %v3699_v23 }
  0xad   :  { %v4028_v31 = vpop.f32.mrf.mxu2  ;;  %v4030_v32 = vpop.f32.mrf.mxu3  ;;  %849 = vmatpush.msrb.mxu2 %v3652_v15  ;;  %874 = vmatpush.msrb.mxu3 %v3729_v29 }
  0xae   :  { %5628 = vst [vmem:[#allocation35_spill] sm:$0xff] %v4028_v31 }
  0xaf   :  { %5629 = vst [vmem:[#allocation36_spill] sm:$0xff] %v4030_v32  ;;  %850 = vmatpush.msrb.mxu2 %v3673_v18  ;;  %875 = vmatpush.msrb.mxu3 %v3769_v40 }
  0xb1   :  { %851 = vmatpush.msrb.mxu2 %v3697_v22  ;;  %876 = vmatpush.msrb.mxu3 %v3811_v51 }
  0xb2   :  { %2856 = vmatmul.msk.f32.gmra.mxu2 %vm117_vm0, %v3632_v12  ;;  %2872 = vmatmul.msk.f32.gmra.mxu3 %vm117_vm0, %v3632_v12 }
  0xb3   :  { %852 = vmatpush.msrb.mxu2 %v3721_v26  ;;  %877 = vmatpush.msrb.mxu3 %v3854_v62 }
  0xb5   :  { %v4048_v35 = vpop.f32.mrf.mxu2  ;;  %v4050_v36 = vpop.f32.mrf.mxu3  ;;  %853 = vmatpush.msrb.mxu2 %v3761_v37  ;;  %878 = vmatpush.msrb.mxu3 %v3887_v9 }
  0xb6   :  { %5631 = vst [vmem:[#allocation38_spill] sm:$0xff] %v4048_v35 }
  0xb7   :  { %5632 = vst [vmem:[#allocation39_spill] sm:$0xff] %v4050_v36  ;;  %854 = vmatpush.msrb.mxu2 %v3803_v48  ;;  %879 = vmatpush.msrb.mxu3 %v3910_v20 }
  0xb9   :  { %855 = vmatpush.msrb.mxu2 %v3846_v59  ;;  %880 = vmatpush.msrb.mxu3 %v3928_v34 }
  0xba   :  { %2857 = vmatmul.msk.f32.gmra.mxu2 %vm117_vm0, %v3646_v14  ;;  %2873 = vmatmul.msk.f32.gmra.mxu3 %vm117_vm0, %v3646_v14 }
  0xbb   :  { %856 = vmatpush.msrb.mxu2 %v3885_v7 }
  0xbd   :  { %v4071_v12 = vpop.f32.mrf.mxu2  ;;  %v4073_v39 = vpop.f32.mrf.mxu3  ;;  %857 = vmatpush.msrb.mxu2 %v3908_v16 }
  0xbe   :  { %5634 = vst [vmem:[#allocation41_spill] sm:$0xff] %v4071_v12 }
  0xbf   :  { %5635 = vst [vmem:[#allocation42_spill] sm:$0xff] %v4073_v39  ;;  %858 = vmatpush.msrb.mxu2 %v3926_v24 }
  0xc1   :  { %859 = vmatpush.msrb.mxu2 %v3942_v44 }
  0xc2   :  { %2858 = vmatmul.msk.f32.gmra.mxu2 %vm117_vm0, %v3667_v17  ;;  %2874 = vmatmul.msk.f32.gmra.mxu3 %vm117_vm0, %v3667_v17  ;;  %v5638_v17 = vld [vmem:[#allocation27_spill] sm:$0xff] }
  0xc3   :  { %881 = vmatpush.msrb.mxu3 %v5638_v17  ;;  %860 = vmatpush.msrb.mxu2 %v3958_v54 }
  0xc5   :  { %v4093_v14 = vpop.f32.mrf.mxu2  ;;  %v4095_v41 = vpop.f32.mrf.mxu3  ;;  %882 = vmatpush.msrb.mxu3 %v5641_v45  ;;  %861 = vmatpush.msrb.mxu2 %v3978_v4 }
  0xc6   :  { %5636 = vst [vmem:[#allocation43_spill] sm:$0xff] %v4093_v14 }
  0xc7   :  { %5637 = vst [vmem:[#allocation44_spill] sm:$0xff] %v4095_v41  ;;  %883 = vmatpush.msrb.mxu3 %v3980_v6  ;;  %862 = vmatpush.msrb.mxu2 %v4000_v8 }
  0xc9   :  { %884 = vmatpush.msrb.mxu3 %v4002_v25  ;;  %863 = vmatpush.msrb.mxu2 %v4020_v10 }
  0xca   :  { %2859 = vmatmul.msk.f32.gmra.mxu2 %vm117_vm0, %v3691_v21  ;;  %2875 = vmatmul.msk.f32.gmra.mxu3 %vm117_vm0, %v3691_v21  ;;  %v5642_v21 = vld [vmem:[#allocation22_spill] sm:$0xff] }
  0xcb   :  { %885 = vmatpush.msrb.mxu3 %v4022_v30  ;;  %864 = vmatpush.msrb.mxu2 %v4040_v11 }
  0xcd   :  { %v4111_v42 = vpop.f32.mrf.mxu2  ;;  %v4113_v43 = vpop.f32.mrf.mxu3  ;;  %886 = vmatpush.msrb.mxu3 %v4042_v33 }
  0xce   :  { %5639 = vst [vmem:[#allocation27_spill] sm:$0xff] %v4111_v42 }
  0xcf   :  { %5640 = vst [vmem:[#allocation45_spill] sm:$0xff] %v4113_v43  ;;  %887 = vmatpush.msrb.mxu3 %v4053_v38 }
  0xd2   :  { %2860 = vmatmul.msk.f32.gmra.mxu2 %vm117_vm0, %v5642_v21  ;;  %2876 = vmatmul.msk.f32.gmra.mxu3 %vm117_vm0, %v5642_v21 }
  0xd5   :  { %v4127_v46 = vpop.f32.mrf.mxu2  ;;  %v4129_v47 = vpop.f32.mrf.mxu3 }
  0xd6   :  { %5643 = vst [vmem:[#allocation28_spill] sm:$0xff] %v4127_v46 }
  0xd7   :  { %5644 = vst [vmem:[#allocation22_spill] sm:$0xff] %v4129_v47 }
  0xda   :  { %628 = vmatmul.f32.vlgmr.msra.gmra.mxu2 %v5645_v49  ;;  %651 = vmatmul.f32.vlgmr.msra.gmra.mxu3 %v5645_v49  ;;  %v5646_v49 = vld [vmem:[#allocation26_spill] sm:$0xff] }
  0xdb   :  { %1087 = vmatpush.msra.mxu2 %v3652_v15  ;;  %1110 = vmatpush.msra.mxu3 %v3675_v19 }
  0xdd   :  { %v4137_v50 = vpop.f32.mrf.mxu2  ;;  %v4139_v21 = vpop.f32.mrf.mxu3  ;;  %1088 = vmatpush.msra.mxu2 %v3673_v18  ;;  %1111 = vmatpush.msra.mxu3 %v3699_v23 }
  0xde   :  { %v183_v23 = vpop.f32.mrf.mxu0 }
  0xdf   :  { %1089 = vmatpush.msra.mxu2 %v3697_v22  ;;  %1112 = vmatpush.msra.mxu3 %v3729_v29 }
  0xe1   :  { %1090 = vmatpush.msra.mxu2 %v3721_v26  ;;  %1113 = vmatpush.msra.mxu3 %v3769_v40  ;;  %v248_v26 = vpop.f32.mrf.mxu1 }
  0xe2   :  { %631 = vmatmul.f32.gmra.mxu2 %v5646_v49  ;;  %654 = vmatmul.f32.gmra.mxu3 %v5646_v49 }
  0xe3   :  { %1091 = vmatpush.msra.mxu2 %v3761_v37  ;;  %1114 = vmatpush.msra.mxu3 %v3811_v51 }
  0xe5   :  { %v4151_v15 = vpop.f32.mrf.mxu2  ;;  %v4153_v18 = vpop.f32.mrf.mxu3  ;;  %1092 = vmatpush.msra.mxu2 %v3803_v48  ;;  %1115 = vmatpush.msra.mxu3 %v3854_v62 }
  0xe6   :  { %v186_v40 = vpop.f32.mrf.mxu0 }
  0xe7   :  { %1093 = vmatpush.msra.mxu2 %v3846_v59  ;;  %1116 = vmatpush.msra.mxu3 %v3887_v9 }
  0xe9   :  { %1094 = vmatpush.msra.mxu2 %v3885_v7  ;;  %1117 = vmatpush.msra.mxu3 %v3910_v20  ;;  %v251_v49 = vpop.f32.mrf.mxu1 }
  0xeb   :  { %1095 = vmatpush.msra.mxu2 %v3908_v16  ;;  %1118 = vmatpush.msra.mxu3 %v3928_v34 }
  0xed   :  { %v4163_v19 = vpop.f32.mrf.mxu2  ;;  %v4165_v22 = vpop.f32.mrf.mxu3  ;;  %1096 = vmatpush.msra.mxu2 %v3926_v24  ;;  %1119 = vmatpush.msra.mxu3 %v5638_v17 }
  0xee   :  { %5647 = vst [vmem:[#allocation25_spill] sm:$0xff] %v4163_v19  ;;  %v4189_v43 = vpop.f32.mrf.mxu0 }
  0xef   :  { %5648 = vst [vmem:[#allocation26_spill] sm:$0xff] %v4165_v22  ;;  %1097 = vmatpush.msra.mxu2 %v3942_v44  ;;  %1120 = vmatpush.msra.mxu3 %v5641_v45 }
  0xf0   :  { %5653 = vst [vmem:[#allocation50_spill] sm:$0xff] %v4189_v43 }
  0xf1   :  { %1098 = vmatpush.msra.mxu2 %v3958_v54  ;;  %1121 = vmatpush.msra.mxu3 %v3980_v6  ;;  %v4191_v42 = vpop.f32.mrf.mxu1 }
  0xf2   :  { %5654 = vst [vmem:[#allocation51_spill] sm:$0xff] %v4191_v42 }
  0xf3   :  { %1099 = vmatpush.msra.mxu2 %v3978_v4  ;;  %1122 = vmatpush.msra.mxu3 %v4002_v25 }
  0xf5   :  { %v4175_v29 = vpop.f32.mrf.mxu2  ;;  %v4177_v37 = vpop.f32.mrf.mxu3  ;;  %1100 = vmatpush.msra.mxu2 %v4000_v8  ;;  %1123 = vmatpush.msra.mxu3 %v4022_v30 }
  0xf6   :  { %5649 = vst [vmem:[#allocation46_spill] sm:$0xff] %v4175_v29  ;;  %v4197_v39 = vpop.f32.mrf.mxu0 }
  0xf7   :  { %5650 = vst [vmem:[#allocation47_spill] sm:$0xff] %v4177_v37  ;;  %1101 = vmatpush.msra.mxu2 %v4020_v10  ;;  %1124 = vmatpush.msra.mxu3 %v4042_v33 }
  0xf8   :  { %5657 = vst [vmem:[#allocation54_spill] sm:$0xff] %v4197_v39 }
  0xf9   :  { %1102 = vmatpush.msra.mxu2 %v4040_v11  ;;  %1125 = vmatpush.msra.mxu3 %v4053_v38  ;;  %v4203_v35 = vpop.f32.mrf.mxu1 }
  0xfa   :  { %5660 = vst [vmem:[#allocation57_spill] sm:$0xff] %v4203_v35 }
  0xfd   :  { %v4185_v47 = vpop.f32.mrf.mxu2  ;;  %v4187_v46 = vpop.f32.mrf.mxu3 }
  0xfe   :  { %5651 = vst [vmem:[#allocation48_spill] sm:$0xff] %v4185_v47  ;;  %v4209_v28 = vpop.f32.mrf.mxu0 }
  0xff   :  { %5652 = vst [vmem:[#allocation49_spill] sm:$0xff] %v4187_v46 }
 0x100   :  { %5663 = vst [vmem:[#allocation60_spill] sm:$0xff] %v4209_v28 }
 0x101   :  { %v4211_v27 = vpop.f32.mrf.mxu1 }
 0x102   :  { %5664 = vst [vmem:[#allocation61_spill] sm:$0xff] %v4211_v27 }
 0x105   :  { %v4193_v41 = vpop.f32.mrf.mxu2  ;;  %v4195_v14 = vpop.f32.mrf.mxu3 }
 0x106   :  { %5655 = vst [vmem:[#allocation52_spill] sm:$0xff] %v4193_v41 }
 0x107   :  { %5656 = vst [vmem:[#allocation53_spill] sm:$0xff] %v4195_v14  ;;  %v4217_v14 = vpop.f32.mrf.mxu0 }
 0x108   :  { %5667 = vst [vmem:[#allocation64_spill] sm:$0xff] %v4217_v14 }
 0x109   :  { %v4219_v46 = vpop.f32.mrf.mxu1 }
 0x10a   :  { %5668 = vst [vmem:[#allocation65_spill] sm:$0xff] %v4219_v46 }
 0x10d   :  { %v4199_v12 = vpop.f32.mrf.mxu2  ;;  %v4201_v36 = vpop.f32.mrf.mxu3 }
 0x10e   :  { %5658 = vst [vmem:[#allocation55_spill] sm:$0xff] %v4199_v12 }
 0x10f   :  { %5659 = vst [vmem:[#allocation56_spill] sm:$0xff] %v4201_v36  ;;  %v4225_v47 = vpop.f32.mrf.mxu0 }
 0x110   :  { %5671 = vst [vmem:[#allocation68_spill] sm:$0xff] %v4225_v47 }
 0x115   :  { %v4205_v32 = vpop.f32.mrf.mxu2  ;;  %v4207_v31 = vpop.f32.mrf.mxu3 }
 0x116   :  { %5661 = vst [vmem:[#allocation58_spill] sm:$0xff] %v4205_v32  ;;  %v4227_v32 = vpop.f32.mrf.mxu1 }
 0x117   :  { %5662 = vst [vmem:[#allocation59_spill] sm:$0xff] %v4207_v31  ;;  %v583_v46 = vpop.f32.mrf.mxu0 }
 0x118   :  { %5672 = vst [vmem:[#allocation69_spill] sm:$0xff] %v4227_v32 }
 0x11d   :  { %v4213_v13 = vpop.f32.mrf.mxu2  ;;  %v4215_v41 = vpop.f32.mrf.mxu3 }
 0x11e   :  { %5665 = vst [vmem:[#allocation62_spill] sm:$0xff] %v4213_v13 }
 0x11f   :  { %5666 = vst [vmem:[#allocation63_spill] sm:$0xff] %v4215_v41  ;;  %v107_v41 = vld [vmem:[%s5506_s6] sm:$0xf]  ;;  %v586_v19 = vpop.f32.mrf.mxu0  ;;  %s2772_s6 = sshll.u32 %s5511_s11, 4  ;;  %s2773_s6 = int_to_ptr.hbm [resolvable:$true] %s2772_s6 }
 0x120   :  { %v4236_v13 = vperm.slane %v107_v41, 0  ;;  %v4238_v14 = vperm.slane %v107_v41, 1 }
 0x122   :  { %5675 = vst [vmem:[#allocation72_spill] sm:$0xff] %v4236_v13  ;;  %v187_v39 = vadd.f32 %v186_v40, %v4236_v13 }
 0x123   :  { %5676 = vst [vmem:[#allocation73_spill] sm:$0xff] %v4238_v14 }
 0x125   :  { %v4221_v12 = vpop.f32.mrf.mxu2  ;;  %v4223_v36 = vpop.f32.mrf.mxu3 }
 0x126   :  { %5669 = vst [vmem:[#allocation66_spill] sm:$0xff] %v4221_v12  ;;  %v184_v12 = vadd.f32 %v183_v23, %v4236_v13  ;;  %v252_v23 = vadd.f32 %v251_v49, %v4238_v14  ;;  %v79_v13 = vld [vmem:[%s5503_s3] sm:$0xff] }
 0x127   :  { %5670 = vst [vmem:[#allocation67_spill] sm:$0xff] %v4223_v36  ;;  %v249_v36 = vadd.f32 %v248_v26, %v4238_v14 }
 0x128   :  { %v658_v27 = vadd.f32 %v583_v46, %v184_v12 }
 0x12a   :  { %v2877_v37 = vmul.f32 -1.442695, %v658_v27 }
 0x12c   :  { %2942 = vpow2.f32 %v2877_v37 }
 0x12d   :  { %v4229_v31 = vpop.f32.mrf.mxu2  ;;  %v4231_v28 = vpop.f32.mrf.mxu3 }
 0x12e   :  { %5673 = vst [vmem:[#allocation70_spill] sm:$0xff] %v4229_v31  ;;  %v606_v31 = vpop.f32.mrf.mxu1 }
 0x12f   :  { %5674 = vst [vmem:[#allocation71_spill] sm:$0xff] %v4231_v28  ;;  %v659_v28 = vadd.f32 %v606_v31, %v249_v36 }
 0x131   :  { %v2878_v22 = vmul.f32 -1.442695, %v659_v28 }
 0x132   :  { %v2943_v27 = vpop.eup %2942 }
 0x133   :  { %2944 = vpow2.f32 %v2878_v22  ;;  %v684_v46 = vadd.f32 1.0, %v2943_v27 }
 0x135   :  { %v4242_v47 = vpop.f32.mrf.mxu2  ;;  %v4244_v32 = vpop.f32.mrf.mxu3  ;;  %vm695_vm1 = vweird.f32 %v684_v46 }
 0x136   :  { %5677 = vst [vmem:[#allocation74_spill] sm:$0xff] %v4242_v47  ;;  %v609_v26 = vpop.f32.mrf.mxu1  ;;  %v662_v47 = vadd.f32 %v586_v19, %v187_v39 }
 0x137   :  { %5678 = vst [vmem:[#allocation75_spill] sm:$0xff] %v4244_v32  ;;  %v663_v42 = vadd.f32 %v609_v26, %v252_v23 }
 0x138   :  { %v2880_v28 = vmul.f32 -1.442695, %v662_v47 }
 0x139   :  { %v2945_v31 = vpop.eup %2944  ;;  %v2881_v36 = vmul.f32 -1.442695, %v663_v42 }
 0x13a   :  { %2946 = vpow2.f32 %v2880_v28 }
 0x13b   :  { %2948 = vpow2.f32 %v2881_v36  ;;  %v4282_v36 = vperm.slane %v107_v41, 3 }
 0x13c   :  { %2950 = vrcp.f32 %v684_v46 }
 0x13d   :  { %v4246_v29 = vpop.f32.mrf.mxu2  ;;  %v4248_v35 = vpop.f32.mrf.mxu3  ;;  %5688 = vst [vmem:[#allocation85_spill] sm:$0xff] %v4282_v36  ;;  %v382_v5 = vadd.f32 %v4153_v18, %v4282_v36 }
 0x13e   :  { %5679 = vst [vmem:[#allocation76_spill] sm:$0xff] %v4246_v29 }
 0x13f   :  { %5680 = vst [vmem:[#allocation77_spill] sm:$0xff] %v4248_v35  ;;  %v4256_v35 = vadd.f32 1.0, %v2945_v31  ;;  %v4279_v31 = vperm.slane %v107_v41, 2 }
 0x140   :  { %v2947_v39 = vpop.eup %2946 }
 0x141   :  { %2952 = vrcp.f32 %v4256_v35  ;;  %v2949_v19 = vpop.eup %2948  ;;  %v4265_v49 = vadd.f32 1.0, %v2947_v39  ;;  %5687 = vst [vmem:[#allocation84_spill] sm:$0xff] %v4279_v31  ;;  %vm710_vm3 = vweird.f32 %v4256_v35 }
 0x142   :  { %v4263_v22 = vpop.eup %2950  ;;  %v4269_v42 = vadd.f32 1.0, %v2949_v19 }
 0x143   :  { %v691_v27 = vmul.f32 %v4263_v22, %v684_v46  ;;  %2954 = vrcp.f32 %v4265_v49  ;;  %vm696_vm2 = vweird.f32 %v4263_v22  ;;  %vm740_vm10 = vweird.f32 %v4265_v49 }
 0x144   :  { %2956 = vrcp.f32 %v4269_v42  ;;  %vm4303_vm5 = vmor %vm695_vm1, %vm696_vm2  ;;  %vm755_vm9 = vweird.f32 %v4269_v42 }
 0x145   :  { %v4252_v32 = vpop.f32.mrf.mxu2  ;;  %v4254_v12 = vpop.f32.mrf.mxu3  ;;  %v692_v39 = vsub.f32 1.0, %v691_v27 }
 0x146   :  { %5681 = vst [vmem:[#allocation78_spill] sm:$0xff] %v4252_v32  ;;  %v379_v32 = vadd.f32 %v4139_v21, %v4282_v36  ;;  %v701_v21 = vand.u32 2147483648, %v684_v46 }
 0x147   :  { %5682 = vst [vmem:[#allocation79_spill] sm:$0xff] %v4254_v12  ;;  %v4267_v47 = vpop.eup %2952  ;;  %v693_v41 = vmul.f32 %v4263_v22, %v692_v39  ;;  %v761_v39 = vand.u32 2147483648, %v4269_v42 }
 0x148   :  { %v706_v28 = vmul.f32 %v4267_v47, %v4256_v35  ;;  %vm711_vm4 = vweird.f32 %v4267_v47 }
 0x149   :  { %vm4310_vm6 = vmor %vm710_vm3, %vm711_vm4 }
 0x14a   :  { %v707_v19 = vsub.f32 1.0, %v706_v28 }
 0x14c   :  { %v708_v14 = vmul.f32 %v4267_v47, %v707_v19 }
 0x14d   :  { %v4258_v40 = vpop.f32.mrf.mxu2  ;;  %v4260_v37 = vpop.f32.mrf.mxu3 }
 0x14e   :  { %5683 = vst [vmem:[#allocation80_spill] sm:$0xff] %v4258_v40 }
 0x14f   :  { %5684 = vst [vmem:[#allocation81_spill] sm:$0xff] %v4260_v37  ;;  %v4286_v37 = vpop.eup %2954 }
 0x150   :  { %v4288_v12 = vpop.eup %2956  ;;  %v736_v27 = vmul.f32 %v4286_v37, %v4265_v49  ;;  %vm741_vm11 = vweird.f32 %v4286_v37 }
 0x151   :  { %v751_v43 = vmul.f32 %v4288_v12, %v4269_v42  ;;  %vm756_vm12 = vweird.f32 %v4288_v12  ;;  %vm4342_vm13 = vmor %vm740_vm10, %vm741_vm11 }
 0x152   :  { %v737_v19 = vsub.f32 1.0, %v736_v27  ;;  %vm4350_vm14 = vmor %vm755_vm9, %vm756_vm12 }
 0x153   :  { %v752_v38 = vsub.f32 1.0, %v751_v43 }
 0x154   :  { %v738_v18 = vmul.f32 %v4286_v37, %v737_v19 }
 0x155   :  { %v4271_v23 = vpop.f32.mrf.mxu2  ;;  %v4273_v26 = vpop.f32.mrf.mxu3 }
 0x156   :  { %5685 = vst [vmem:[#allocation82_spill] sm:$0xff] %v4271_v23  ;;  %v314_v23 = vadd.f32 %v4137_v50, %v4279_v31 }
 0x157   :  { %5686 = vst [vmem:[#allocation83_spill] sm:$0xff] %v4273_v26 }
 0x15d   :  { %v629_v26 = vpop.f32.mrf.mxu2  ;;  %v652_v40 = vpop.f32.mrf.mxu3 }
 0x15e   :  { %v660_v29 = vadd.f32 %v629_v26, %v314_v23  ;;  %v661_v50 = vadd.f32 %v652_v40, %v379_v32  ;;  %v716_v23 = vand.u32 2147483648, %v4256_v35  ;;  %v694_v26 = vadd.f32 %v4263_v22, %v693_v41 }
 0x15f   :  { %v699_v32 = vand.u32 2147483647, %v684_v46  ;;  %v317_v40 = vadd.f32 %v4151_v15, %v4279_v31  ;;  %v702_v46 = vor.u32 1.1754944e-38, %v701_v21  ;;  %v753_v21 = vmul.f32 %v4288_v12, %v752_v38 }
 0x160   :  { %v2879_v28 = vmul.f32 -1.442695, %v660_v29  ;;  %v709_v29 = vadd.f32 %v4267_v47, %v708_v14  ;;  %v698_v14 = vsel %vm4303_vm5, %v4263_v22, %v694_v26  ;;  %v717_v43 = vor.u32 1.1754944e-38, %v716_v23 }
 0x161   :  { %vm4320_vm7 = vcmp.eq.f32.partialorder %v699_v32, 8.507059e+37  ;;  %v744_v38 = vand.u32 2147483647, %v4265_v49 }
 0x162   :  { %2958 = vpow2.f32 %v2879_v28  ;;  %v714_v28 = vand.u32 2147483647, %v4256_v35  ;;  %v713_v35 = vsel %vm4310_vm6, %v4267_v47, %v709_v29  ;;  %v746_v47 = vand.u32 2147483648, %v4265_v49 }
 0x163   :  { %2960 = vtanh.f32 %v661_v50  ;;  %v754_v29 = vadd.f32 %v4288_v12, %v753_v21  ;;  %vm745_vm15 = vcmp.eq.f32.partialorder %v744_v38, 8.507059e+37 }
 0x164   :  { %vm715_vm8 = vcmp.eq.f32.partialorder %v714_v28, 8.507059e+37 }
 0x165   :  { %v632_v41 = vpop.f32.mrf.mxu2  ;;  %v655_v11 = vpop.f32.mrf.mxu3 }
 0x166   :  { %v664_v3 = vadd.f32 %v632_v41, %v317_v40  ;;  %v665_v31 = vadd.f32 %v655_v11, %v382_v5  ;;  %v718_v5 = vsel %vm715_vm8, %v717_v43, %v713_v35  ;;  %v739_v11 = vadd.f32 %v4286_v37, %v738_v18 }
 0x167   :  { %v759_v40 = vand.u32 2147483647, %v4269_v42  ;;  %v782_v28 = vmul.f32 %v718_v5, %v79_v13  ;;  %v758_v42 = vsel %vm4350_vm14, %v4288_v12, %v754_v29 }
 0x168   :  { %v2959_v27 = vpop.eup %2958  ;;  %v2882_v50 = vmul.f32 -1.442695, %v664_v3  ;;  %v703_v3 = vsel %vm4320_vm7, %v702_v46, %v698_v14  ;;  %v743_v49 = vsel %vm4342_vm13, %v4286_v37, %v739_v11  ;;  %v762_v46 = vor.u32 1.1754944e-38, %v761_v39  ;;  %v80_v37 = vld [vmem:[%s5503_s3 + $0x8] sm:$0xff] }
 0x169   :  { %v686_v22 = vadd.f32 1.0, %v2959_v27  ;;  %v2961_v26 = vpop.eup %2960  ;;  %vm760_vm0 = vcmp.eq.f32.partialorder %v759_v40, 8.507059e+37 }
 0x16a   :  { %2962 = vpow2.f32 %v2882_v50  ;;  %v784_v23 = vmul.f32 %v2961_v26, %v703_v3  ;;  %v763_v21 = vsel %vm760_vm0, %v762_v46, %v758_v42  ;;  %v4375_v46 = vld [vmem:[#allocation6 + $0x1e0] sm:$0xff] }
 0x16b   :  { %2964 = vrcp.f32 %v686_v22  ;;  %v731_v26 = vand.u32 2147483648, %v686_v22  ;;  %v729_v5 = vand.u32 2147483647, %v686_v22  ;;  %v783_v13 = vmul.f32 %v763_v21, %v80_v37  ;;  %v4390_v37 = vld [vmem:[#allocation6 + $0x1c8] sm:$0xff] }
 0x16c   :  { %2966 = vtanh.f32 %v665_v31  ;;  %v747_v31 = vor.u32 1.1754944e-38, %v746_v47  ;;  %v4357_v15 = vadd.f32 %v784_v23, %v782_v28  ;;  %vm725_vm2 = vweird.f32 %v686_v22 }
 0x16d   :  { %v732_v38 = vor.u32 1.1754944e-38, %v731_v26  ;;  %vm730_vm4 = vcmp.eq.f32.partialorder %v729_v5, 8.507059e+37  ;;  %v4393_v26 = vld [vmem:[#allocation6 + $0x1d0] sm:$0xff]  ;;  %v4401_v5 = vld [vmem:[#allocation6 + $0x1a0] sm:$0xff] }
 0x16e   :  { %v748_v18 = vsel %vm745_vm15, %v747_v31, %v743_v49 }
 0x170   :  { %v2963_v41 = vpop.eup %2962 }
 0x171   :  { %v2965_v14 = vpop.eup %2964  ;;  %v689_v35 = vadd.f32 1.0, %v2963_v41 }
 0x172   :  { %v2967_v43 = vpop.eup %2966  ;;  %v721_v27 = vmul.f32 %v2965_v14, %v686_v22  ;;  %vm726_vm1 = vweird.f32 %v2965_v14 }
 0x173   :  { %2968 = vrcp.f32 %v689_v35  ;;  %v785_v39 = vmul.f32 %v2967_v43, %v748_v18  ;;  %vm727_vm3 = vmor %vm725_vm2, %vm726_vm1  ;;  %v776_v41 = vand.u32 2147483648, %v689_v35  ;;  %v774_v31 = vand.u32 2147483647, %v689_v35  ;;  %v4381_v43 = vld [vmem:[#allocation6 + $0x1f0] sm:$0xff] }
 0x174   :  { %v722_v50 = vsub.f32 1.0, %v721_v27  ;;  %2970 = vtanh.f32 %v4357_v15  ;;  %vm770_vm6 = vweird.f32 %v689_v35  ;;  %v4384_v27 = vld [vmem:[#allocation6 + $0x1f8] sm:$0xff] }
 0x175   :  { %v4366_v47 = vadd.f32 %v785_v39, %v783_v13  ;;  %v777_v42 = vor.u32 1.1754944e-38, %v776_v41  ;;  %vm775_vm8 = vcmp.eq.f32.partialorder %v774_v31, 8.507059e+37  ;;  %v4396_v39 = vld [vmem:[#allocation6 + $0x1d8] sm:$0xff]  ;;  %v4404_v13 = vld [vmem:[#allocation6 + $0x1a8] sm:$0xff]  ;;  %v4435_v41 = vld [vmem:[#allocation6 + $0x170] sm:$0xff] }
 0x176   :  { %v723_v3 = vmul.f32 %v2965_v14, %v722_v50  ;;  %v4442_v31 = vld [vmem:[#allocation6 + $0x148] sm:$0xff] }
 0x177   :  { %2972 = vtanh.f32 %v4366_v47 }
 0x178   :  { %v724_v12 = vadd.f32 %v2965_v14, %v723_v3 }
 0x179   :  { %v2969_v11 = vpop.eup %2968 }
 0x17a   :  { %v728_v23 = vsel %vm727_vm3, %v2965_v14, %v724_v12  ;;  %v766_v32 = vmul.f32 %v2969_v11, %v689_v35  ;;  %v2971_v29 = vpop.eup %2970  ;;  %vm771_vm5 = vweird.f32 %v2969_v11  ;;  %v4378_v14 = vld [vmem:[#allocation6 + $0x1e8] sm:$0xff]  ;;  %v4387_v35 = vld [vmem:[#allocation6 + $0x1c0] sm:$0xff]  ;;  %v4407_v12 = vld [vmem:[#allocation6 + $0x1b0] sm:$0xff] }
 0x17b   :  { %v733_v40 = vsel %vm730_vm4, %v732_v38, %v728_v23  ;;  %vm772_vm7 = vmor %vm770_vm6, %vm771_vm5  ;;  %v4417_v38 = vld [vmem:[#allocation6 + $0x180] sm:$0xff]  ;;  %v4420_v23 = vld [vmem:[#allocation6 + $0x188] sm:$0xff] }
 0x17c   :  { %v767_v19 = vsub.f32 1.0, %v766_v32  ;;  %v4368_v28 = vmul.f32 %v2971_v29, %v733_v40  ;;  %v4423_v32 = vld [vmem:[#allocation6 + $0x190] sm:$0xff]  ;;  %v4426_v29 = vld [vmem:[#allocation6 + $0x198] sm:$0xff]  ;;  %v4429_v40 = vld [vmem:[#allocation6 + $0x160] sm:$0xff] }
 0x17d   :  { %v2973_v18 = vpop.eup %2972 }
 0x17e   :  { %5699 = vst [vmem:[#allocation86_spill] sm:$0xff] %v4368_v28  ;;  %v768_v49 = vmul.f32 %v2969_v11, %v767_v19  ;;  %819 = vmatmul.f32.vlgmr.msra.gmra.mxu0 %v4368_v28  ;;  %842 = vmatmul.f32.vlgmr.msra.gmra.mxu1 %v4368_v28  ;;  %v4432_v19 = vld [vmem:[#allocation6 + $0x168] sm:$0xff] }
 0x17f   :  { %865 = vmatmul.f32.vlgmr.msrb.gmra.mxu2 %v4368_v28  ;;  %888 = vmatmul.f32.vlgmr.msrb.gmra.mxu3 %v4368_v28  ;;  %v4702_v28 = vld [vmem:[#allocation6 + $0x28] sm:$0xff] }
 0x180   :  { %v769_v22 = vadd.f32 %v2969_v11, %v768_v49  ;;  %1279 = vmatpush.msra.mxu0 %v4375_v46  ;;  %1302 = vmatpush.msra.mxu1 %v4378_v14  ;;  %v4439_v49 = vld [vmem:[#allocation6 + $0x140] sm:$0xff]  ;;  %5745 = vst [vmem:[#allocation103_spill] sm:$0xff] %v4702_v28 }
 0x181   :  { %1325 = vmatpush.msrb.mxu2 %v4381_v43  ;;  %1348 = vmatpush.msrb.mxu3 %v4384_v27 }
 0x182   :  { %v773_v50 = vsel %vm772_vm7, %v2969_v11, %v769_v22  ;;  %1280 = vmatpush.msra.mxu0 %v4387_v35  ;;  %1303 = vmatpush.msra.mxu1 %v4390_v37  ;;  %v4410_v11 = vld [vmem:[#allocation6 + $0x1b8] sm:$0xff]  ;;  %v4447_v22 = vld [vmem:[#allocation6 + $0x120] sm:$0xff] }
 0x183   :  { %v778_v21 = vsel %vm775_vm8, %v777_v42, %v773_v50  ;;  %1326 = vmatpush.msrb.mxu2 %v4393_v26  ;;  %1349 = vmatpush.msrb.mxu3 %v4396_v39  ;;  %v4450_v42 = vld [vmem:[#allocation6 + $0x128] sm:$0xff] }
 0x184   :  { %v4399_v3 = vmul.f32 %v2973_v18, %v778_v21  ;;  %1281 = vmatpush.msra.mxu0 %v4401_v5  ;;  %1304 = vmatpush.msra.mxu1 %v4404_v13  ;;  %v4458_v50 = vld [vmem:[#allocation6 + $0x108] sm:$0xff] }
 0x185   :  { %1327 = vmatpush.msrb.mxu2 %v4407_v12  ;;  %1350 = vmatpush.msrb.mxu3 %v4410_v11 }
 0x186   :  { %5700 = vst [vmem:[#allocation87_spill] sm:$0xff] %v4399_v3  ;;  %822 = vmatmul.f32.gmra.mxu0 %v4399_v3  ;;  %845 = vmatmul.f32.gmra.mxu1 %v4399_v3 }
 0x187   :  { %868 = vmatmul.f32.gmra.mxu2 %v4399_v3  ;;  %891 = vmatmul.f32.gmra.mxu3 %v4399_v3 }
 0x188   :  { %1282 = vmatpush.msra.mxu0 %v4417_v38  ;;  %1305 = vmatpush.msra.mxu1 %v4420_v23 }
 0x189   :  { %1328 = vmatpush.msrb.mxu2 %v4423_v32  ;;  %1351 = vmatpush.msrb.mxu3 %v4426_v29 }
 0x18a   :  { %1283 = vmatpush.msra.mxu0 %v4429_v40  ;;  %1306 = vmatpush.msra.mxu1 %v4432_v19 }
 0x18b   :  { %1329 = vmatpush.msrb.mxu2 %v4435_v41  ;;  %1352 = vmatpush.msrb.mxu3 %v3811_v51  ;;  %v4455_v51 = vld [vmem:[#allocation6 + $0x100] sm:$0xff] }
 0x18c   :  { %1284 = vmatpush.msra.mxu0 %v4439_v49  ;;  %1307 = vmatpush.msra.mxu1 %v4442_v31 }
 0x18d   :  { %1330 = vmatpush.msrb.mxu2 %v3803_v48  ;;  %1353 = vmatpush.msrb.mxu3 %v3854_v62  ;;  %v4463_v48 = vld [vmem:[#allocation6 + $0xe0] sm:$0xff]  ;;  %v4466_v62 = vld [vmem:[#allocation6 + $0xe8] sm:$0xff] }
 0x18e   :  { %1285 = vmatpush.msra.mxu0 %v4447_v22  ;;  %1308 = vmatpush.msra.mxu1 %v4450_v42  ;;  %5701 = vst [vmem:[#allocation88_spill] sm:$0xff] %v4463_v48 }
 0x18f   :  { %1331 = vmatpush.msrb.mxu2 %v3846_v59  ;;  %1354 = vmatpush.msrb.mxu3 %v3887_v9  ;;  %5702 = vst [vmem:[#allocation89_spill] sm:$0xff] %v4466_v62  ;;  %v5709_v59 = vld [vmem:[#allocation73_spill] sm:$0xff]  ;;  %v5711_v9 = vld [vmem:[#allocation84_spill] sm:$0xff] }
 0x190   :  { %1286 = vmatpush.msra.mxu0 %v4455_v51  ;;  %1309 = vmatpush.msra.mxu1 %v4458_v50 }
 0x191   :  { %1332 = vmatpush.msrb.mxu2 %v3885_v7  ;;  %1355 = vmatpush.msrb.mxu3 %v3910_v20 }
 0x192   :  { %1287 = vmatpush.msra.mxu0 %v4463_v48  ;;  %1310 = vmatpush.msra.mxu1 %v4466_v62 }
 0x193   :  { %1333 = vmatpush.msrb.mxu2 %v3908_v16  ;;  %1356 = vmatpush.msrb.mxu3 %v3928_v34  ;;  %v5712_v16 = vld [vmem:[#allocation25_spill] sm:$0xff] }
 0x194   :  { %1288 = vmatpush.msra.mxu0 %v3815_v52  ;;  %1311 = vmatpush.msra.mxu1 %v3817_v53  ;;  %v5703_v52 = vld [vmem:[#allocation23_spill] sm:$0xff]  ;;  %v5704_v53 = vld [vmem:[#allocation24_spill] sm:$0xff]  ;;  %v320_v20 = vadd.f32 %v5712_v16, %v5711_v9 }
 0x195   :  { %1334 = vmatpush.msrb.mxu2 %v3926_v24  ;;  %1357 = vmatpush.msrb.mxu3 %v5638_v17  ;;  %v5713_v24 = vld [vmem:[#allocation54_spill] sm:$0xff] }
 0x196   :  { %1289 = vmatpush.msra.mxu0 %v3826_v55  ;;  %1312 = vmatpush.msra.mxu1 %v3828_v56  ;;  %v5706_v55 = vld [vmem:[#allocation40_spill] sm:$0xff] }
 0x197   :  { %1335 = vmatpush.msrb.mxu2 %v3942_v44  ;;  %1358 = vmatpush.msrb.mxu3 %v5641_v45  ;;  %v5707_v56 = vld [vmem:[#allocation72_spill] sm:$0xff]  ;;  %v5714_v44 = vld [vmem:[#allocation57_spill] sm:$0xff] }
 0x198   :  { %1290 = vmatpush.msra.mxu0 %v3832_v57  ;;  %1313 = vmatpush.msra.mxu1 %v3834_v58  ;;  %v5708_v57 = vld [vmem:[#allocation50_spill] sm:$0xff]  ;;  %v193_v34 = vadd.f32 %v5713_v24, %v5707_v56 }
 0x199   :  { %1336 = vmatpush.msrb.mxu2 %v3958_v54  ;;  %1359 = vmatpush.msrb.mxu3 %v3980_v6  ;;  %v190_v58 = vadd.f32 %v5708_v57, %v5707_v56  ;;  %v258_v54 = vadd.f32 %v5714_v44, %v5709_v59  ;;  %v5715_v57 = vld [vmem:[#allocation46_spill] sm:$0xff] }
 0x19a   :  { %1291 = vmatpush.msra.mxu0 %v3848_v60  ;;  %1314 = vmatpush.msra.mxu1 %v3850_v61  ;;  %v5710_v60 = vld [vmem:[#allocation51_spill] sm:$0xff] }
 0x19b   :  { %1337 = vmatpush.msrb.mxu2 %v3978_v4  ;;  %1360 = vmatpush.msrb.mxu3 %v4002_v25  ;;  %v5705_v25 = vld [vmem:[#allocation37_spill] sm:$0xff]  ;;  %v255_v61 = vadd.f32 %v5710_v60, %v5709_v59 }
 0x19c   :  { %1292 = vmatpush.msra.mxu0 %v3858_v63  ;;  %1315 = vmatpush.msra.mxu1 %v3860_v0 }
 0x19d   :  { %1338 = vmatpush.msrb.mxu2 %v4000_v8  ;;  %1361 = vmatpush.msrb.mxu3 %v4022_v30 }
 0x19e   :  { %1293 = vmatpush.msra.mxu0 %v3864_v1  ;;  %1316 = vmatpush.msra.mxu1 %v3866_v2 }
 0x19f   :  { %1339 = vmatpush.msrb.mxu2 %v4020_v10  ;;  %1362 = vmatpush.msrb.mxu3 %v4042_v33 }
 0x1a0   :  { %1294 = vmatpush.msra.mxu0 %v5703_v52  ;;  %1317 = vmatpush.msra.mxu1 %v5704_v53 }
 0x1a1   :  { %1340 = vmatpush.msrb.mxu2 %v5705_v25  ;;  %1363 = vmatpush.msrb.mxu3 %v5706_v55 }
 0x1fb   :  { %v820_v63 = vpop.f32.mrf.mxu0  ;;  %v843_v0 = vpop.f32.mrf.mxu1 }
 0x1fc   :  { %v895_v1 = vadd.f32 %v820_v63, %v190_v58  ;;  %v896_v2 = vadd.f32 %v843_v0, %v255_v61  ;;  %v323_v58 = vadd.f32 %v5715_v57, %v5711_v9  ;;  %v5716_v63 = vld [vmem:[#allocation26_spill] sm:$0xff] }
 0x1fd   :  { %v385_v0 = vadd.f32 %v5716_v63, %v4282_v36 }
 0x1fe   :  { %v2883_v6 = vmul.f32 -1.442695, %v895_v1  ;;  %v2884_v7 = vmul.f32 -1.442695, %v896_v2 }
 0x200   :  { %2974 = vpow2.f32 %v2883_v6 }
 0x201   :  { %2976 = vpow2.f32 %v2884_v7 }
 0x202   :  { %v866_v4 = vpop.f32.mrf.mxu2  ;;  %v889_v60 = vpop.f32.mrf.mxu3 }
 0x203   :  { %v897_v8 = vadd.f32 %v866_v4, %v320_v20  ;;  %v823_v10 = vpop.f32.mrf.mxu0  ;;  %v846_v30 = vpop.f32.mrf.mxu1  ;;  %v898_v6 = vadd.f32 %v889_v60, %v385_v0 }
 0x204   :  { %v899_v33 = vadd.f32 %v823_v10, %v193_v34  ;;  %v900_v17 = vadd.f32 %v846_v30, %v258_v54  ;;  %v5717_v10 = vld [vmem:[#allocation47_spill] sm:$0xff] }
 0x205   :  { %v2885_v45 = vmul.f32 -1.442695, %v897_v8  ;;  %v388_v30 = vadd.f32 %v5717_v10, %v4282_v36 }
 0x206   :  { %v2975_v18 = vpop.eup %2974  ;;  %v2886_v21 = vmul.f32 -1.442695, %v899_v33  ;;  %v2887_v25 = vmul.f32 -1.442695, %v900_v17 }
 0x207   :  { %v2977_v52 = vpop.eup %2976  ;;  %v921_v53 = vadd.f32 1.0, %v2975_v18  ;;  %2978 = vpow2.f32 %v2885_v45 }
 0x208   :  { %v922_v55 = vadd.f32 1.0, %v2977_v52  ;;  %2980 = vpow2.f32 %v2886_v21 }
 0x209   :  { %2982 = vrcp.f32 %v921_v53  ;;  %v936_v21 = vand.u32 2147483647, %v921_v53  ;;  %v938_v52 = vand.u32 2147483648, %v921_v53  ;;  %vm932_vm10 = vweird.f32 %v921_v53 }
 0x20a   :  { %2984 = vrcp.f32 %v922_v55  ;;  %v869_v61 = vpop.f32.mrf.mxu2  ;;  %v953_v18 = vand.u32 2147483648, %v922_v55  ;;  %vm947_vm12 = vweird.f32 %v922_v55 }
 0x20b   :  { %2986 = vpow2.f32 %v2887_v25  ;;  %v901_v1 = vadd.f32 %v869_v61, %v323_v58  ;;  %v892_v25 = vpop.f32.mrf.mxu3  ;;  %v951_v58 = vand.u32 2147483647, %v922_v55  ;;  %vm937_vm14 = vcmp.eq.f32.partialorder %v936_v21, 8.507059e+37 }
 0x20d   :  { %v2979_v2 = vpop.eup %2978  ;;  %v2888_v7 = vmul.f32 -1.442695, %v901_v1  ;;  %vm952_vm0 = vcmp.eq.f32.partialorder %v951_v58, 8.507059e+37 }
 0x20e   :  { %v2981_v16 = vpop.eup %2980  ;;  %v4513_v20 = vadd.f32 1.0, %v2979_v2  ;;  %v902_v2 = vadd.f32 %v892_v25, %v388_v30 }
 0x20f   :  { %v2983_v24 = vpop.eup %2982  ;;  %v4515_v34 = vadd.f32 1.0, %v2981_v16  ;;  %2988 = vpow2.f32 %v2888_v7  ;;  %v939_v16 = vor.u32 1.1754944e-38, %v938_v52 }
 0x210   :  { %v2985_v44 = vpop.eup %2984  ;;  %v928_v54 = vmul.f32 %v2983_v24, %v921_v53  ;;  %2990 = vrcp.f32 %v4513_v20  ;;  %vm933_vm9 = vweird.f32 %v2983_v24  ;;  %v954_v53 = vor.u32 1.1754944e-38, %v953_v18 }
 0x211   :  { %v2987_v4 = vpop.eup %2986  ;;  %v943_v8 = vmul.f32 %v2985_v44, %v922_v55  ;;  %2992 = vtanh.f32 %v898_v6  ;;  %vm948_vm11 = vweird.f32 %v2985_v44  ;;  %vm934_vm13 = vmor %vm932_vm10, %vm933_vm9  ;;  %vm962_vm1 = vweird.f32 %v4513_v20 }
 0x212   :  { %v929_v33 = vsub.f32 1.0, %v928_v54  ;;  %2994 = vrcp.f32 %v4515_v34  ;;  %v4521_v17 = vadd.f32 1.0, %v2987_v4  ;;  %vm949_vm15 = vmor %vm947_vm12, %vm948_vm11  ;;  %v968_v18 = vand.u32 2147483648, %v4513_v20 }
 0x213   :  { %v944_v45 = vsub.f32 1.0, %v943_v8  ;;  %v981_v58 = vand.u32 2147483647, %v4515_v34  ;;  %vm977_vm6 = vweird.f32 %v4515_v34 }
 0x214   :  { %v930_v57 = vmul.f32 %v2983_v24, %v929_v33  ;;  %2996 = vrcp.f32 %v4521_v17  ;;  %vm992_vm7 = vweird.f32 %v4521_v17 }
 0x215   :  { %v2989_v60 = vpop.eup %2988  ;;  %v945_v61 = vmul.f32 %v2985_v44, %v944_v45  ;;  %vm982_vm9 = vcmp.eq.f32.partialorder %v981_v58, 8.507059e+37 }
 0x216   :  { %v4524_v63 = vpop.eup %2990  ;;  %v931_v0 = vadd.f32 %v2983_v24, %v930_v57  ;;  %v4526_v1 = vadd.f32 1.0, %v2989_v60 }
 0x217   :  { %v2993_v6 = vpop.eup %2992  ;;  %v958_v7 = vmul.f32 %v4524_v63, %v4513_v20  ;;  %v946_v54 = vadd.f32 %v2985_v44, %v945_v61  ;;  %vm963_vm2 = vweird.f32 %v4524_v63 }
 0x218   :  { %v2995_v4 = vpop.eup %2994  ;;  %v935_v8 = vsel %vm934_vm13, %v2983_v24, %v931_v0  ;;  %2998 = vrcp.f32 %v4526_v1  ;;  %vm4552_vm5 = vmor %vm962_vm1, %vm963_vm2 }
 0x219   :  { %v959_v55 = vsub.f32 1.0, %v958_v7  ;;  %v940_v10 = vsel %vm937_vm14, %v939_v16, %v935_v8  ;;  %v950_v33 = vsel %vm949_vm15, %v2985_v44, %v946_v54  ;;  %v973_v30 = vmul.f32 %v2995_v4, %v4515_v34 }
 0x21a   :  { %v2997_v45 = vpop.eup %2996  ;;  %v955_v25 = vsel %vm952_vm0, %v954_v53, %v950_v33  ;;  %v1021_v57 = vmul.f32 %v2993_v6, %v940_v10  ;;  %3000 = vtanh.f32 %v902_v2  ;;  %v983_v44 = vand.u32 2147483648, %v4515_v34 }
 0x21b   :  { %v960_v21 = vmul.f32 %v4524_v63, %v959_v55  ;;  %v1019_v52 = vmul.f32 %v955_v25, %v4357_v15  ;;  %v974_v60 = vsub.f32 1.0, %v973_v30  ;;  %v988_v24 = vmul.f32 %v2997_v45, %v4521_v17  ;;  %v4617_v55 = vld [vmem:[#allocation6 + $0x130] sm:$0xff] }
 0x21c   :  { %v998_v7 = vand.u32 2147483648, %v4521_v17  ;;  %vm978_vm3 = vweird.f32 %v2995_v4  ;;  %v996_v16 = vand.u32 2147483647, %v4521_v17  ;;  %vm993_vm4 = vweird.f32 %v2997_v45 }
 0x21d   :  { %v4540_v61 = vadd.f32 %v1021_v57, %v1019_v52  ;;  %v989_v0 = vsub.f32 1.0, %v988_v24  ;;  %v975_v2 = vmul.f32 %v2995_v4, %v974_v60  ;;  %v961_v15 = vadd.f32 %v4524_v63, %v960_v21  ;;  %vm979_vm8 = vmor %vm977_vm6, %vm978_vm3 }
 0x21e   :  { %v4542_v6 = vpop.eup %2998  ;;  %v966_v10 = vand.u32 2147483647, %v4513_v20  ;;  %v984_v25 = vor.u32 1.1754944e-38, %v983_v44  ;;  %vm994_vm10 = vmor %vm992_vm7, %vm993_vm4  ;;  %v999_v60 = vor.u32 1.1754944e-38, %v998_v7  ;;  %v969_v24 = vor.u32 1.1754944e-38, %v968_v18  ;;  %v4604_v7 = vld [vmem:[#allocation6 + $0x178] sm:$0xff] }
 0x21f   :  { %3002 = vtanh.f32 %v4540_v61  ;;  %v990_v54 = vmul.f32 %v2997_v45, %v989_v0  ;;  %v1003_v8 = vmul.f32 %v4542_v6, %v4526_v1  ;;  %v976_v33 = vadd.f32 %v2995_v4, %v975_v2 }
 0x220   :  { %v3001_v53 = vpop.eup %3000  ;;  %v965_v21 = vsel %vm4552_vm5, %v4524_v63, %v961_v15  ;;  %vm997_vm11 = vcmp.eq.f32.partialorder %v996_v16, 8.507059e+37  ;;  %vm967_vm12 = vcmp.eq.f32.partialorder %v966_v10, 8.507059e+37  ;;  %vm1008_vm13 = vweird.f32 %v4542_v6  ;;  %v4609_v16 = vld [vmem:[#allocation6 + $0x150] sm:$0xff]  ;;  %v4620_v10 = vld [vmem:[#allocation6 + $0x138] sm:$0xff] }
 0x221   :  { %v1004_v30 = vsub.f32 1.0, %v1003_v8  ;;  %v991_v57 = vadd.f32 %v2997_v45, %v990_v54  ;;  %v980_v52 = vsel %vm979_vm8, %v2995_v4, %v976_v33  ;;  %v970_v54 = vsel %vm967_vm12, %v969_v24, %v965_v21  ;;  %v4625_v33 = vld [vmem:[#allocation6 + $0x110] sm:$0xff]  ;;  %v4639_v21 = vld [vmem:[#allocation6 + $0xc0] sm:$0xff]  ;;  %v4648_v24 = vld [vmem:[#allocation6 + $0xd8] sm:$0xff] }
 0x222   :  { %v985_v0 = vsel %vm982_vm9, %v984_v25, %v980_v52  ;;  %vm1007_vm14 = vweird.f32 %v4526_v1  ;;  %v4633_v25 = vld [vmem:[#allocation6 + $0xf0] sm:$0xff]  ;;  %5724 = vst [vmem:[#allocation50_spill] sm:$0xff] %v4639_v21  ;;  %v4642_v52 = vld [vmem:[#allocation6 + $0xc8] sm:$0xff] }
 0x223   :  { %v995_v20 = vsel %vm994_vm10, %v2997_v45, %v991_v57  ;;  %v1005_v34 = vmul.f32 %v4542_v6, %v1004_v30  ;;  %v1022_v2 = vmul.f32 %v3001_v53, %v985_v0  ;;  %v1013_v45 = vand.u32 2147483648, %v4526_v1  ;;  %vm1009_vm15 = vmor %vm1007_vm14, %vm1008_vm13  ;;  %v4612_v53 = vld [vmem:[#allocation6 + $0x158] sm:$0xff]  ;;  %5722 = vst [vmem:[#allocation37_spill] sm:$0xff] %v4633_v25  ;;  %v4651_v0 = vld [vmem:[#allocation6 + $0xa0] sm:$0xff] }
 0x224   :  { %v1000_v17 = vsel %vm997_vm11, %v999_v60, %v995_v20  ;;  %v4628_v30 = vld [vmem:[#allocation6 + $0x118] sm:$0xff]  ;;  %5725 = vst [vmem:[#allocation51_spill] sm:$0xff] %v4642_v52  ;;  %v4645_v60 = vld [vmem:[#allocation6 + $0xd0] sm:$0xff]  ;;  %v4654_v20 = vld [vmem:[#allocation6 + $0xa8] sm:$0xff] }
 0x225   :  { %v3003_v8 = vpop.eup %3002  ;;  %v1020_v44 = vmul.f32 %v1000_v17, %v4366_v47  ;;  %v1006_v4 = vadd.f32 %v4542_v6, %v1005_v34  ;;  %v1011_v47 = vand.u32 2147483647, %v4526_v1  ;;  %v1014_v58 = vor.u32 1.1754944e-38, %v1013_v45  ;;  %v4636_v57 = vld [vmem:[#allocation6 + $0xf8] sm:$0xff]  ;;  %5726 = vst [vmem:[#allocation25_spill] sm:$0xff] %v4645_v60  ;;  %v4657_v34 = vld [vmem:[#allocation6 + $0xb0] sm:$0xff] }
 0x226   :  { %v4564_v3 = vmul.f32 %v3003_v8, %v970_v54  ;;  %5723 = vst [vmem:[#allocation40_spill] sm:$0xff] %v4636_v57  ;;  %v4660_v17 = vld [vmem:[#allocation6 + $0xb8] sm:$0xff]  ;;  %v4666_v8 = vld [vmem:[#allocation6 + $0x88] sm:$0xff] }
 0x227   :  { %v4566_v63 = vadd.f32 %v1022_v2, %v1020_v44  ;;  %v1010_v18 = vsel %vm1009_vm15, %v4542_v6, %v1006_v4  ;;  %vm1012_vm0 = vcmp.eq.f32.partialorder %v1011_v47, 8.507059e+37  ;;  %5727 = vst [vmem:[#allocation54_spill] sm:$0xff] %v4648_v24  ;;  %v4663_v2 = vld [vmem:[#allocation6 + $0x80] sm:$0xff]  ;;  %v4669_v44 = vld [vmem:[#allocation6 + $0x90] sm:$0xff]  ;;  %v4672_v54 = vld [vmem:[#allocation6 + $0x98] sm:$0xff] }
 0x228   :  { %5720 = vst [vmem:[#allocation23_spill] sm:$0xff] %v4564_v3  ;;  %1057 = vmatmul.f32.vlgmr.msrb.gmra.mxu0 %v4564_v3  ;;  %1080 = vmatmul.f32.vlgmr.msrb.gmra.mxu1 %v4564_v3  ;;  %v1015_v15 = vsel %vm1012_vm0, %v1014_v58, %v1010_v18  ;;  %v4675_v4 = vld [vmem:[#allocation6 + $0x60] sm:$0xff]  ;;  %v4678_v45 = vld [vmem:[#allocation6 + $0x68] sm:$0xff]  ;;  %v4681_v47 = vld [vmem:[#allocation6 + $0x70] sm:$0xff] }
 0x229   :  { %3004 = vtanh.f32 %v4566_v63  ;;  %1103 = vmatmul.f32.vlgmr.msra.gmra.mxu2 %v4564_v3  ;;  %1126 = vmatmul.f32.vlgmr.msra.gmra.mxu3 %v4564_v3  ;;  %5728 = vst [vmem:[#allocation57_spill] sm:$0xff] %v4651_v0  ;;  %v4684_v18 = vld [vmem:[#allocation6 + $0x78] sm:$0xff]  ;;  %v4687_v58 = vld [vmem:[#allocation6 + $0x40] sm:$0xff] }
 0x22a   :  { %1517 = vmatpush.msrb.mxu0 %v4375_v46  ;;  %1540 = vmatpush.msrb.mxu1 %v4378_v14  ;;  %5729 = vst [vmem:[#allocation46_spill] sm:$0xff] %v4654_v20  ;;  %v4699_v3 = vld [vmem:[#allocation6 + $0x20] sm:$0xff] }
 0x22b   :  { %1563 = vmatpush.msra.mxu2 %v4381_v43  ;;  %1586 = vmatpush.msra.mxu3 %v4384_v27  ;;  %5730 = vst [vmem:[#allocation26_spill] sm:$0xff] %v4657_v34 }
 0x22c   :  { %1518 = vmatpush.msrb.mxu0 %v4387_v35  ;;  %1541 = vmatpush.msrb.mxu1 %v4390_v37  ;;  %5731 = vst [vmem:[#allocation47_spill] sm:$0xff] %v4660_v17 }
 0x22d   :  { %1564 = vmatpush.msra.mxu2 %v4393_v26  ;;  %1587 = vmatpush.msra.mxu3 %v4396_v39  ;;  %5732 = vst [vmem:[#allocation90_spill] sm:$0xff] %v4663_v2 }
 0x22e   :  { %1519 = vmatpush.msrb.mxu0 %v4401_v5  ;;  %1542 = vmatpush.msrb.mxu1 %v4404_v13  ;;  %5733 = vst [vmem:[#allocation91_spill] sm:$0xff] %v4666_v8 }
 0x22f   :  { %v3005_v1 = vpop.eup %3004  ;;  %1565 = vmatpush.msra.mxu2 %v4407_v12  ;;  %1588 = vmatpush.msra.mxu3 %v4410_v11  ;;  %5734 = vst [vmem:[#allocation92_spill] sm:$0xff] %v4669_v44 }
 0x230   :  { %v4591_v6 = vmul.f32 %v3005_v1, %v1015_v15  ;;  %1520 = vmatpush.msrb.mxu0 %v4417_v38  ;;  %1543 = vmatpush.msrb.mxu1 %v4420_v23  ;;  %5735 = vst [vmem:[#allocation93_spill] sm:$0xff] %v4672_v54  ;;  %v4690_v1 = vld [vmem:[#allocation6 + $0x48] sm:$0xff]  ;;  %v4693_v15 = vld [vmem:[#allocation6 + $0x50] sm:$0xff] }
 0x231   :  { %1566 = vmatpush.msra.mxu2 %v4423_v32  ;;  %1589 = vmatpush.msra.mxu3 %v4426_v29  ;;  %5736 = vst [vmem:[#allocation94_spill] sm:$0xff] %v4675_v4 }
 0x232   :  { %5721 = vst [vmem:[#allocation24_spill] sm:$0xff] %v4591_v6  ;;  %1060 = vmatmul.f32.gmra.mxu0 %v4591_v6  ;;  %1083 = vmatmul.f32.gmra.mxu1 %v4591_v6 }
 0x233   :  { %1106 = vmatmul.f32.gmra.mxu2 %v4591_v6  ;;  %1129 = vmatmul.f32.gmra.mxu3 %v4591_v6  ;;  %5737 = vst [vmem:[#allocation95_spill] sm:$0xff] %v4678_v45  ;;  %v4696_v6 = vld [vmem:[#allocation6 + $0x58] sm:$0xff] }
 0x234   :  { %1521 = vmatpush.msrb.mxu0 %v4429_v40  ;;  %1544 = vmatpush.msrb.mxu1 %v4432_v19  ;;  %5738 = vst [vmem:[#allocation96_spill] sm:$0xff] %v4681_v47 }
 0x235   :  { %1567 = vmatpush.msra.mxu2 %v4435_v41  ;;  %1590 = vmatpush.msra.mxu3 %v4604_v7  ;;  %5739 = vst [vmem:[#allocation97_spill] sm:$0xff] %v4684_v18 }
 0x236   :  { %1522 = vmatpush.msrb.mxu0 %v4439_v49  ;;  %1545 = vmatpush.msrb.mxu1 %v4442_v31  ;;  %5740 = vst [vmem:[#allocation98_spill] sm:$0xff] %v4687_v58 }
 0x237   :  { %1568 = vmatpush.msra.mxu2 %v4609_v16  ;;  %1591 = vmatpush.msra.mxu3 %v4612_v53  ;;  %5741 = vst [vmem:[#allocation99_spill] sm:$0xff] %v4690_v1 }
 0x238   :  { %1523 = vmatpush.msrb.mxu0 %v4447_v22  ;;  %1546 = vmatpush.msrb.mxu1 %v4450_v42  ;;  %5742 = vst [vmem:[#allocation100_spill] sm:$0xff] %v4693_v15 }
 0x239   :  { %1569 = vmatpush.msra.mxu2 %v4617_v55  ;;  %1592 = vmatpush.msra.mxu3 %v4620_v10  ;;  %5743 = vst [vmem:[#allocation101_spill] sm:$0xff] %v4696_v6 }
 0x23a   :  { %1524 = vmatpush.msrb.mxu0 %v4455_v51  ;;  %1547 = vmatpush.msrb.mxu1 %v4458_v50  ;;  %5744 = vst [vmem:[#allocation102_spill] sm:$0xff] %v4699_v3 }
 0x23b   :  { %1570 = vmatpush.msra.mxu2 %v4625_v33  ;;  %1593 = vmatpush.msra.mxu3 %v4628_v30 }
 0x23c   :  { %1525 = vmatpush.msrb.mxu0 %v4463_v48  ;;  %1548 = vmatpush.msrb.mxu1 %v4466_v62 }
 0x23d   :  { %1571 = vmatpush.msra.mxu2 %v4633_v25  ;;  %1594 = vmatpush.msra.mxu3 %v4636_v57 }
 0x23e   :  { %1526 = vmatpush.msrb.mxu0 %v4639_v21  ;;  %1549 = vmatpush.msrb.mxu1 %v4642_v52 }
 0x23f   :  { %1572 = vmatpush.msra.mxu2 %v4645_v60  ;;  %1595 = vmatpush.msra.mxu3 %v4648_v24 }
 0x240   :  { %1527 = vmatpush.msrb.mxu0 %v4651_v0  ;;  %1550 = vmatpush.msrb.mxu1 %v4654_v20 }
 0x241   :  { %1573 = vmatpush.msra.mxu2 %v4657_v34  ;;  %1596 = vmatpush.msra.mxu3 %v4660_v17 }
 0x242   :  { %1528 = vmatpush.msrb.mxu0 %v4663_v2  ;;  %1551 = vmatpush.msrb.mxu1 %v4666_v8  ;;  %v5754_v8 = vld [vmem:[#allocation48_spill] sm:$0xff] }
 0x243   :  { %1574 = vmatpush.msra.mxu2 %v4669_v44  ;;  %1597 = vmatpush.msra.mxu3 %v4672_v54 }
 0x244   :  { %1529 = vmatpush.msrb.mxu0 %v4675_v4  ;;  %1552 = vmatpush.msrb.mxu1 %v4678_v45 }
 0x245   :  { %1575 = vmatpush.msra.mxu2 %v4681_v47  ;;  %1598 = vmatpush.msra.mxu3 %v4684_v18 }
 0x246   :  { %1530 = vmatpush.msrb.mxu0 %v4687_v58  ;;  %1553 = vmatpush.msrb.mxu1 %v4690_v1  ;;  %v4705_v58 = vld [vmem:[#allocation6 + $0x30] sm:$0xff]  ;;  %v4708_v1 = vld [vmem:[#allocation6 + $0x38] sm:$0xff] }
 0x247   :  { %1576 = vmatpush.msra.mxu2 %v4693_v15  ;;  %1599 = vmatpush.msra.mxu3 %v4696_v6  ;;  %5746 = vst [vmem:[#allocation104_spill] sm:$0xff] %v4705_v58  ;;  %v4711_v15 = vld [vmem:[#allocation6] sm:$0xff]  ;;  %v4714_v6 = vld [vmem:[#allocation6 + $0x8] sm:$0xff] }
 0x248   :  { %1531 = vmatpush.msrb.mxu0 %v4699_v3  ;;  %1554 = vmatpush.msrb.mxu1 %v4702_v28  ;;  %5747 = vst [vmem:[#allocation105_spill] sm:$0xff] %v4708_v1  ;;  %v4717_v3 = vld [vmem:[#allocation6 + $0x10] sm:$0xff]  ;;  %v4720_v28 = vld [vmem:[#allocation6 + $0x18] sm:$0xff] }
 0x249   :  { %1577 = vmatpush.msra.mxu2 %v4705_v58  ;;  %1600 = vmatpush.msra.mxu3 %v4708_v1  ;;  %5748 = vst [vmem:[#allocation106_spill] sm:$0xff] %v4711_v15  ;;  %v5752_v58 = vld [vmem:[#allocation60_spill] sm:$0xff]  ;;  %v5753_v1 = vld [vmem:[#allocation61_spill] sm:$0xff] }
 0x24a   :  { %1532 = vmatpush.msrb.mxu0 %v4711_v15  ;;  %5749 = vst [vmem:[#allocation107_spill] sm:$0xff] %v4714_v6  ;;  %1555 = vmatpush.msrb.mxu1 %v4714_v6  ;;  %v196_v18 = vadd.f32 %v5752_v58, %v5707_v56  ;;  %v261_v47 = vadd.f32 %v5753_v1, %v5709_v59  ;;  %v5756_v58 = vld [vmem:[#allocation65_spill] sm:$0xff] }
 0x24b   :  { %5750 = vst [vmem:[#allocation108_spill] sm:$0xff] %v4717_v3  ;;  %1578 = vmatpush.msra.mxu2 %v4717_v3  ;;  %1601 = vmatpush.msra.mxu3 %v4720_v28  ;;  %v326_v3 = vadd.f32 %v5754_v8, %v5711_v9  ;;  %v264_v20 = vadd.f32 %v5756_v58, %v5709_v59 }
 0x24c   :  { %5751 = vst [vmem:[#allocation109_spill] sm:$0xff] %v4720_v28  ;;  %v5755_v28 = vld [vmem:[#allocation64_spill] sm:$0xff] }
 0x24d   :  { %v199_v34 = vadd.f32 %v5755_v28, %v5707_v56  ;;  %v5757_v28 = vld [vmem:[#allocation49_spill] sm:$0xff] }
 0x2a5   :  { %v1058_v45 = vpop.f32.mrf.mxu0  ;;  %v1081_v15 = vpop.f32.mrf.mxu1 }
 0x2a6   :  { %v1133_v4 = vadd.f32 %v1058_v45, %v196_v18  ;;  %v1134_v54 = vadd.f32 %v1081_v15, %v261_v47  ;;  %v5758_v15 = vld [vmem:[#allocation52_spill] sm:$0xff] }
 0x2a8   :  { %v2889_v44 = vmul.f32 -1.442695, %v1133_v4  ;;  %v2890_v6 = vmul.f32 -1.442695, %v1134_v54 }
 0x2aa   :  { %3006 = vpow2.f32 %v2889_v44 }
 0x2ab   :  { %3008 = vpow2.f32 %v2890_v6 }
 0x2ac   :  { %v1104_v2 = vpop.f32.mrf.mxu2 }
 0x2ad   :  { %v1135_v17 = vadd.f32 %v1104_v2, %v326_v3  ;;  %v1127_v3 = vpop.f32.mrf.mxu3  ;;  %v391_v2 = vadd.f32 %v5757_v28, %v4282_v36 }
 0x2af   :  { %v2891_v1 = vmul.f32 -1.442695, %v1135_v17  ;;  %v1061_v0 = vpop.f32.mrf.mxu0  ;;  %v1084_v24 = vpop.f32.mrf.mxu1  ;;  %v329_v17 = vadd.f32 %v5758_v15, %v5711_v9 }
 0x2b0   :  { %v3007_v45 = vpop.eup %3006  ;;  %v1137_v47 = vadd.f32 %v1061_v0, %v199_v34  ;;  %v1138_v4 = vadd.f32 %v1084_v24, %v264_v20  ;;  %v1136_v24 = vadd.f32 %v1127_v3, %v391_v2 }
 0x2b1   :  { %v3009_v54 = vpop.eup %3008  ;;  %v1159_v44 = vadd.f32 1.0, %v3007_v45  ;;  %3010 = vpow2.f32 %v2891_v1 }
 0x2b2   :  { %v1160_v18 = vadd.f32 1.0, %v3009_v54  ;;  %v2892_v8 = vmul.f32 -1.442695, %v1137_v47  ;;  %v2893_v6 = vmul.f32 -1.442695, %v1138_v4 }
 0x2b3   :  { %3012 = vrcp.f32 %v1159_v44  ;;  %v1174_v15 = vand.u32 2147483647, %v1159_v44  ;;  %v1176_v2 = vand.u32 2147483648, %v1159_v44  ;;  %vm1170_vm4 = vweird.f32 %v1159_v44 }
 0x2b4   :  { %3014 = vrcp.f32 %v1160_v18  ;;  %v1191_v3 = vand.u32 2147483648, %v1160_v18  ;;  %vm1185_vm3 = vweird.f32 %v1160_v18 }
 0x2b5   :  { %3016 = vpow2.f32 %v2892_v8  ;;  %vm1175_vm6 = vcmp.eq.f32.partialorder %v1174_v15, 8.507059e+37  ;;  %v1177_v9 = vor.u32 1.1754944e-38, %v1176_v2 }
 0x2b6   :  { %3018 = vpow2.f32 %v2893_v6  ;;  %v1107_v58 = vpop.f32.mrf.mxu2  ;;  %v1192_v21 = vor.u32 1.1754944e-38, %v1191_v3 }
 0x2b7   :  { %v3011_v0 = vpop.eup %3010  ;;  %v1139_v20 = vadd.f32 %v1107_v58, %v329_v17 }
 0x2b8   :  { %v4737_v34 = vadd.f32 1.0, %v3011_v0  ;;  %v1189_v0 = vand.u32 2147483647, %v1160_v18 }
 0x2b9   :  { %v3013_v1 = vpop.eup %3012  ;;  %v2894_v45 = vmul.f32 -1.442695, %v1139_v20 }
 0x2ba   :  { %v3015_v47 = vpop.eup %3014  ;;  %v1166_v4 = vmul.f32 %v3013_v1, %v1159_v44  ;;  %3020 = vrcp.f32 %v4737_v34  ;;  %vm1171_vm1 = vweird.f32 %v3013_v1  ;;  %vm1190_vm8 = vcmp.eq.f32.partialorder %v1189_v0, 8.507059e+37 }
 0x2bb   :  { %v3017_v54 = vpop.eup %3016  ;;  %v1181_v59 = vmul.f32 %v3015_v47, %v1160_v18  ;;  %3022 = vtanh.f32 %v1136_v24  ;;  %vm1186_vm2 = vweird.f32 %v3015_v47  ;;  %v1130_v24 = vpop.f32.mrf.mxu3  ;;  %vm1172_vm5 = vmor %vm1170_vm4, %vm1171_vm1  ;;  %v1204_v3 = vand.u32 2147483647, %v4737_v34 }
 0x2bc   :  { %v3019_v28 = vpop.eup %3018  ;;  %v1167_v56 = vsub.f32 1.0, %v1166_v4  ;;  %v4740_v8 = vadd.f32 1.0, %v3017_v54  ;;  %3024 = vpow2.f32 %v2894_v45  ;;  %v5759_v54 = vld [vmem:[#allocation53_spill] sm:$0xff]  ;;  %vm1187_vm7 = vmor %vm1185_vm3, %vm1186_vm2  ;;  %vm1200_vm11 = vweird.f32 %v4737_v34 }
 0x2bd   :  { %v1182_v6 = vsub.f32 1.0, %v1181_v59  ;;  %v4742_v17 = vadd.f32 1.0, %v3019_v28  ;;  %v394_v45 = vadd.f32 %v5759_v54, %v4282_v36  ;;  %vm4776_vm14 = vcmp.eq.f32.partialorder %v1204_v3, 8.507059e+37 }
 0x2be   :  { %v1168_v58 = vmul.f32 %v3013_v1, %v1167_v56  ;;  %3026 = vrcp.f32 %v4740_v8  ;;  %vm1215_vm0 = vweird.f32 %v4740_v8 }
 0x2bf   :  { %v1183_v20 = vmul.f32 %v3015_v47, %v1182_v6  ;;  %3028 = vrcp.f32 %v4742_v17  ;;  %v1140_v57 = vadd.f32 %v1130_v24, %v394_v45  ;;  %vm1230_vm15 = vweird.f32 %v4742_v17  ;;  %v5792_v45 = vld [vmem:[#allocation104_spill] sm:$0xff] }
 0x2c0   :  { %v4746_v4 = vpop.eup %3020  ;;  %v1169_v59 = vadd.f32 %v3013_v1, %v1168_v58 }
 0x2c1   :  { %v3023_v28 = vpop.eup %3022  ;;  %v1196_v56 = vmul.f32 %v4746_v4, %v4737_v34  ;;  %v1184_v6 = vadd.f32 %v3015_v47, %v1183_v20  ;;  %vm1201_vm9 = vweird.f32 %v4746_v4 }
 0x2c2   :  { %v3025_v60 = vpop.eup %3024  ;;  %v1173_v52 = vsel %vm1172_vm5, %v3013_v1, %v1169_v59  ;;  %vm4772_vm13 = vmor %vm1200_vm11, %vm1201_vm9  ;;  %v5793_v59 = vld [vmem:[#allocation105_spill] sm:$0xff] }
 0x2c3   :  { %v1197_v25 = vsub.f32 1.0, %v1196_v56  ;;  %v1178_v54 = vsel %vm1175_vm6, %v1177_v9, %v1173_v52  ;;  %v1188_v18 = vsel %vm1187_vm7, %v3015_v47, %v1184_v6  ;;  %v4753_v58 = vadd.f32 1.0, %v3025_v60 }
 0x2c4   :  { %v3027_v44 = vpop.eup %3026  ;;  %v1193_v36 = vsel %vm1190_vm8, %v1192_v21, %v1188_v18  ;;  %v1259_v62 = vmul.f32 %v3023_v28, %v1178_v54  ;;  %v1206_v9 = vand.u32 2147483648, %v4737_v34  ;;  %v1219_v60 = vand.u32 2147483647, %v4740_v8 }
 0x2c5   :  { %v3029_v48 = vpop.eup %3028  ;;  %v1198_v15 = vmul.f32 %v4746_v4, %v1197_v25  ;;  %v1257_v2 = vmul.f32 %v1193_v36, %v4540_v61  ;;  %v1211_v1 = vmul.f32 %v3027_v44, %v4740_v8  ;;  %3030 = vrcp.f32 %v4753_v58 }
 0x2c6   :  { %v1226_v0 = vmul.f32 %v3029_v48, %v4742_v17  ;;  %3032 = vtanh.f32 %v1140_v57  ;;  %v1221_v61 = vand.u32 2147483648, %v4740_v8  ;;  %v1236_v47 = vand.u32 2147483648, %v4742_v17 }
 0x2c7   :  { %v4762_v52 = vadd.f32 %v1259_v62, %v1257_v2  ;;  %v1212_v21 = vsub.f32 1.0, %v1211_v1  ;;  %v1199_v25 = vadd.f32 %v4746_v4, %v1198_v15  ;;  %vm1216_vm10 = vweird.f32 %v3027_v44 }
 0x2c8   :  { %v1227_v36 = vsub.f32 1.0, %v1226_v0  ;;  %vm1231_vm12 = vweird.f32 %v3029_v48  ;;  %v1234_v57 = vand.u32 2147483647, %v4742_v17  ;;  %vm1217_vm1 = vmor %vm1215_vm0, %vm1216_vm10  ;;  %v1222_v54 = vor.u32 1.1754944e-38, %v1221_v61 }
 0x2c9   :  { %3034 = vtanh.f32 %v4762_v52  ;;  %v1213_v20 = vmul.f32 %v3027_v44, %v1212_v21  ;;  %v1203_v34 = vsel %vm4772_vm13, %v4746_v4, %v1199_v25  ;;  %v1207_v15 = vor.u32 1.1754944e-38, %v1206_v9  ;;  %vm1232_vm3 = vmor %vm1230_vm15, %vm1231_vm12 }
 0x2ca   :  { %v1228_v62 = vmul.f32 %v3029_v48, %v1227_v36  ;;  %vm1220_vm2 = vcmp.eq.f32.partialorder %v1219_v60, 8.507059e+37  ;;  %v1237_v1 = vor.u32 1.1754944e-38, %v1236_v47  ;;  %vm1235_vm4 = vcmp.eq.f32.partialorder %v1234_v57, 8.507059e+37  ;;  %v5788_v47 = vld [vmem:[#allocation100_spill] sm:$0xff]  ;;  %v5790_v57 = vld [vmem:[#allocation102_spill] sm:$0xff] }
 0x2cb   :  { %v3031_v24 = vpop.eup %3030  ;;  %v1214_v28 = vadd.f32 %v3027_v44, %v1213_v20  ;;  %v1208_v4 = vsel %vm4776_vm14, %v1207_v15, %v1203_v34  ;;  %vm1245_vm6 = vweird.f32 %v4753_v58  ;;  %v5796_v34 = vld [vmem:[#allocation108_spill] sm:$0xff] }
 0x2cc   :  { %v3033_v56 = vpop.eup %3032  ;;  %v1241_v6 = vmul.f32 %v3031_v24, %v4753_v58  ;;  %v1229_v18 = vadd.f32 %v3029_v48, %v1228_v62  ;;  %vm1246_vm5 = vweird.f32 %v3031_v24  ;;  %v5789_v62 = vld [vmem:[#allocation101_spill] sm:$0xff] }
 0x2cd   :  { %v1218_v2 = vsel %vm1217_vm1, %v3027_v44, %v1214_v28  ;;  %vm1247_vm7 = vmor %vm1245_vm6, %vm1246_vm5  ;;  %v5794_v28 = vld [vmem:[#allocation106_spill] sm:$0xff] }
 0x2ce   :  { %v1242_v17 = vsub.f32 1.0, %v1241_v6  ;;  %v1223_v3 = vsel %vm1220_vm2, %v1222_v54, %v1218_v2  ;;  %v1233_v0 = vsel %vm1232_vm3, %v3029_v48, %v1229_v18  ;;  %v1251_v48 = vand.u32 2147483648, %v4753_v58  ;;  %v5797_v6 = vld [vmem:[#allocation109_spill] sm:$0xff]  ;;  %v5798_v54 = vld [vmem:[#allocation72_spill] sm:$0xff] }
 0x2cf   :  { %v3035_v8 = vpop.eup %3034  ;;  %v1238_v21 = vsel %vm1235_vm4, %v1237_v1, %v1233_v0  ;;  %v1260_v36 = vmul.f32 %v3033_v56, %v1223_v3  ;;  %v5795_v56 = vld [vmem:[#allocation107_spill] sm:$0xff]  ;;  %v5799_v18 = vld [vmem:[#allocation68_spill] sm:$0xff]  ;;  %v5800_v2 = vld [vmem:[#allocation73_spill] sm:$0xff] }
 0x2d0   :  { %v1243_v25 = vmul.f32 %v3031_v24, %v1242_v17  ;;  %v1258_v61 = vmul.f32 %v1238_v21, %v4566_v63  ;;  %v4790_v20 = vmul.f32 %v3035_v8, %v1208_v4  ;;  %v1249_v63 = vand.u32 2147483647, %v4753_v58  ;;  %v5787_v58 = vld [vmem:[#allocation99_spill] sm:$0xff]  ;;  %v5801_v1 = vld [vmem:[#allocation69_spill] sm:$0xff] }
 0x2d1   :  { %v202_v15 = vadd.f32 %v5799_v18, %v5798_v54  ;;  %v267_v17 = vadd.f32 %v5801_v1, %v5800_v2 }
 0x2d2   :  { %5764 = vst [vmem:[#allocation60_spill] sm:$0xff] %v4790_v20  ;;  %v4792_v44 = vadd.f32 %v1260_v36, %v1258_v61  ;;  %1295 = vmatmul.f32.vlgmr.msra.gmra.mxu0 %v4790_v20  ;;  %1318 = vmatmul.f32.vlgmr.msra.gmra.mxu1 %v4790_v20  ;;  %v1244_v9 = vadd.f32 %v3031_v24, %v1243_v25  ;;  %vm1250_vm8 = vcmp.eq.f32.partialorder %v1249_v63, 8.507059e+37  ;;  %v5802_v25 = vld [vmem:[#allocation84_spill] sm:$0xff]  ;;  %v5803_v61 = vld [vmem:[#allocation55_spill] sm:$0xff] }
 0x2d3   :  { %1341 = vmatmul.f32.vlgmr.msrb.gmra.mxu2 %v4790_v20  ;;  %1364 = vmatmul.f32.vlgmr.msrb.gmra.mxu3 %v4790_v20 }
 0x2d4   :  { %3036 = vtanh.f32 %v4792_v44  ;;  %1755 = vmatpush.msra.mxu0 %v4375_v46  ;;  %1778 = vmatpush.msra.mxu1 %v4378_v14  ;;  %v1248_v60 = vsel %vm1247_vm7, %v3031_v24, %v1244_v9  ;;  %v1252_v46 = vor.u32 1.1754944e-38, %v1251_v48  ;;  %v5791_v24 = vld [vmem:[#allocation103_spill] sm:$0xff]  ;;  %v332_v9 = vadd.f32 %v5803_v61, %v5802_v25  ;;  %v5806_v61 = vld [vmem:[#allocation85_spill] sm:$0xff] }
 0x2d5   :  { %1801 = vmatpush.msrb.mxu2 %v4381_v43  ;;  %1824 = vmatpush.msrb.mxu3 %v4384_v27 }
 0x2d6   :  { %1756 = vmatpush.msra.mxu0 %v4387_v35  ;;  %1779 = vmatpush.msra.mxu1 %v4390_v37  ;;  %v1253_v43 = vsel %vm1250_vm8, %v1252_v46, %v1248_v60  ;;  %v5766_v35 = vld [vmem:[#allocation88_spill] sm:$0xff]  ;;  %v5767_v37 = vld [vmem:[#allocation89_spill] sm:$0xff] }
 0x2d7   :  { %1802 = vmatpush.msrb.mxu2 %v4393_v26  ;;  %1825 = vmatpush.msrb.mxu3 %v4396_v39  ;;  %v5768_v26 = vld [vmem:[#allocation37_spill] sm:$0xff]  ;;  %v5769_v39 = vld [vmem:[#allocation40_spill] sm:$0xff] }
 0x2d8   :  { %1757 = vmatpush.msra.mxu0 %v4401_v5  ;;  %1780 = vmatpush.msra.mxu1 %v4404_v13  ;;  %v5770_v5 = vld [vmem:[#allocation50_spill] sm:$0xff]  ;;  %v5771_v13 = vld [vmem:[#allocation51_spill] sm:$0xff]  ;;  %v5804_v60 = vld [vmem:[#allocation29_spill] sm:$0xff] }
 0x2d9   :  { %1803 = vmatpush.msrb.mxu2 %v4407_v12  ;;  %1826 = vmatpush.msrb.mxu3 %v4410_v11  ;;  %v5772_v12 = vld [vmem:[#allocation25_spill] sm:$0xff]  ;;  %v5773_v11 = vld [vmem:[#allocation54_spill] sm:$0xff]  ;;  %v205_v46 = vadd.f32 %v5804_v60, %v5798_v54  ;;  %v5809_v54 = vld [vmem:[#allocation59_spill] sm:$0xff] }
 0x2da   :  { %v3037_v14 = vpop.eup %3036  ;;  %1758 = vmatpush.msra.mxu0 %v4417_v38  ;;  %1781 = vmatpush.msra.mxu1 %v4420_v23  ;;  %v5774_v38 = vld [vmem:[#allocation57_spill] sm:$0xff]  ;;  %v5775_v23 = vld [vmem:[#allocation46_spill] sm:$0xff] }
 0x2db   :  { %v4816_v27 = vmul.f32 %v3037_v14, %v1253_v43  ;;  %1804 = vmatpush.msrb.mxu2 %v4423_v32  ;;  %1827 = vmatpush.msrb.mxu3 %v4426_v29  ;;  %v5776_v32 = vld [vmem:[#allocation26_spill] sm:$0xff]  ;;  %v5777_v29 = vld [vmem:[#allocation47_spill] sm:$0xff] }
 0x2dc   :  { %1759 = vmatpush.msra.mxu0 %v4429_v40  ;;  %1782 = vmatpush.msra.mxu1 %v4432_v19  ;;  %v5778_v40 = vld [vmem:[#allocation90_spill] sm:$0xff]  ;;  %v5779_v19 = vld [vmem:[#allocation91_spill] sm:$0xff] }
 0x2dd   :  { %5765 = vst [vmem:[#allocation61_spill] sm:$0xff] %v4816_v27  ;;  %1298 = vmatmul.f32.gmra.mxu0 %v4816_v27  ;;  %1321 = vmatmul.f32.gmra.mxu1 %v4816_v27  ;;  %v5805_v14 = vld [vmem:[#allocation30_spill] sm:$0xff] }
 0x2de   :  { %1344 = vmatmul.f32.gmra.mxu2 %v4816_v27  ;;  %1367 = vmatmul.f32.gmra.mxu3 %v4816_v27  ;;  %v270_v43 = vadd.f32 %v5805_v14, %v5800_v2  ;;  %v5808_v60 = vld [vmem:[#allocation58_spill] sm:$0xff] }
 0x2df   :  { %1805 = vmatpush.msrb.mxu2 %v4435_v41  ;;  %1828 = vmatpush.msrb.mxu3 %v4604_v7  ;;  %v5780_v41 = vld [vmem:[#allocation92_spill] sm:$0xff] }
 0x2e0   :  { %1760 = vmatpush.msra.mxu0 %v4439_v49  ;;  %1783 = vmatpush.msra.mxu1 %v4442_v31  ;;  %v5781_v49 = vld [vmem:[#allocation93_spill] sm:$0xff]  ;;  %v5782_v31 = vld [vmem:[#allocation94_spill] sm:$0xff] }
 0x2e1   :  { %1806 = vmatpush.msrb.mxu2 %v4609_v16  ;;  %1829 = vmatpush.msrb.mxu3 %v4612_v53 }
 0x2e2   :  { %1761 = vmatpush.msra.mxu0 %v4447_v22  ;;  %1784 = vmatpush.msra.mxu1 %v4450_v42  ;;  %v5783_v22 = vld [vmem:[#allocation95_spill] sm:$0xff]  ;;  %v5784_v42 = vld [vmem:[#allocation96_spill] sm:$0xff] }
 0x2e3   :  { %1807 = vmatpush.msrb.mxu2 %v4617_v55  ;;  %1830 = vmatpush.msrb.mxu3 %v4620_v10 }
 0x2e4   :  { %1762 = vmatpush.msra.mxu0 %v4455_v51  ;;  %1785 = vmatpush.msra.mxu1 %v4458_v50  ;;  %v5785_v51 = vld [vmem:[#allocation97_spill] sm:$0xff]  ;;  %v5786_v50 = vld [vmem:[#allocation98_spill] sm:$0xff] }
 0x2e5   :  { %1808 = vmatpush.msrb.mxu2 %v4625_v33  ;;  %1831 = vmatpush.msrb.mxu3 %v4628_v30 }
 0x2e6   :  { %1763 = vmatpush.msra.mxu0 %v5766_v35  ;;  %1786 = vmatpush.msra.mxu1 %v5767_v37 }
 0x2e7   :  { %1809 = vmatpush.msrb.mxu2 %v5768_v26  ;;  %1832 = vmatpush.msrb.mxu3 %v5769_v39 }
 0x2e8   :  { %1764 = vmatpush.msra.mxu0 %v5770_v5  ;;  %1787 = vmatpush.msra.mxu1 %v5771_v13 }
 0x2e9   :  { %1810 = vmatpush.msrb.mxu2 %v5772_v12  ;;  %1833 = vmatpush.msrb.mxu3 %v5773_v11 }
 0x2ea   :  { %1765 = vmatpush.msra.mxu0 %v5774_v38  ;;  %1788 = vmatpush.msra.mxu1 %v5775_v23 }
 0x2eb   :  { %1811 = vmatpush.msrb.mxu2 %v5776_v32  ;;  %1834 = vmatpush.msrb.mxu3 %v5777_v29 }
 0x2ec   :  { %1766 = vmatpush.msra.mxu0 %v5778_v40  ;;  %1789 = vmatpush.msra.mxu1 %v5779_v19 }
 0x2ed   :  { %1812 = vmatpush.msrb.mxu2 %v5780_v41  ;;  %1835 = vmatpush.msrb.mxu3 %v5781_v49 }
 0x2ee   :  { %1767 = vmatpush.msra.mxu0 %v5782_v31  ;;  %1790 = vmatpush.msra.mxu1 %v5783_v22 }
 0x2ef   :  { %1813 = vmatpush.msrb.mxu2 %v5784_v42  ;;  %1836 = vmatpush.msrb.mxu3 %v5785_v51 }
 0x2f0   :  { %1768 = vmatpush.msra.mxu0 %v5786_v50  ;;  %1791 = vmatpush.msra.mxu1 %v5787_v58 }
 0x2f1   :  { %1814 = vmatpush.msrb.mxu2 %v5788_v47  ;;  %1837 = vmatpush.msrb.mxu3 %v5789_v62 }
 0x2f2   :  { %1769 = vmatpush.msra.mxu0 %v5790_v57  ;;  %1792 = vmatpush.msra.mxu1 %v5791_v24 }
 0x2f3   :  { %1815 = vmatpush.msrb.mxu2 %v5792_v45  ;;  %1838 = vmatpush.msrb.mxu3 %v5793_v59 }
 0x2f4   :  { %1770 = vmatpush.msra.mxu0 %v5794_v28  ;;  %1793 = vmatpush.msra.mxu1 %v5795_v56 }
 0x2f5   :  { %1816 = vmatpush.msrb.mxu2 %v5796_v34  ;;  %1839 = vmatpush.msrb.mxu3 %v5797_v6  ;;  %v400_v6 = vadd.f32 %v5809_v54, %v5806_v61 }
 0x34f   :  { %v1296_v3 = vpop.f32.mrf.mxu0  ;;  %v1319_v0 = vpop.f32.mrf.mxu1 }
 0x350   :  { %v1371_v8 = vadd.f32 %v1296_v3, %v202_v15  ;;  %v1372_v21 = vadd.f32 %v1319_v0, %v267_v17 }
 0x352   :  { %v2895_v36 = vmul.f32 -1.442695, %v1371_v8  ;;  %v2896_v4 = vmul.f32 -1.442695, %v1372_v21 }
 0x354   :  { %3038 = vpow2.f32 %v2895_v36 }
 0x355   :  { %3040 = vpow2.f32 %v2896_v4 }
 0x356   :  { %v1342_v48 = vpop.f32.mrf.mxu2  ;;  %v1365_v21 = vpop.f32.mrf.mxu3 }
 0x357   :  { %v1373_v63 = vadd.f32 %v1342_v48, %v332_v9  ;;  %v5807_v9 = vld [vmem:[#allocation56_spill] sm:$0xff] }
 0x358   :  { %v397_v48 = vadd.f32 %v5807_v9, %v5806_v61 }
 0x359   :  { %v2897_v35 = vmul.f32 -1.442695, %v1373_v63  ;;  %v335_v63 = vadd.f32 %v5808_v60, %v5802_v25 }
 0x35a   :  { %v3039_v37 = vpop.eup %3038  ;;  %v1299_v18 = vpop.f32.mrf.mxu0 }
 0x35b   :  { %v1322_v15 = vpop.f32.mrf.mxu1  ;;  %v3041_v1 = vpop.eup %3040  ;;  %v1397_v17 = vadd.f32 1.0, %v3039_v37  ;;  %3042 = vpow2.f32 %v2897_v35  ;;  %v1375_v3 = vadd.f32 %v1299_v18, %v205_v46  ;;  %v1374_v35 = vadd.f32 %v1365_v21, %v397_v48 }
 0x35c   :  { %v1376_v0 = vadd.f32 %v1322_v15, %v270_v43  ;;  %v1398_v8 = vadd.f32 1.0, %v3041_v1 }
 0x35d   :  { %3044 = vrcp.f32 %v1397_v17  ;;  %v2898_v36 = vmul.f32 -1.442695, %v1375_v3  ;;  %v1412_v25 = vand.u32 2147483647, %v1397_v17  ;;  %vm1408_vm12 = vweird.f32 %v1397_v17 }
 0x35e   :  { %3046 = vrcp.f32 %v1398_v8  ;;  %v2899_v4 = vmul.f32 -1.442695, %v1376_v0  ;;  %v1429_v60 = vand.u32 2147483648, %v1398_v8  ;;  %vm1423_vm11 = vweird.f32 %v1398_v8 }
 0x35f   :  { %3048 = vpow2.f32 %v2898_v36  ;;  %v1414_v36 = vand.u32 2147483648, %v1397_v17  ;;  %vm1413_vm14 = vcmp.eq.f32.partialorder %v1412_v25, 8.507059e+37 }
 0x360   :  { %3050 = vpow2.f32 %v2899_v4  ;;  %v1427_v4 = vand.u32 2147483647, %v1398_v8 }
 0x361   :  { %v3043_v14 = vpop.eup %3042  ;;  %v1345_v27 = vpop.f32.mrf.mxu2 }
 0x362   :  { %v4886_v20 = vadd.f32 1.0, %v3043_v14  ;;  %v1377_v46 = vadd.f32 %v1345_v27, %v335_v63  ;;  %vm1428_vm0 = vcmp.eq.f32.partialorder %v1427_v4, 8.507059e+37 }
 0x363   :  { %v3045_v43 = vpop.eup %3044 }
 0x364   :  { %v3047_v37 = vpop.eup %3046  ;;  %v1404_v18 = vmul.f32 %v3045_v43, %v1397_v17  ;;  %3052 = vrcp.f32 %v4886_v20  ;;  %v2900_v3 = vmul.f32 -1.442695, %v1377_v46  ;;  %vm1409_vm9 = vweird.f32 %v3045_v43  ;;  %v1368_v17 = vpop.f32.mrf.mxu3 }
 0x365   :  { %v1419_v15 = vmul.f32 %v3047_v37, %v1398_v8  ;;  %3054 = vtanh.f32 %v1374_v35  ;;  %v3049_v0 = vpop.eup %3048  ;;  %vm1424_vm10 = vweird.f32 %v3047_v37  ;;  %vm1410_vm13 = vmor %vm1408_vm12, %vm1409_vm9  ;;  %v1442_v54 = vand.u32 2147483647, %v4886_v20 }
 0x366   :  { %v1405_v1 = vsub.f32 1.0, %v1404_v18  ;;  %v3051_v2 = vpop.eup %3050  ;;  %v4889_v21 = vadd.f32 1.0, %v3049_v0  ;;  %3056 = vpow2.f32 %v2900_v3  ;;  %v1415_v18 = vor.u32 1.1754944e-38, %v1414_v36  ;;  %vm1425_vm15 = vmor %vm1423_vm11, %vm1424_vm10 }
 0x367   :  { %v1420_v9 = vsub.f32 1.0, %v1419_v15  ;;  %v4891_v48 = vadd.f32 1.0, %v3051_v2  ;;  %v1430_v2 = vor.u32 1.1754944e-38, %v1429_v60  ;;  %vm1438_vm2 = vweird.f32 %v4886_v20 }
 0x368   :  { %v1406_v14 = vmul.f32 %v3045_v43, %v1405_v1  ;;  %3058 = vrcp.f32 %v4889_v21  ;;  %vm4928_vm5 = vcmp.eq.f32.partialorder %v1442_v54, 8.507059e+37  ;;  %vm1453_vm8 = vweird.f32 %v4889_v21 }
 0x369   :  { %v1421_v27 = vmul.f32 %v3047_v37, %v1420_v9  ;;  %3060 = vrcp.f32 %v4891_v48  ;;  %vm1468_vm7 = vweird.f32 %v4891_v48 }
 0x36a   :  { %v4893_v63 = vpop.eup %3052  ;;  %v1407_v35 = vadd.f32 %v3045_v43, %v1406_v14 }
 0x36b   :  { %v1434_v46 = vmul.f32 %v4893_v63, %v4886_v20  ;;  %v1422_v15 = vadd.f32 %v3047_v37, %v1421_v27  ;;  %v3055_v1 = vpop.eup %3054  ;;  %vm1439_vm1 = vweird.f32 %v4893_v63 }
 0x36c   :  { %v1411_v3 = vsel %vm1410_vm13, %v3045_v43, %v1407_v35  ;;  %v3057_v14 = vpop.eup %3056  ;;  %v1378_v35 = vadd.f32 %v1368_v17, %v400_v6  ;;  %v1457_v6 = vand.u32 2147483647, %v4889_v21  ;;  %vm4919_vm3 = vmor %vm1438_vm2, %vm1439_vm1 }
 0x36d   :  { %v1435_v0 = vsub.f32 1.0, %v1434_v46  ;;  %v1416_v8 = vsel %vm1413_vm14, %v1415_v18, %v1411_v3  ;;  %v1426_v9 = vsel %vm1425_vm15, %v3047_v37, %v1422_v15  ;;  %v4904_v43 = vadd.f32 1.0, %v3057_v14 }
 0x36e   :  { %v1431_v34 = vsel %vm1428_vm0, %v1430_v2, %v1426_v9  ;;  %v1497_v36 = vmul.f32 %v3055_v1, %v1416_v8  ;;  %v3059_v25 = vpop.eup %3058  ;;  %v1459_v15 = vand.u32 2147483648, %v4889_v21  ;;  %v1474_v3 = vand.u32 2147483648, %v4891_v48 }
 0x36f   :  { %v1436_v27 = vmul.f32 %v4893_v63, %v1435_v0  ;;  %v1495_v56 = vmul.f32 %v1431_v34, %v4762_v52  ;;  %v3061_v60 = vpop.eup %3060  ;;  %v1449_v37 = vmul.f32 %v3059_v25, %v4889_v21  ;;  %3062 = vrcp.f32 %v4904_v43 }
 0x370   :  { %v1464_v18 = vmul.f32 %v3061_v60, %v4891_v48  ;;  %v1444_v52 = vand.u32 2147483648, %v4886_v20  ;;  %vm1454_vm4 = vweird.f32 %v3059_v25  ;;  %v1472_v0 = vand.u32 2147483647, %v4891_v48 }
 0x371   :  { %v4906_v46 = vadd.f32 %v1497_v36, %v1495_v56  ;;  %v1437_v4 = vadd.f32 %v4893_v63, %v1436_v27  ;;  %v1450_v56 = vsub.f32 1.0, %v1449_v37  ;;  %vm1469_vm6 = vweird.f32 %v3061_v60  ;;  %vm1455_vm9 = vmor %vm1453_vm8, %vm1454_vm4 }
 0x372   :  { %v1465_v34 = vsub.f32 1.0, %v1464_v18  ;;  %v1445_v14 = vor.u32 1.1754944e-38, %v1444_v52  ;;  %vm1458_vm10 = vcmp.eq.f32.partialorder %v1457_v6, 8.507059e+37  ;;  %vm1470_vm11 = vmor %vm1468_vm7, %vm1469_vm6  ;;  %vm1473_vm12 = vcmp.eq.f32.partialorder %v1472_v0, 8.507059e+37  ;;  %v4958_v0 = vld [vmem:[#allocation6 + $0x1f0] sm:$0xff] }
 0x373   :  { %3064 = vtanh.f32 %v4906_v46  ;;  %v1451_v2 = vmul.f32 %v3059_v25, %v1450_v56  ;;  %v1441_v20 = vsel %vm4919_vm3, %v4893_v63, %v1437_v4  ;;  %v1460_v63 = vor.u32 1.1754944e-38, %v1459_v15 }
 0x374   :  { %3066 = vtanh.f32 %v1378_v35  ;;  %v1466_v9 = vmul.f32 %v3061_v60, %v1465_v34  ;;  %v1475_v54 = vor.u32 1.1754944e-38, %v1474_v3  ;;  %v1446_v18 = vsel %vm4928_vm5, %v1445_v14, %v1441_v20  ;;  %v4950_v3 = vld [vmem:[#allocation6 + $0x1e0] sm:$0xff]  ;;  %v4961_v20 = vld [vmem:[#allocation6 + $0x1f8] sm:$0xff]  ;;  %v4969_v14 = vld [vmem:[#allocation6 + $0x1c8] sm:$0xff] }
 0x375   :  { %v4932_v17 = vpop.eup %3062  ;;  %v1452_v36 = vadd.f32 %v3059_v25, %v1451_v2  ;;  %v1489_v8 = vand.u32 2147483648, %v4904_v43  ;;  %vm1483_vm14 = vweird.f32 %v4904_v43 }
 0x376   :  { %v1479_v27 = vmul.f32 %v4932_v17, %v4904_v43  ;;  %v1467_v35 = vadd.f32 %v3061_v60, %v1466_v9  ;;  %vm1484_vm13 = vweird.f32 %v4932_v17  ;;  %v4966_v9 = vld [vmem:[#allocation6 + $0x1c0] sm:$0xff] }
 0x377   :  { %v1456_v4 = vsel %vm1455_vm9, %v3059_v25, %v1452_v36  ;;  %v1487_v36 = vand.u32 2147483647, %v4904_v43  ;;  %vm4982_vm15 = vmor %vm1483_vm14, %vm1484_vm13 }
 0x378   :  { %v1480_v48 = vsub.f32 1.0, %v1479_v27  ;;  %v1461_v56 = vsel %vm1458_vm10, %v1460_v63, %v1456_v4  ;;  %v1471_v34 = vsel %vm1470_vm11, %v3061_v60, %v1467_v35  ;;  %v4953_v60 = vld [vmem:[#allocation6 + $0x1e8] sm:$0xff]  ;;  %v4974_v27 = vld [vmem:[#allocation6 + $0x1d0] sm:$0xff]  ;;  %v4977_v63 = vld [vmem:[#allocation6 + $0x1d8] sm:$0xff] }
 0x379   :  { %v3065_v37 = vpop.eup %3064  ;;  %v1476_v1 = vsel %vm1473_vm12, %v1475_v54, %v1471_v34  ;;  %v4989_v4 = vld [vmem:[#allocation6 + $0x1a8] sm:$0xff]  ;;  %v4995_v54 = vld [vmem:[#allocation6 + $0x1b0] sm:$0xff]  ;;  %vm1488_vm0 = vcmp.eq.f32.partialorder %v1487_v36, 8.507059e+37  ;;  %v5025_v36 = vld [vmem:[#allocation6 + $0x140] sm:$0xff] }
 0x37a   :  { %v3067_v52 = vpop.eup %3066  ;;  %v4940_v21 = vmul.f32 %v3065_v37, %v1446_v18  ;;  %v1481_v6 = vmul.f32 %v4932_v17, %v1480_v48  ;;  %v1496_v15 = vmul.f32 %v1476_v1, %v4792_v44  ;;  %v4986_v37 = vld [vmem:[#allocation6 + $0x1a0] sm:$0xff]  ;;  %v4998_v18 = vld [vmem:[#allocation6 + $0x1b8] sm:$0xff]  ;;  %v5007_v34 = vld [vmem:[#allocation6 + $0x190] sm:$0xff] }
 0x37b   :  { %v1498_v2 = vmul.f32 %v3067_v52, %v1461_v56  ;;  %v1490_v52 = vor.u32 1.1754944e-38, %v1489_v8  ;;  %v5001_v48 = vld [vmem:[#allocation6 + $0x180] sm:$0xff]  ;;  %v5004_v56 = vld [vmem:[#allocation6 + $0x188] sm:$0xff]  ;;  %v5021_v8 = vld [vmem:[#allocation6 + $0x170] sm:$0xff] }
 0x37c   :  { %1533 = vmatmul.f32.vlgmr.msrb.gmra.mxu0 %v4940_v21  ;;  %1556 = vmatmul.f32.vlgmr.msrb.gmra.mxu1 %v4940_v21  ;;  %v1482_v44 = vadd.f32 %v4932_v17, %v1481_v6  ;;  %v5013_v6 = vld [vmem:[#allocation6 + $0x160] sm:$0xff]  ;;  %v5028_v35 = vld [vmem:[#allocation6 + $0x148] sm:$0xff] }
 0x37d   :  { %1579 = vmatmul.f32.vlgmr.msra.gmra.mxu2 %v4940_v21  ;;  %1602 = vmatmul.f32.vlgmr.msra.gmra.mxu3 %v4940_v21  ;;  %v4948_v25 = vadd.f32 %v1498_v2, %v1496_v15  ;;  %v5016_v15 = vld [vmem:[#allocation6 + $0x168] sm:$0xff] }
 0x37e   :  { %1993 = vmatpush.msrb.mxu0 %v4950_v3  ;;  %2016 = vmatpush.msrb.mxu1 %v4953_v60  ;;  %v1486_v43 = vsel %vm4982_vm15, %v4932_v17, %v1482_v44  ;;  %v5010_v17 = vld [vmem:[#allocation6 + $0x198] sm:$0xff] }
 0x37f   :  { %2039 = vmatpush.msra.mxu2 %v4958_v0  ;;  %2062 = vmatpush.msra.mxu3 %v4961_v20  ;;  %3068 = vtanh.f32 %v4948_v25  ;;  %v1491_v2 = vsel %vm1488_vm0, %v1490_v52, %v1486_v43  ;;  %v5040_v43 = vld [vmem:[#allocation6 + $0x128] sm:$0xff]  ;;  %v5045_v52 = vld [vmem:[#allocation6 + $0x100] sm:$0xff] }
 0x380   :  { %1994 = vmatpush.msrb.mxu0 %v4966_v9  ;;  %2017 = vmatpush.msrb.mxu1 %v4969_v14 }
 0x381   :  { %2040 = vmatpush.msra.mxu2 %v4974_v27  ;;  %2063 = vmatpush.msra.mxu3 %v4977_v63 }
 0x382   :  { %1995 = vmatpush.msrb.mxu0 %v4986_v37  ;;  %2018 = vmatpush.msrb.mxu1 %v4989_v4 }
 0x383   :  { %2041 = vmatpush.msra.mxu2 %v4995_v54  ;;  %2064 = vmatpush.msra.mxu3 %v4998_v18 }
 0x384   :  { %1996 = vmatpush.msrb.mxu0 %v5001_v48  ;;  %2019 = vmatpush.msrb.mxu1 %v5004_v56 }
 0x385   :  { %2042 = vmatpush.msra.mxu2 %v5007_v34  ;;  %2065 = vmatpush.msra.mxu3 %v5010_v17  ;;  %v3069_v1 = vpop.eup %3068 }
 0x386   :  { %1997 = vmatpush.msrb.mxu0 %v5013_v6  ;;  %2020 = vmatpush.msrb.mxu1 %v5016_v15  ;;  %v5019_v44 = vmul.f32 %v3069_v1, %v1491_v2  ;;  %v5048_v1 = vld [vmem:[#allocation6 + $0x108] sm:$0xff] }
 0x387   :  { %2043 = vmatpush.msra.mxu2 %v5021_v8  ;;  %2066 = vmatpush.msra.mxu3 %v4604_v7  ;;  %v5037_v7 = vld [vmem:[#allocation6 + $0x120] sm:$0xff] }
 0x388   :  { %1998 = vmatpush.msrb.mxu0 %v5025_v36  ;;  %2021 = vmatpush.msrb.mxu1 %v5028_v35 }
 0x389   :  { %1536 = vmatmul.f32.gmra.mxu0 %v5019_v44  ;;  %1559 = vmatmul.f32.gmra.mxu1 %v5019_v44 }
 0x38a   :  { %1582 = vmatmul.f32.gmra.mxu2 %v5019_v44  ;;  %1605 = vmatmul.f32.gmra.mxu3 %v5019_v44 }
 0x38b   :  { %2044 = vmatpush.msra.mxu2 %v4609_v16  ;;  %2067 = vmatpush.msra.mxu3 %v4612_v53  ;;  %v5053_v16 = vld [vmem:[#allocation6 + $0xe0] sm:$0xff]  ;;  %v5056_v53 = vld [vmem:[#allocation6 + $0xe8] sm:$0xff] }
 0x38c   :  { %1999 = vmatpush.msrb.mxu0 %v5037_v7  ;;  %2022 = vmatpush.msrb.mxu1 %v5040_v43 }
 0x38d   :  { %2045 = vmatpush.msra.mxu2 %v4617_v55  ;;  %2068 = vmatpush.msra.mxu3 %v4620_v10  ;;  %v5816_v55 = vld [vmem:[#allocation107_spill] sm:$0xff]  ;;  %v5817_v10 = vld [vmem:[#allocation108_spill] sm:$0xff] }
 0x38e   :  { %2000 = vmatpush.msrb.mxu0 %v5045_v52  ;;  %2023 = vmatpush.msrb.mxu1 %v5048_v1 }
 0x38f   :  { %2046 = vmatpush.msra.mxu2 %v4625_v33  ;;  %2069 = vmatpush.msra.mxu3 %v4628_v30  ;;  %v5818_v33 = vld [vmem:[#allocation109_spill] sm:$0xff]  ;;  %v5819_v30 = vld [vmem:[#allocation72_spill] sm:$0xff] }
 0x390   :  { %2001 = vmatpush.msrb.mxu0 %v5053_v16  ;;  %2024 = vmatpush.msrb.mxu1 %v5056_v53 }
 0x391   :  { %2047 = vmatpush.msra.mxu2 %v5768_v26  ;;  %2070 = vmatpush.msra.mxu3 %v5769_v39  ;;  %v5820_v26 = vld [vmem:[#allocation31_spill] sm:$0xff] }
 0x392   :  { %2002 = vmatpush.msrb.mxu0 %v5770_v5  ;;  %2025 = vmatpush.msrb.mxu1 %v5771_v13  ;;  %v208_v39 = vadd.f32 %v5820_v26, %v5819_v30  ;;  %v5821_v5 = vld [vmem:[#allocation73_spill] sm:$0xff]  ;;  %v5822_v13 = vld [vmem:[#allocation32_spill] sm:$0xff] }
 0x393   :  { %2048 = vmatpush.msra.mxu2 %v5772_v12  ;;  %2071 = vmatpush.msra.mxu3 %v5773_v11  ;;  %v273_v12 = vadd.f32 %v5822_v13, %v5821_v5 }
 0x394   :  { %2003 = vmatpush.msrb.mxu0 %v5774_v38  ;;  %2026 = vmatpush.msrb.mxu1 %v5775_v23 }
 0x395   :  { %2049 = vmatpush.msra.mxu2 %v5776_v32  ;;  %2072 = vmatpush.msra.mxu3 %v5777_v29 }
 0x396   :  { %2004 = vmatpush.msrb.mxu0 %v5778_v40  ;;  %2027 = vmatpush.msrb.mxu1 %v5779_v19  ;;  %v5823_v19 = vld [vmem:[#allocation84_spill] sm:$0xff] }
 0x397   :  { %2050 = vmatpush.msra.mxu2 %v5780_v41  ;;  %2073 = vmatpush.msra.mxu3 %v5781_v49  ;;  %v5824_v41 = vld [vmem:[#allocation62_spill] sm:$0xff] }
 0x398   :  { %2005 = vmatpush.msrb.mxu0 %v5782_v31  ;;  %2028 = vmatpush.msrb.mxu1 %v5783_v22  ;;  %v338_v49 = vadd.f32 %v5824_v41, %v5823_v19 }
 0x399   :  { %2051 = vmatpush.msra.mxu2 %v5784_v42  ;;  %2074 = vmatpush.msra.mxu3 %v5785_v51 }
 0x39a   :  { %2006 = vmatpush.msrb.mxu0 %v5786_v50  ;;  %2029 = vmatpush.msrb.mxu1 %v5787_v58 }
 0x39b   :  { %2052 = vmatpush.msra.mxu2 %v5788_v47  ;;  %2075 = vmatpush.msra.mxu3 %v5789_v62 }
 0x39c   :  { %2007 = vmatpush.msrb.mxu0 %v5790_v57  ;;  %2030 = vmatpush.msrb.mxu1 %v5791_v24  ;;  %v5825_v24 = vld [vmem:[#allocation33_spill] sm:$0xff] }
 0x39d   :  { %2053 = vmatpush.msra.mxu2 %v5792_v45  ;;  %2076 = vmatpush.msra.mxu3 %v5793_v59  ;;  %v211_v45 = vadd.f32 %v5825_v24, %v5819_v30  ;;  %v5826_v59 = vld [vmem:[#allocation34_spill] sm:$0xff] }
 0x39e   :  { %2008 = vmatpush.msrb.mxu0 %v5794_v28  ;;  %2031 = vmatpush.msrb.mxu1 %v5816_v55  ;;  %v276_v28 = vadd.f32 %v5826_v59, %v5821_v5  ;;  %v5827_v55 = vld [vmem:[#allocation63_spill] sm:$0xff] }
 0x39f   :  { %2054 = vmatpush.msra.mxu2 %v5817_v10  ;;  %2077 = vmatpush.msra.mxu3 %v5818_v33  ;;  %v403_v10 = vadd.f32 %v5827_v55, %v5806_v61 }
 0x3f9   :  { %v1534_v11 = vpop.f32.mrf.mxu0  ;;  %v1557_v38 = vpop.f32.mrf.mxu1 }
 0x3fa   :  { %v1609_v23 = vadd.f32 %v1534_v11, %v208_v39  ;;  %v1610_v32 = vadd.f32 %v1557_v38, %v273_v12 }
 0x3fc   :  { %v2901_v29 = vmul.f32 -1.442695, %v1609_v23  ;;  %v2902_v40 = vmul.f32 -1.442695, %v1610_v32 }
 0x3fe   :  { %3070 = vpow2.f32 %v2901_v29 }
 0x3ff   :  { %3072 = vpow2.f32 %v2902_v40  ;;  %v5828_v40 = vld [vmem:[#allocation66_spill] sm:$0xff] }
 0x400   :  { %v1580_v31 = vpop.f32.mrf.mxu2  ;;  %v1603_v2 = vpop.f32.mrf.mxu3  ;;  %v341_v41 = vadd.f32 %v5828_v40, %v5823_v19 }
 0x401   :  { %v1611_v22 = vadd.f32 %v1580_v31, %v338_v49  ;;  %v1612_v13 = vadd.f32 %v1603_v2, %v403_v10 }
 0x403   :  { %v2903_v42 = vmul.f32 -1.442695, %v1611_v22 }
 0x404   :  { %v3071_v51 = vpop.eup %3070 }
 0x405   :  { %v3073_v50 = vpop.eup %3072  ;;  %v1635_v58 = vadd.f32 1.0, %v3071_v51  ;;  %3074 = vpow2.f32 %v2903_v42 }
 0x406   :  { %v1636_v47 = vadd.f32 1.0, %v3073_v50  ;;  %v1537_v62 = vpop.f32.mrf.mxu0  ;;  %v1560_v57 = vpop.f32.mrf.mxu1 }
 0x407   :  { %3076 = vrcp.f32 %v1635_v58  ;;  %v1613_v33 = vadd.f32 %v1537_v62, %v211_v45  ;;  %v1614_v26 = vadd.f32 %v1560_v57, %v276_v28  ;;  %v1650_v62 = vand.u32 2147483647, %v1635_v58 }
 0x408   :  { %3078 = vrcp.f32 %v1636_v47  ;;  %v1667_v50 = vand.u32 2147483648, %v1636_v47  ;;  %v1652_v57 = vand.u32 2147483648, %v1635_v58  ;;  %v1665_v45 = vand.u32 2147483647, %v1636_v47 }
 0x409   :  { %v2904_v12 = vmul.f32 -1.442695, %v1613_v33  ;;  %v2905_v38 = vmul.f32 -1.442695, %v1614_v26  ;;  %vm1646_vm3 = vweird.f32 %v1635_v58  ;;  %vm1661_vm4 = vweird.f32 %v1636_v47 }
 0x40a   :  { %vm1651_vm6 = vcmp.eq.f32.partialorder %v1650_v62, 8.507059e+37  ;;  %vm1666_vm8 = vcmp.eq.f32.partialorder %v1665_v45, 8.507059e+37 }
 0x40b   :  { %v3075_v39 = vpop.eup %3074  ;;  %3080 = vpow2.f32 %v2904_v12 }
 0x40c   :  { %v5101_v11 = vadd.f32 1.0, %v3075_v39 }
 0x40d   :  { %v3077_v23 = vpop.eup %3076  ;;  %v1583_v32 = vpop.f32.mrf.mxu2 }
 0x40e   :  { %v3079_v29 = vpop.eup %3078  ;;  %v1642_v49 = vmul.f32 %v3077_v23, %v1635_v58  ;;  %3082 = vrcp.f32 %v5101_v11  ;;  %v1615_v42 = vadd.f32 %v1583_v32, %v341_v41  ;;  %vm1647_vm1 = vweird.f32 %v3077_v23  ;;  %v1606_v62 = vpop.f32.mrf.mxu3 }
 0x40f   :  { %v1657_v31 = vmul.f32 %v3079_v29, %v1636_v47  ;;  %3084 = vtanh.f32 %v1612_v13  ;;  %vm1662_vm2 = vweird.f32 %v3079_v29  ;;  %vm1648_vm5 = vmor %vm1646_vm3, %vm1647_vm1  ;;  %v1653_v13 = vor.u32 1.1754944e-38, %v1652_v57 }
 0x410   :  { %v1643_v22 = vsub.f32 1.0, %v1642_v49  ;;  %3086 = vpow2.f32 %v2905_v38  ;;  %v2906_v59 = vmul.f32 -1.442695, %v1615_v42  ;;  %vm1663_vm7 = vmor %vm1661_vm4, %vm1662_vm2  ;;  %v1668_v32 = vor.u32 1.1754944e-38, %v1667_v50  ;;  %v5829_v50 = vld [vmem:[#allocation67_spill] sm:$0xff] }
 0x411   :  { %v1658_v51 = vsub.f32 1.0, %v1657_v31  ;;  %v3081_v28 = vpop.eup %3080  ;;  %vm1676_vm10 = vweird.f32 %v5101_v11 }
 0x412   :  { %v1644_v24 = vmul.f32 %v3077_v23, %v1643_v22  ;;  %v5106_v33 = vadd.f32 1.0, %v3081_v28  ;;  %3088 = vpow2.f32 %v2906_v59 }
 0x413   :  { %v1659_v2 = vmul.f32 %v3079_v29, %v1658_v51 }
 0x414   :  { %v3083_v55 = vpop.eup %3082  ;;  %v1645_v10 = vadd.f32 %v3077_v23, %v1644_v24  ;;  %3090 = vrcp.f32 %v5106_v33  ;;  %vm1691_vm14 = vweird.f32 %v5106_v33 }
 0x415   :  { %v3085_v26 = vpop.eup %3084  ;;  %v1672_v39 = vmul.f32 %v3083_v55, %v5101_v11  ;;  %v1660_v12 = vadd.f32 %v3079_v29, %v1659_v2  ;;  %vm1677_vm9 = vweird.f32 %v3083_v55  ;;  %v1682_v2 = vand.u32 2147483648, %v5101_v11 }
 0x416   :  { %v3087_v38 = vpop.eup %3086  ;;  %v1649_v40 = vsel %vm1648_vm5, %v3077_v23, %v1645_v10  ;;  %v406_v23 = vadd.f32 %v5829_v50, %v5806_v61  ;;  %v1680_v10 = vand.u32 2147483647, %v5101_v11  ;;  %vm5126_vm11 = vmor %vm1676_vm10, %vm1677_vm9  ;;  %v1695_v11 = vand.u32 2147483647, %v5106_v33 }
 0x417   :  { %v1673_v58 = vsub.f32 1.0, %v1672_v39  ;;  %v1654_v47 = vsel %vm1651_vm6, %v1653_v13, %v1649_v40  ;;  %v1664_v41 = vsel %vm1663_vm7, %v3079_v29, %v1660_v12  ;;  %v5110_v49 = vadd.f32 1.0, %v3087_v38 }
 0x418   :  { %v1669_v31 = vsel %vm1666_vm8, %v1668_v32, %v1664_v41  ;;  %v1735_v22 = vmul.f32 %v3085_v26, %v1654_v47  ;;  %v3089_v57 = vpop.eup %3088  ;;  %v1616_v28 = vadd.f32 %v1606_v62, %v406_v23  ;;  %v1697_v12 = vand.u32 2147483648, %v5106_v33 }
 0x419   :  { %v1674_v42 = vmul.f32 %v3083_v55, %v1673_v58  ;;  %v1733_v51 = vmul.f32 %v1669_v31, %v4906_v46  ;;  %3092 = vrcp.f32 %v5110_v49  ;;  %v5118_v45 = vadd.f32 1.0, %v3089_v57 }
 0x41a   :  { %v3091_v59 = vpop.eup %3090  ;;  %v1683_v40 = vor.u32 1.1754944e-38, %v1682_v2  ;;  %vm1681_vm13 = vcmp.eq.f32.partialorder %v1680_v10, 8.507059e+37  ;;  %v1712_v31 = vand.u32 2147483648, %v5110_v49  ;;  %v1710_v57 = vand.u32 2147483647, %v5110_v49 }
 0x41b   :  { %v5116_v24 = vadd.f32 %v1735_v22, %v1733_v51  ;;  %v1675_v29 = vadd.f32 %v3083_v55, %v1674_v42  ;;  %v1687_v46 = vmul.f32 %v3091_v59, %v5106_v33  ;;  %vm1692_vm12 = vweird.f32 %v3091_v59 }
 0x41c   :  { %v1698_v42 = vor.u32 1.1754944e-38, %v1697_v12  ;;  %vm1693_vm0 = vmor %vm1691_vm14, %vm1692_vm12  ;;  %vm1696_vm1 = vcmp.eq.f32.partialorder %v1695_v11, 8.507059e+37  ;;  %vm1706_vm2 = vweird.f32 %v5110_v49  ;;  %vm1711_vm4 = vcmp.eq.f32.partialorder %v1710_v57, 8.507059e+37  ;;  %v3319_v11 = vld [vmem:[#allocation6 + $0x48] sm:$0xff]  ;;  %v3328_v57 = vld [vmem:[#allocation6 + $0x30] sm:$0xff] }
 0x41d   :  { %3094 = vtanh.f32 %v5116_v24  ;;  %v1688_v13 = vsub.f32 1.0, %v1687_v46  ;;  %v1679_v38 = vsel %vm5126_vm11, %v3083_v55, %v1675_v29  ;;  %v1713_v46 = vor.u32 1.1754944e-38, %v1712_v31  ;;  %v3322_v31 = vld [vmem:[#allocation6 + $0x20] sm:$0xff] }
 0x41e   :  { %3096 = vrcp.f32 %v5118_v45  ;;  %v1684_v51 = vsel %vm1681_vm13, %v1683_v40, %v1679_v38  ;;  %vm1721_vm6 = vweird.f32 %v5118_v45  ;;  %v3315_v38 = vld [vmem:[#allocation6 + $0x68] sm:$0xff]  ;;  %v3317_v40 = vld [vmem:[#allocation6 + $0x98] sm:$0xff] }
 0x41f   :  { %v3093_v26 = vpop.eup %3092  ;;  %3098 = vtanh.f32 %v1616_v28  ;;  %v1689_v58 = vmul.f32 %v3091_v59, %v1688_v13 }
 0x420   :  { %v1702_v32 = vmul.f32 %v3093_v26, %v5110_v49  ;;  %vm1707_vm15 = vweird.f32 %v3093_v26 }
 0x421   :  { %v1690_v22 = vadd.f32 %v3091_v59, %v1689_v58  ;;  %vm1708_vm3 = vmor %vm1706_vm2, %vm1707_vm15  ;;  %v3318_v58 = vld [vmem:[#allocation6 + $0x40] sm:$0xff] }
 0x422   :  { %v1703_v47 = vsub.f32 1.0, %v1702_v32  ;;  %v3316_v32 = vld [vmem:[#allocation6 + $0x90] sm:$0xff] }
 0x423   :  { %v3095_v41 = vpop.eup %3094  ;;  %v1694_v29 = vsel %vm1693_vm0, %v3091_v59, %v1690_v22  ;;  %v3323_v22 = vld [vmem:[#allocation6 + $0x28] sm:$0xff] }
 0x424   :  { %v5137_v62 = vpop.eup %3096  ;;  %v1704_v55 = vmul.f32 %v3093_v26, %v1703_v47  ;;  %v5140_v50 = vmul.f32 %v3095_v41, %v1684_v51  ;;  %v1699_v28 = vsel %vm1696_vm1, %v1698_v42, %v1694_v29  ;;  %v3320_v47 = vld [vmem:[#allocation6 + $0x70] sm:$0xff]  ;;  %v3321_v41 = vld [vmem:[#allocation6 + $0x78] sm:$0xff] }
 0x425   :  { %v1717_v23 = vmul.f32 %v5137_v62, %v5118_v45  ;;  %v3099_v33 = vpop.eup %3098  ;;  %vm1722_vm5 = vweird.f32 %v5137_v62  ;;  %v3324_v42 = vld [vmem:[#allocation6 + $0x50] sm:$0xff]  ;;  %v3325_v51 = vld [vmem:[#allocation6 + $0x58] sm:$0xff] }
 0x426   :  { %v1705_v2 = vadd.f32 %v3093_v26, %v1704_v55  ;;  %1771 = vmatmul.f32.vlgmr.msra.gmra.mxu0 %v5140_v50  ;;  %1794 = vmatmul.f32.vlgmr.msra.gmra.mxu1 %v5140_v50  ;;  %v1736_v39 = vmul.f32 %v3099_v33, %v1699_v28  ;;  %vm5175_vm7 = vmor %vm1721_vm6, %vm1722_vm5  ;;  %v3327_v55 = vld [vmem:[#allocation6 + $0x8] sm:$0xff]  ;;  %v3330_v29 = vld [vmem:[#allocation6 + $0x10] sm:$0xff] }
 0x427   :  { %v1718_v10 = vsub.f32 1.0, %v1717_v23  ;;  %1817 = vmatmul.f32.vlgmr.msrb.gmra.mxu2 %v5140_v50  ;;  %1840 = vmatmul.f32.vlgmr.msrb.gmra.mxu3 %v5140_v50  ;;  %v3329_v23 = vld [vmem:[#allocation6 + $0x38] sm:$0xff]  ;;  %v5834_v28 = vld [vmem:[#allocation35_spill] sm:$0xff] }
 0x428   :  { %v1709_v13 = vsel %vm1708_vm3, %v3093_v26, %v1705_v2  ;;  %2231 = vmatpush.msra.mxu0 %v4950_v3  ;;  %2254 = vmatpush.msra.mxu1 %v4953_v60  ;;  %v3314_v26 = vld [vmem:[#allocation6 + $0x60] sm:$0xff]  ;;  %v3331_v33 = vld [vmem:[#allocation6 + $0x18] sm:$0xff]  ;;  %v214_v2 = vadd.f32 %v5834_v28, %v5819_v30 }
 0x429   :  { %v1719_v49 = vmul.f32 %v5137_v62, %v1718_v10  ;;  %v1714_v59 = vsel %vm1711_vm4, %v1713_v46, %v1709_v13  ;;  %2277 = vmatpush.msrb.mxu2 %v4958_v0  ;;  %2300 = vmatpush.msrb.mxu3 %v4961_v20  ;;  %v1725_v0 = vand.u32 2147483647, %v5118_v45  ;;  %v5835_v46 = vld [vmem:[#allocation36_spill] sm:$0xff] }
 0x42a   :  { %v1734_v12 = vmul.f32 %v1714_v59, %v4948_v25  ;;  %2232 = vmatpush.msra.mxu0 %v4966_v9  ;;  %2255 = vmatpush.msra.mxu1 %v4969_v14  ;;  %v1727_v25 = vand.u32 2147483648, %v5118_v45  ;;  %v3295_v14 = vld [vmem:[#allocation6 + $0x178] sm:$0xff]  ;;  %v279_v10 = vadd.f32 %v5835_v46, %v5821_v5 }
 0x42b   :  { %2278 = vmatpush.msrb.mxu2 %v4974_v27  ;;  %2301 = vmatpush.msrb.mxu3 %v4977_v63  ;;  %v1720_v60 = vadd.f32 %v5137_v62, %v1719_v49  ;;  %vm1726_vm8 = vcmp.eq.f32.partialorder %v1725_v0, 8.507059e+37  ;;  %v3296_v63 = vld [vmem:[#allocation6 + $0x150] sm:$0xff]  ;;  %v3313_v45 = vld [vmem:[#allocation6 + $0xb8] sm:$0xff] }
 0x42c   :  { %v5159_v3 = vadd.f32 %v1736_v39, %v1734_v12  ;;  %2233 = vmatpush.msra.mxu0 %v4986_v37  ;;  %2256 = vmatpush.msra.mxu1 %v4989_v4  ;;  %v1728_v27 = vor.u32 1.1754944e-38, %v1727_v25  ;;  %v3297_v37 = vld [vmem:[#allocation6 + $0x158] sm:$0xff]  ;;  %v5836_v25 = vld [vmem:[#allocation70_spill] sm:$0xff] }
 0x42d   :  { %2279 = vmatpush.msrb.mxu2 %v4995_v54  ;;  %2302 = vmatpush.msrb.mxu3 %v4998_v18  ;;  %v1724_v9 = vsel %vm5175_vm7, %v5137_v62, %v1720_v60  ;;  %v3326_v62 = vld [vmem:[#allocation6] sm:$0xff]  ;;  %v344_v0 = vadd.f32 %v5836_v25, %v5823_v19 }
 0x42e   :  { %3100 = vtanh.f32 %v5159_v3  ;;  %2234 = vmatpush.msra.mxu0 %v5001_v48  ;;  %2257 = vmatpush.msra.mxu1 %v5004_v56  ;;  %v1729_v54 = vsel %vm1726_vm8, %v1728_v27, %v1724_v9  ;;  %v3298_v48 = vld [vmem:[#allocation6 + $0x130] sm:$0xff]  ;;  %v3299_v56 = vld [vmem:[#allocation6 + $0x138] sm:$0xff] }
 0x42f   :  { %2280 = vmatpush.msrb.mxu2 %v5007_v34  ;;  %2303 = vmatpush.msrb.mxu3 %v5010_v17  ;;  %v3300_v34 = vld [vmem:[#allocation6 + $0x110] sm:$0xff]  ;;  %v3301_v17 = vld [vmem:[#allocation6 + $0x118] sm:$0xff] }
 0x430   :  { %2235 = vmatpush.msra.mxu0 %v5013_v6  ;;  %2258 = vmatpush.msra.mxu1 %v5016_v15  ;;  %v3302_v6 = vld [vmem:[#allocation6 + $0xc0] sm:$0xff]  ;;  %v3303_v15 = vld [vmem:[#allocation6 + $0xc8] sm:$0xff] }
 0x431   :  { %2281 = vmatpush.msrb.mxu2 %v5021_v8  ;;  %2304 = vmatpush.msrb.mxu3 %v3295_v14  ;;  %v3304_v8 = vld [vmem:[#allocation6 + $0xf0] sm:$0xff] }
 0x432   :  { %2236 = vmatpush.msra.mxu0 %v5025_v36  ;;  %2259 = vmatpush.msra.mxu1 %v5028_v35  ;;  %v3305_v36 = vld [vmem:[#allocation6 + $0xf8] sm:$0xff]  ;;  %v3306_v35 = vld [vmem:[#allocation6 + $0xa0] sm:$0xff] }
 0x433   :  { %2282 = vmatpush.msrb.mxu2 %v3296_v63  ;;  %2305 = vmatpush.msrb.mxu3 %v3297_v37 }
 0x434   :  { %v3101_v4 = vpop.eup %3100  ;;  %2237 = vmatpush.msra.mxu0 %v5037_v7  ;;  %2260 = vmatpush.msra.mxu1 %v5040_v43  ;;  %v3307_v7 = vld [vmem:[#allocation6 + $0xa8] sm:$0xff]  ;;  %v3308_v43 = vld [vmem:[#allocation6 + $0xd0] sm:$0xff] }
 0x435   :  { %v5189_v18 = vmul.f32 %v3101_v4, %v1729_v54  ;;  %2283 = vmatpush.msrb.mxu2 %v3298_v48  ;;  %2306 = vmatpush.msrb.mxu3 %v3299_v56  ;;  %v5837_v48 = vld [vmem:[#allocation38_spill] sm:$0xff] }
 0x436   :  { %2238 = vmatpush.msra.mxu0 %v5045_v52  ;;  %2261 = vmatpush.msra.mxu1 %v5048_v1  ;;  %v3309_v52 = vld [vmem:[#allocation6 + $0xd8] sm:$0xff]  ;;  %v3310_v1 = vld [vmem:[#allocation6 + $0x80] sm:$0xff]  ;;  %v217_v56 = vadd.f32 %v5837_v48, %v5819_v30  ;;  %v5841_v48 = vld [vmem:[#allocation75_spill] sm:$0xff] }
 0x437   :  { %1774 = vmatmul.f32.gmra.mxu0 %v5189_v18  ;;  %1797 = vmatmul.f32.gmra.mxu1 %v5189_v18 }
 0x438   :  { %1820 = vmatmul.f32.gmra.mxu2 %v5189_v18  ;;  %1843 = vmatmul.f32.gmra.mxu3 %v5189_v18 }
 0x439   :  { %2239 = vmatpush.msra.mxu0 %v5053_v16  ;;  %2262 = vmatpush.msra.mxu1 %v5056_v53  ;;  %v3311_v16 = vld [vmem:[#allocation6 + $0x88] sm:$0xff]  ;;  %v3312_v53 = vld [vmem:[#allocation6 + $0xb0] sm:$0xff] }
 0x43a   :  { %2284 = vmatpush.msrb.mxu2 %v3300_v34  ;;  %2307 = vmatpush.msrb.mxu3 %v3301_v17  ;;  %v5838_v34 = vld [vmem:[#allocation39_spill] sm:$0xff] }
 0x43b   :  { %2240 = vmatpush.msra.mxu0 %v3302_v6  ;;  %2263 = vmatpush.msra.mxu1 %v3303_v15  ;;  %v282_v17 = vadd.f32 %v5838_v34, %v5821_v5  ;;  %v5839_v6 = vld [vmem:[#allocation71_spill] sm:$0xff] }
 0x43c   :  { %2285 = vmatpush.msrb.mxu2 %v3304_v8  ;;  %2308 = vmatpush.msrb.mxu3 %v3305_v36  ;;  %v409_v15 = vadd.f32 %v5839_v6, %v5806_v61 }
 0x43d   :  { %2241 = vmatpush.msra.mxu0 %v3306_v35  ;;  %2264 = vmatpush.msra.mxu1 %v3307_v7 }
 0x43e   :  { %2286 = vmatpush.msrb.mxu2 %v3308_v43  ;;  %2309 = vmatpush.msrb.mxu3 %v3309_v52 }
 0x43f   :  { %2242 = vmatpush.msra.mxu0 %v3310_v1  ;;  %2265 = vmatpush.msra.mxu1 %v3311_v16 }
 0x440   :  { %2287 = vmatpush.msrb.mxu2 %v3312_v53  ;;  %2310 = vmatpush.msrb.mxu3 %v3313_v45 }
 0x441   :  { %2243 = vmatpush.msra.mxu0 %v3314_v26  ;;  %2266 = vmatpush.msra.mxu1 %v3315_v38 }
 0x442   :  { %2288 = vmatpush.msrb.mxu2 %v3316_v32  ;;  %2311 = vmatpush.msrb.mxu3 %v3317_v40  ;;  %v5840_v40 = vld [vmem:[#allocation74_spill] sm:$0xff] }
 0x443   :  { %2244 = vmatpush.msra.mxu0 %v3318_v58  ;;  %2267 = vmatpush.msra.mxu1 %v3319_v11  ;;  %v347_v58 = vadd.f32 %v5840_v40, %v5823_v19 }
 0x444   :  { %2289 = vmatpush.msrb.mxu2 %v3320_v47  ;;  %2312 = vmatpush.msrb.mxu3 %v3321_v41 }
 0x445   :  { %2245 = vmatpush.msra.mxu0 %v3322_v31  ;;  %2268 = vmatpush.msra.mxu1 %v3323_v22 }
 0x446   :  { %2290 = vmatpush.msrb.mxu2 %v3324_v42  ;;  %2313 = vmatpush.msrb.mxu3 %v3325_v51 }
 0x447   :  { %2246 = vmatpush.msra.mxu0 %v3326_v62  ;;  %2269 = vmatpush.msra.mxu1 %v3327_v55 }
 0x448   :  { %2291 = vmatpush.msrb.mxu2 %v3328_v57  ;;  %2314 = vmatpush.msrb.mxu3 %v3329_v23 }
 0x44a   :  { %2292 = vmatpush.msrb.mxu2 %v3330_v29  ;;  %2315 = vmatpush.msrb.mxu3 %v3331_v33 }
 0x4a3   :  { %v1772_v39 = vpop.f32.mrf.mxu0  ;;  %v1795_v13 = vpop.f32.mrf.mxu1 }
 0x4a4   :  { %v1847_v49 = vadd.f32 %v1772_v39, %v214_v2  ;;  %v1848_v59 = vadd.f32 %v1795_v13, %v279_v10 }
 0x4a6   :  { %v2907_v12 = vmul.f32 -1.442695, %v1847_v49  ;;  %v2908_v60 = vmul.f32 -1.442695, %v1848_v59 }
 0x4a8   :  { %3102 = vpow2.f32 %v2907_v12 }
 0x4a9   :  { %3104 = vpow2.f32 %v2908_v60 }
 0x4aa   :  { %v1818_v20 = vpop.f32.mrf.mxu2  ;;  %v1841_v54 = vpop.f32.mrf.mxu3 }
 0x4ab   :  { %v1849_v9 = vadd.f32 %v1818_v20, %v344_v0  ;;  %v1850_v7 = vadd.f32 %v1841_v54, %v409_v15 }
 0x4ad   :  { %v2909_v14 = vmul.f32 -1.442695, %v1849_v9 }
 0x4ae   :  { %v3103_v27 = vpop.eup %3102 }
 0x4af   :  { %v3105_v63 = vpop.eup %3104  ;;  %v1873_v37 = vadd.f32 1.0, %v3103_v27  ;;  %3106 = vpow2.f32 %v2909_v14 }
 0x4b0   :  { %v1874_v4 = vadd.f32 1.0, %v3105_v63 }
 0x4b1   :  { %3108 = vrcp.f32 %v1873_v37  ;;  %v1888_v47 = vand.u32 2147483647, %v1873_v37  ;;  %v1890_v22 = vand.u32 2147483648, %v1873_v37  ;;  %vm1884_vm12 = vweird.f32 %v1873_v37 }
 0x4b2   :  { %3110 = vrcp.f32 %v1874_v4  ;;  %v1905_v31 = vand.u32 2147483648, %v1874_v4  ;;  %v1903_v62 = vand.u32 2147483647, %v1874_v4  ;;  %vm1899_vm11 = vweird.f32 %v1874_v4 }
 0x4b3   :  { %vm1889_vm14 = vcmp.eq.f32.partialorder %v1888_v47, 8.507059e+37  ;;  %v1891_v46 = vor.u32 1.1754944e-38, %v1890_v22 }
 0x4b4   :  { %v1775_v8 = vpop.f32.mrf.mxu0  ;;  %v1798_v36 = vpop.f32.mrf.mxu1  ;;  %v1906_v13 = vor.u32 1.1754944e-38, %v1905_v31  ;;  %vm1904_vm0 = vcmp.eq.f32.partialorder %v1903_v62, 8.507059e+37 }
 0x4b5   :  { %v3107_v35 = vpop.eup %3106  ;;  %v1851_v43 = vadd.f32 %v1775_v8, %v217_v56  ;;  %v1852_v52 = vadd.f32 %v1798_v36, %v282_v17  ;;  %v412_v56 = vadd.f32 %v5841_v48, %v5806_v61 }
 0x4b6   :  { %v5211_v1 = vadd.f32 1.0, %v3107_v35 }
 0x4b7   :  { %v3109_v16 = vpop.eup %3108  ;;  %v2910_v53 = vmul.f32 -1.442695, %v1851_v43  ;;  %v2911_v45 = vmul.f32 -1.442695, %v1852_v52 }
 0x4b8   :  { %v3111_v26 = vpop.eup %3110  ;;  %v1880_v38 = vmul.f32 %v3109_v16, %v1873_v37  ;;  %3112 = vrcp.f32 %v5211_v1  ;;  %vm1885_vm9 = vweird.f32 %v3109_v16  ;;  %v1920_v17 = vand.u32 2147483648, %v5211_v1 }
 0x4b9   :  { %v1895_v32 = vmul.f32 %v3111_v26, %v1874_v4  ;;  %3114 = vtanh.f32 %v1850_v7  ;;  %vm1900_vm10 = vweird.f32 %v3111_v26  ;;  %vm1886_vm13 = vmor %vm1884_vm12, %vm1885_vm9  ;;  %vm1914_vm2 = vweird.f32 %v5211_v1 }
 0x4ba   :  { %v1881_v11 = vsub.f32 1.0, %v1880_v38  ;;  %3116 = vpow2.f32 %v2910_v53  ;;  %vm1901_vm15 = vmor %vm1899_vm11, %vm1900_vm10  ;;  %v1921_v43 = vor.u32 1.1754944e-38, %v1920_v17  ;;  %v5844_v17 = vld [vmem:[#allocation76_spill] sm:$0xff] }
 0x4bb   :  { %v1896_v41 = vsub.f32 1.0, %v1895_v32  ;;  %3118 = vpow2.f32 %v2911_v45  ;;  %v1821_v42 = vpop.f32.mrf.mxu2  ;;  %v1844_v4 = vpop.f32.mrf.mxu3 }
 0x4bc   :  { %v1882_v51 = vmul.f32 %v3109_v16, %v1881_v11  ;;  %v1853_v55 = vadd.f32 %v1821_v42, %v347_v58  ;;  %v1854_v15 = vadd.f32 %v1844_v4, %v412_v56 }
 0x4bd   :  { %v1897_v57 = vmul.f32 %v3111_v26, %v1896_v41 }
 0x4be   :  { %v3113_v23 = vpop.eup %3112  ;;  %v1883_v29 = vadd.f32 %v3109_v16, %v1882_v51  ;;  %v2912_v33 = vmul.f32 -1.442695, %v1853_v55 }
 0x4bf   :  { %v3115_v28 = vpop.eup %3114  ;;  %v1910_v2 = vmul.f32 %v3113_v23, %v5211_v1  ;;  %v1898_v10 = vadd.f32 %v3111_v26, %v1897_v57  ;;  %vm1915_vm1 = vweird.f32 %v3113_v23 }
 0x4c0   :  { %v3117_v39 = vpop.eup %3116  ;;  %v1887_v49 = vsel %vm1886_vm13, %v3109_v16, %v1883_v29  ;;  %3120 = vpow2.f32 %v2912_v33  ;;  %vm1916_vm3 = vmor %vm1914_vm2, %vm1915_vm1 }
 0x4c1   :  { %v3119_v59 = vpop.eup %3118  ;;  %v1911_v12 = vsub.f32 1.0, %v1910_v2  ;;  %v1892_v60 = vsel %vm1889_vm14, %v1891_v46, %v1887_v49  ;;  %v1902_v25 = vsel %vm1901_vm15, %v3111_v26, %v1898_v10  ;;  %v1876_v0 = vadd.f32 1.0, %v3117_v39 }
 0x4c2   :  { %v1907_v20 = vsel %vm1904_vm0, %v1906_v13, %v1902_v25  ;;  %v1973_v9 = vmul.f32 %v3115_v28, %v1892_v60  ;;  %v1877_v14 = vadd.f32 1.0, %v3119_v59 }
 0x4c3   :  { %v1912_v27 = vmul.f32 %v3113_v23, %v1911_v12  ;;  %v1971_v63 = vmul.f32 %v1907_v20, %v5116_v24  ;;  %3122 = vrcp.f32 %v1876_v0  ;;  %v1918_v24 = vand.u32 2147483647, %v5211_v1 }
 0x4c4   :  { %3124 = vrcp.f32 %v1877_v14  ;;  %v1950_v26 = vand.u32 2147483648, %v1877_v14  ;;  %v1935_v38 = vand.u32 2147483648, %v1876_v0  ;;  %v1933_v1 = vand.u32 2147483647, %v1876_v0 }
 0x4c5   :  { %v5218_v37 = vadd.f32 %v1973_v9, %v1971_v63  ;;  %v1913_v34 = vadd.f32 %v3113_v23, %v1912_v27  ;;  %vm1919_vm4 = vcmp.eq.f32.partialorder %v1918_v24, 8.507059e+37  ;;  %v1948_v41 = vand.u32 2147483647, %v1877_v14 }
 0x4c6   :  { %v3121_v54 = vpop.eup %3120  ;;  %vm1929_vm7 = vweird.f32 %v1876_v0  ;;  %vm1944_vm8 = vweird.f32 %v1877_v14  ;;  %v1936_v42 = vor.u32 1.1754944e-38, %v1935_v38  ;;  %v1951_v55 = vor.u32 1.1754944e-38, %v1950_v26  ;;  %v2510_v26 = vld [vmem:[#allocation9 + $0xd0] sm:$0xff]  ;;  %v2511_v38 = vld [vmem:[#allocation9 + $0xd8] sm:$0xff] }
 0x4c7   :  { %3126 = vtanh.f32 %v5218_v37  ;;  %v1878_v6 = vadd.f32 1.0, %v3121_v54  ;;  %v1917_v35 = vsel %vm1916_vm3, %v3113_v23, %v1913_v34  ;;  %vm1934_vm11 = vcmp.eq.f32.partialorder %v1933_v1, 8.507059e+37  ;;  %v5845_v1 = vld [vmem:[#allocation43_spill] sm:$0xff] }
 0x4c8   :  { %v1922_v32 = vsel %vm1919_vm4, %v1921_v43, %v1917_v35  ;;  %vm1949_vm12 = vcmp.eq.f32.partialorder %v1948_v41, 8.507059e+37  ;;  %v2515_v35 = vld [vmem:[#allocation9 + $0xf8] sm:$0xff] }
 0x4c9   :  { %v3123_v8 = vpop.eup %3122  ;;  %3128 = vrcp.f32 %v1878_v6  ;;  %v1965_v49 = vand.u32 2147483648, %v1878_v6  ;;  %vm1959_vm14 = vweird.f32 %v1878_v6  ;;  %v1963_v59 = vand.u32 2147483647, %v1878_v6 }
 0x4ca   :  { %v3125_v36 = vpop.eup %3124  ;;  %v1925_v7 = vmul.f32 %v3123_v8, %v1876_v0  ;;  %3130 = vtanh.f32 %v1854_v15  ;;  %vm1930_vm5 = vweird.f32 %v3123_v8 }
 0x4cb   :  { %v1940_v52 = vmul.f32 %v3125_v36, %v1877_v14  ;;  %vm1945_vm6 = vweird.f32 %v3125_v36  ;;  %vm1931_vm9 = vmor %vm1929_vm7, %vm1930_vm5  ;;  %v1966_v60 = vor.u32 1.1754944e-38, %v1965_v49  ;;  %vm1964_vm0 = vcmp.eq.f32.partialorder %v1963_v59, 8.507059e+37  ;;  %v5843_v14 = vld [vmem:[#allocation42_spill] sm:$0xff] }
 0x4cc   :  { %v1926_v16 = vsub.f32 1.0, %v1925_v7  ;;  %vm1946_vm10 = vmor %vm1944_vm8, %vm1945_vm6  ;;  %v285_v27 = vadd.f32 %v5843_v14, %v5821_v5 }
 0x4cd   :  { %v3127_v53 = vpop.eup %3126  ;;  %v1941_v45 = vsub.f32 1.0, %v1940_v52 }
 0x4ce   :  { %v1927_v40 = vmul.f32 %v3123_v8, %v1926_v16  ;;  %v5226_v58 = vmul.f32 %v3127_v53, %v1922_v32  ;;  %v2512_v16 = vld [vmem:[#allocation9 + $0xe0] sm:$0xff]  ;;  %v2513_v53 = vld [vmem:[#allocation9 + $0xe8] sm:$0xff] }
 0x4cf   :  { %v3129_v11 = vpop.eup %3128  ;;  %v1942_v47 = vmul.f32 %v3125_v36, %v1941_v45  ;;  %v2508_v32 = vld [vmem:[#allocation9 + $0xc0] sm:$0xff] }
 0x4d0   :  { %v1955_v31 = vmul.f32 %v3129_v11, %v1878_v6  ;;  %v1928_v22 = vadd.f32 %v3123_v8, %v1927_v40  ;;  %2009 = vmatmul.f32.vlgmr.msrb.gmra.mxu0 %v5226_v58  ;;  %2032 = vmatmul.f32.vlgmr.msrb.gmra.mxu1 %v5226_v58  ;;  %v3131_v62 = vpop.eup %3130  ;;  %vm1960_vm13 = vweird.f32 %v3129_v11  ;;  %v350_v6 = vadd.f32 %v5844_v17, %v5823_v19  ;;  %v2509_v40 = vld [vmem:[#allocation9 + $0xc8] sm:$0xff] }
 0x4d1   :  { %v1943_v51 = vadd.f32 %v3125_v36, %v1942_v47  ;;  %2055 = vmatmul.f32.vlgmr.msra.gmra.mxu2 %v5226_v58  ;;  %2078 = vmatmul.f32.vlgmr.msra.gmra.mxu3 %v5226_v58  ;;  %vm1961_vm15 = vmor %vm1959_vm14, %vm1960_vm13  ;;  %v5846_v47 = vld [vmem:[#allocation44_spill] sm:$0xff] }
 0x4d2   :  { %v1956_v57 = vsub.f32 1.0, %v1955_v31  ;;  %v1932_v23 = vsel %vm1931_vm9, %v3123_v8, %v1928_v22  ;;  %2587 = vmatpush.msrb.mxu1 %v2515_v35  ;;  %v288_v41 = vadd.f32 %v5846_v47, %v5821_v5 }
 0x4d3   :  { %v1937_v29 = vsel %vm1934_vm11, %v1936_v42, %v1932_v23  ;;  %v1947_v33 = vsel %vm1946_vm10, %v3125_v36, %v1943_v51  ;;  %v2514_v36 = vld [vmem:[#allocation9 + $0xf0] sm:$0xff]  ;;  %v5847_v42 = vld [vmem:[#allocation77_spill] sm:$0xff] }
 0x4d4   :  { %v1957_v28 = vmul.f32 %v3129_v11, %v1956_v57  ;;  %v1952_v2 = vsel %vm1949_vm12, %v1951_v55, %v1947_v33  ;;  %v1974_v46 = vmul.f32 %v3131_v62, %v1937_v29  ;;  %2522 = vmatpush.msrb.mxu0 %v2514_v36  ;;  %2588 = vmatpush.msrb.mxu1 %v2513_v53  ;;  %v2506_v57 = vld [vmem:[#allocation9 + $0xb0] sm:$0xff]  ;;  %v2507_v23 = vld [vmem:[#allocation9 + $0xb8] sm:$0xff] }
 0x4d5   :  { %v1972_v10 = vmul.f32 %v1952_v2, %v5159_v3  ;;  %v5842_v3 = vld [vmem:[#allocation41_spill] sm:$0xff]  ;;  %v415_v51 = vadd.f32 %v5847_v42, %v5806_v61 }
 0x4d6   :  { %v1958_v13 = vadd.f32 %v3129_v11, %v1957_v28  ;;  %v220_v9 = vadd.f32 %v5842_v3, %v5819_v30  ;;  %2523 = vmatpush.msrb.mxu0 %v2512_v16  ;;  %2589 = vmatpush.msrb.mxu1 %v2511_v38  ;;  %v5848_v3 = vld [vmem:[#allocation78_spill] sm:$0xff] }
 0x4d7   :  { %v5233_v39 = vadd.f32 %v1974_v46, %v1972_v10  ;;  %v2504_v10 = vld [vmem:[#allocation9 + $0xa0] sm:$0xff] }
 0x4d8   :  { %v1962_v12 = vsel %vm1961_vm15, %v3129_v11, %v1958_v13  ;;  %2524 = vmatpush.msrb.mxu0 %v2510_v26  ;;  %v223_v11 = vadd.f32 %v5845_v1, %v5819_v30  ;;  %2590 = vmatpush.msrb.mxu1 %v2509_v40  ;;  %v2505_v13 = vld [vmem:[#allocation9 + $0xa8] sm:$0xff] }
 0x4d9   :  { %3132 = vtanh.f32 %v5233_v39  ;;  %v1967_v0 = vsel %vm1964_vm0, %v1966_v60, %v1962_v12 }
 0x4da   :  { %2525 = vmatpush.msrb.mxu0 %v2508_v32  ;;  %2591 = vmatpush.msrb.mxu1 %v2507_v23 }
 0x4dc   :  { %2526 = vmatpush.msrb.mxu0 %v2506_v57  ;;  %2592 = vmatpush.msrb.mxu1 %v2505_v13 }
 0x4de   :  { %2527 = vmatpush.msrb.mxu0 %v2504_v10 }
 0x4df   :  { %v3133_v25 = vpop.eup %3132 }
 0x4e0   :  { %v5236_v20 = vmul.f32 %v3133_v25, %v1967_v0  ;;  %v2502_v25 = vld [vmem:[#allocation9 + $0x90] sm:$0xff]  ;;  %v2503_v0 = vld [vmem:[#allocation9 + $0x98] sm:$0xff] }
 0x4e1   :  { %2528 = vmatpush.msrb.mxu0 %v2502_v25  ;;  %2593 = vmatpush.msrb.mxu1 %v2503_v0 }
 0x4e2   :  { %2012 = vmatmul.f32.gmra.mxu0 %v5236_v20  ;;  %2035 = vmatmul.f32.gmra.mxu1 %v5236_v20 }
 0x4e3   :  { %2058 = vmatmul.f32.gmra.mxu2 %v5236_v20  ;;  %2081 = vmatmul.f32.gmra.mxu3 %v5236_v20 }
 0x54d   :  { %v2010_v63 = vpop.f32.mrf.mxu0  ;;  %v2033_v4 = vpop.f32.mrf.mxu1 }
 0x54e   :  { %v2085_v54 = vadd.f32 %v2010_v63, %v220_v9  ;;  %v2086_v48 = vadd.f32 %v2033_v4, %v285_v27  ;;  %v353_v9 = vadd.f32 %v5848_v3, %v5823_v19 }
 0x550   :  { %v2913_v56 = vmul.f32 -1.442695, %v2085_v54  ;;  %v2914_v34 = vmul.f32 -1.442695, %v2086_v48 }
 0x552   :  { %3134 = vpow2.f32 %v2913_v56  ;;  %v2500_v56 = vld [vmem:[#allocation9 + $0x80] sm:$0xff] }
 0x553   :  { %3136 = vpow2.f32 %v2914_v34  ;;  %v2501_v34 = vld [vmem:[#allocation9 + $0x88] sm:$0xff]  ;;  %2529 = vmatpush.msrb.mxu0 %v2500_v56 }
 0x554   :  { %v2056_v24 = vpop.f32.mrf.mxu2  ;;  %v2079_v31 = vpop.f32.mrf.mxu3  ;;  %2594 = vmatpush.msrb.mxu1 %v2501_v34  ;;  %v2484_v34 = vld [vmem:[#allocation9] sm:$0xff] }
 0x555   :  { %v2087_v15 = vadd.f32 %v2056_v24, %v350_v6  ;;  %v2088_v46 = vadd.f32 %v2079_v31, %v415_v51 }
 0x557   :  { %v2915_v8 = vmul.f32 -1.442695, %v2087_v15  ;;  %v2498_v15 = vld [vmem:[#allocation9 + $0x70] sm:$0xff] }
 0x558   :  { %v3135_v7 = vpop.eup %3134  ;;  %2530 = vmatpush.msrb.mxu0 %v2498_v15 }
 0x559   :  { %v3137_v43 = vpop.eup %3136  ;;  %v5248_v52 = vadd.f32 1.0, %v3135_v7  ;;  %3138 = vpow2.f32 %v2915_v8  ;;  %v2499_v8 = vld [vmem:[#allocation9 + $0x78] sm:$0xff]  ;;  %v2496_v7 = vld [vmem:[#allocation9 + $0x60] sm:$0xff] }
 0x55a   :  { %v5250_v45 = vadd.f32 1.0, %v3137_v43  ;;  %v2497_v43 = vld [vmem:[#allocation9 + $0x68] sm:$0xff]  ;;  %2595 = vmatpush.msrb.mxu1 %v2499_v8  ;;  %2531 = vmatpush.msrb.mxu0 %v2496_v7 }
 0x55b   :  { %3140 = vrcp.f32 %v5248_v52  ;;  %v2126_v60 = vand.u32 2147483647, %v5248_v52  ;;  %v2128_v48 = vand.u32 2147483648, %v5248_v52  ;;  %vm2122_vm4 = vweird.f32 %v5248_v52 }
 0x55c   :  { %3142 = vrcp.f32 %v5250_v45  ;;  %v2143_v54 = vand.u32 2147483648, %v5250_v45  ;;  %v2141_v6 = vand.u32 2147483647, %v5250_v45  ;;  %vm2137_vm3 = vweird.f32 %v5250_v45  ;;  %2596 = vmatpush.msrb.mxu1 %v2497_v43 }
 0x55d   :  { %v2129_v32 = vor.u32 1.1754944e-38, %v2128_v48  ;;  %vm2127_vm7 = vcmp.eq.f32.partialorder %v2126_v60, 8.507059e+37  ;;  %v2488_v60 = vld [vmem:[#allocation9 + $0x20] sm:$0xff] }
 0x55e   :  { %v2144_v47 = vor.u32 1.1754944e-38, %v2143_v54  ;;  %vm2142_vm8 = vcmp.eq.f32.partialorder %v2141_v6, 8.507059e+37  ;;  %v5853_v54 = vld [vmem:[#allocation79_spill] sm:$0xff] }
 0x55f   :  { %v3139_v22 = vpop.eup %3138  ;;  %v2013_v62 = vpop.f32.mrf.mxu0  ;;  %v418_v48 = vadd.f32 %v5853_v54, %v5806_v61 }
 0x560   :  { %v2036_v55 = vpop.f32.mrf.mxu1  ;;  %v5260_v29 = vadd.f32 1.0, %v3139_v22  ;;  %v2089_v33 = vadd.f32 %v2013_v62, %v223_v11  ;;  %v2495_v11 = vld [vmem:[#allocation9 + $0x58] sm:$0xff]  ;;  %v2492_v62 = vld [vmem:[#allocation9 + $0x40] sm:$0xff] }
 0x561   :  { %v2090_v28 = vadd.f32 %v2036_v55, %v288_v41  ;;  %v5262_v2 = vpop.eup %3140  ;;  %v2493_v55 = vld [vmem:[#allocation9 + $0x48] sm:$0xff]  ;;  %2597 = vmatpush.msrb.mxu1 %v2495_v11 }
 0x562   :  { %v5264_v49 = vpop.eup %3142  ;;  %v2118_v59 = vmul.f32 %v5262_v2, %v5248_v52  ;;  %3144 = vrcp.f32 %v5260_v29  ;;  %v2916_v27 = vmul.f32 -1.442695, %v2089_v33  ;;  %vm2123_vm1 = vweird.f32 %v5262_v2 }
 0x563   :  { %v2133_v12 = vmul.f32 %v5264_v49, %v5250_v45  ;;  %v2917_v63 = vmul.f32 -1.442695, %v2090_v28  ;;  %3146 = vtanh.f32 %v2088_v46  ;;  %vm2138_vm2 = vweird.f32 %v5264_v49  ;;  %vm5290_vm5 = vmor %vm2122_vm4, %vm2123_vm1  ;;  %v2494_v45 = vld [vmem:[#allocation9 + $0x50] sm:$0xff]  ;;  %2598 = vmatpush.msrb.mxu1 %v2493_v55 }
 0x564   :  { %v2119_v14 = vsub.f32 1.0, %v2118_v59  ;;  %3148 = vpow2.f32 %v2916_v27  ;;  %vm5297_vm6 = vmor %vm2137_vm3, %vm2138_vm2  ;;  %2532 = vmatpush.msrb.mxu0 %v2494_v45  ;;  %v2490_v59 = vld [vmem:[#allocation9 + $0x30] sm:$0xff]  ;;  %v2158_v3 = vand.u32 2147483648, %v5260_v29  ;;  %vm2152_vm10 = vweird.f32 %v5260_v29 }
 0x565   :  { %v2134_v4 = vsub.f32 1.0, %v2133_v12  ;;  %3150 = vpow2.f32 %v2917_v63  ;;  %v2491_v12 = vld [vmem:[#allocation9 + $0x38] sm:$0xff]  ;;  %v2156_v27 = vand.u32 2147483647, %v5260_v29 }
 0x566   :  { %v2120_v17 = vmul.f32 %v5262_v2, %v2119_v14  ;;  %v2059_v24 = vpop.f32.mrf.mxu2  ;;  %2533 = vmatpush.msrb.mxu0 %v2492_v62  ;;  %2599 = vmatpush.msrb.mxu1 %v2491_v12  ;;  %v2487_v14 = vld [vmem:[#allocation9 + $0x18] sm:$0xff] }
 0x567   :  { %v2135_v36 = vmul.f32 %v5264_v49, %v2134_v4  ;;  %v2091_v35 = vadd.f32 %v2059_v24, %v353_v9  ;;  %v2486_v9 = vld [vmem:[#allocation9 + $0x10] sm:$0xff]  ;;  %v2082_v4 = vpop.f32.mrf.mxu3  ;;  %v2159_v24 = vor.u32 1.1754944e-38, %v2158_v3  ;;  %vm2157_vm12 = vcmp.eq.f32.partialorder %v2156_v27, 8.507059e+37 }
 0x568   :  { %v5281_v16 = vpop.eup %3144  ;;  %v2121_v53 = vadd.f32 %v5262_v2, %v2120_v17  ;;  %2534 = vmatpush.msrb.mxu0 %v2490_v59  ;;  %v2485_v17 = vld [vmem:[#allocation9 + $0x8] sm:$0xff]  ;;  %v2092_v15 = vadd.f32 %v2082_v4, %v418_v48  ;;  %v5859_v27 = vld [vmem:[#allocation24_spill] sm:$0xff]  ;;  %v5861_v4 = vld [vmem:[#allocation61_spill] sm:$0xff] }
 0x569   :  { %v2148_v26 = vmul.f32 %v5281_v16, %v5260_v29  ;;  %v2136_v40 = vadd.f32 %v5264_v49, %v2135_v36  ;;  %v2918_v1 = vmul.f32 -1.442695, %v2091_v35  ;;  %v3147_v31 = vpop.eup %3146  ;;  %vm2153_vm9 = vweird.f32 %v5281_v16 }
 0x56a   :  { %v2125_v41 = vsel %vm5290_vm5, %v5262_v2, %v2121_v53  ;;  %v3149_v57 = vpop.eup %3148  ;;  %2535 = vmatpush.msrb.mxu0 %v2488_v60  ;;  %vm5329_vm11 = vmor %vm2152_vm10, %vm2153_vm9 }
 0x56b   :  { %v2149_v22 = vsub.f32 1.0, %v2148_v26  ;;  %v2130_v42 = vsel %vm2127_vm7, %v2129_v32, %v2125_v41  ;;  %v2140_v51 = vsel %vm5297_vm6, %v5264_v49, %v2136_v40  ;;  %3152 = vpow2.f32 %v2918_v1  ;;  %v3151_v28 = vpop.eup %3150 }
 0x56c   :  { %v2145_v23 = vsel %vm2142_vm8, %v2144_v47, %v2140_v51  ;;  %v2211_v33 = vmul.f32 %v3147_v31, %v2130_v42  ;;  %v5309_v10 = vadd.f32 1.0, %v3149_v57  ;;  %v5311_v13 = vadd.f32 1.0, %v3151_v28  ;;  %2536 = vmatpush.msrb.mxu0 %v2486_v9  ;;  %v5857_v9 = vld [vmem:[#allocation87_spill] sm:$0xff] }
 0x56d   :  { %v2150_v2 = vmul.f32 %v5281_v16, %v2149_v22  ;;  %v2209_v46 = vmul.f32 %v2145_v23, %v5218_v37  ;;  %v2489_v37 = vld [vmem:[#allocation9 + $0x28] sm:$0xff] }
 0x56e   :  { %3154 = vrcp.f32 %v5309_v10  ;;  %2600 = vmatpush.msrb.mxu1 %v2489_v37  ;;  %2537 = vmatpush.msrb.mxu0 %v2484_v34  ;;  %v2173_v38 = vand.u32 2147483648, %v5309_v10  ;;  %v2188_v40 = vand.u32 2147483648, %v5311_v13  ;;  %v2171_v45 = vand.u32 2147483647, %v5309_v10 }
 0x56f   :  { %v5313_v49 = vadd.f32 %v2211_v33, %v2209_v46  ;;  %v2151_v25 = vadd.f32 %v5281_v16, %v2150_v2  ;;  %3156 = vrcp.f32 %v5311_v13  ;;  %v2186_v47 = vand.u32 2147483647, %v5311_v13 }
 0x570   :  { %2601 = vmatpush.msrb.mxu1 %v2487_v14  ;;  %vm2167_vm15 = vweird.f32 %v5309_v10  ;;  %vm2182_vm0 = vweird.f32 %v5311_v13  ;;  %v2174_v22 = vor.u32 1.1754944e-38, %v2173_v38  ;;  %v2189_v51 = vor.u32 1.1754944e-38, %v2188_v40  ;;  %v5858_v14 = vld [vmem:[#allocation23_spill] sm:$0xff]  ;;  %v5866_v38 = vld [vmem:[#allocation28_spill] sm:$0xff] }
 0x571   :  { %v3153_v0 = vpop.eup %3152  ;;  %3158 = vtanh.f32 %v5313_v49  ;;  %v2155_v29 = vsel %vm5329_vm11, %v5281_v16, %v2151_v25  ;;  %vm2172_vm3 = vcmp.eq.f32.partialorder %v2171_v45, 8.507059e+37  ;;  %vm2187_vm4 = vcmp.eq.f32.partialorder %v2186_v47, 8.507059e+37 }
 0x572   :  { %v5323_v63 = vadd.f32 1.0, %v3153_v0  ;;  %2602 = vmatpush.msrb.mxu1 %v2485_v17  ;;  %v2160_v43 = vsel %vm2157_vm12, %v2159_v24, %v2155_v29  ;;  %v5864_v29 = vld [vmem:[#allocation80_spill] sm:$0xff] }
 0x574   :  { %3160 = vrcp.f32 %v5323_v63  ;;  %v3155_v6 = vpop.eup %3154  ;;  %v2203_v59 = vand.u32 2147483648, %v5323_v63  ;;  %vm2197_vm6 = vweird.f32 %v5323_v63  ;;  %v2201_v12 = vand.u32 2147483647, %v5323_v63 }
 0x575   :  { %v3157_v8 = vpop.eup %3156  ;;  %v2163_v36 = vmul.f32 %v3155_v6, %v5309_v10  ;;  %3162 = vtanh.f32 %v2092_v15  ;;  %vm2168_vm13 = vweird.f32 %v3155_v6 }
 0x576   :  { %v2178_v7 = vmul.f32 %v3157_v8, %v5311_v13  ;;  %vm2183_vm14 = vweird.f32 %v3157_v8  ;;  %vm2169_vm1 = vmor %vm2167_vm15, %vm2168_vm13  ;;  %v2204_v25 = vor.u32 1.1754944e-38, %v2203_v59  ;;  %vm2202_vm8 = vcmp.eq.f32.partialorder %v2201_v12, 8.507059e+37 }
 0x577   :  { %v3159_v35 = vpop.eup %3158  ;;  %v2164_v53 = vsub.f32 1.0, %v2163_v36  ;;  %vm2184_vm2 = vmor %vm2182_vm0, %vm2183_vm14 }
 0x578   :  { %v5339_v26 = vmul.f32 %v3159_v35, %v2160_v43  ;;  %v2179_v16 = vsub.f32 1.0, %v2178_v7 }
 0x579   :  { %v2165_v1 = vmul.f32 %v3155_v6, %v2164_v53 }
 0x57a   :  { %v3161_v32 = vpop.eup %3160  ;;  %2247 = vmatmul.f32.vlgmr.msra.gmra.mxu0 %v5339_v26  ;;  %2270 = vmatmul.f32.vlgmr.msra.gmra.mxu1 %v5339_v26  ;;  %v2180_v11 = vmul.f32 %v3157_v8, %v2179_v16 }
 0x57b   :  { %v2193_v52 = vmul.f32 %v3161_v32, %v5323_v63  ;;  %2293 = vmatmul.f32.vlgmr.msrb.gmra.mxu2 %v5339_v26  ;;  %2316 = vmatmul.f32.vlgmr.msrb.gmra.mxu3 %v5339_v26  ;;  %v2166_v41 = vadd.f32 %v3155_v6, %v2165_v1  ;;  %v3163_v55 = vpop.eup %3162  ;;  %vm2198_vm5 = vweird.f32 %v3161_v32  ;;  %v5860_v63 = vld [vmem:[#allocation60_spill] sm:$0xff]  ;;  %v2516_v1 = vld [vmem:[%s5508_s8] sm:$0x3] }
 0x57c   :  { %v2181_v42 = vadd.f32 %v3157_v8, %v2180_v11  ;;  %vm2199_vm7 = vmor %vm2197_vm6, %vm2198_vm5  ;;  %v5867_v11 = vld [vmem:[#allocation22_spill] sm:$0xff] }
 0x57d   :  { %v2194_v31 = vsub.f32 1.0, %v2193_v52  ;;  %v2170_v62 = vsel %vm2169_vm1, %v3155_v6, %v2166_v41  ;;  %v294_v52 = vadd.f32 %v5867_v11, %v5821_v5 }
 0x57e   :  { %v2175_v57 = vsel %vm2172_vm3, %v2174_v22, %v2170_v62  ;;  %v2185_v23 = vsel %vm2184_vm2, %v3157_v8, %v2181_v42 }
 0x57f   :  { %v2195_v33 = vmul.f32 %v3161_v32, %v2194_v31  ;;  %v2190_v28 = vsel %vm2187_vm4, %v2189_v51, %v2185_v23  ;;  %v2212_v2 = vmul.f32 %v3163_v55, %v2175_v57  ;;  %v5405_v23 = vperm.slane %v2516_v1, 1 }
 0x580   :  { %v2210_v46 = vmul.f32 %v2190_v28, %v5233_v39  ;;  %v5856_v39 = vld [vmem:[#allocation86_spill] sm:$0xff] }
 0x581   :  { %v2196_v13 = vadd.f32 %v3161_v32, %v2195_v33 }
 0x582   :  { %v5353_v10 = vadd.f32 %v2212_v2, %v2210_v46  ;;  %v5407_v46 = vperm.slane %v2516_v1, 0 }
 0x583   :  { %v2200_v60 = vsel %vm2199_vm7, %v3161_v32, %v2196_v13  ;;  %v229_v32 = vadd.f32 %v5866_v38, %v5819_v30 }
 0x584   :  { %3164 = vtanh.f32 %v5353_v10  ;;  %v2205_v0 = vsel %vm2202_vm8, %v2204_v25, %v2200_v60 }
 0x58a   :  { %v3165_v37 = vpop.eup %3164 }
 0x58b   :  { %v2218_v3 = vmul.f32 %v3165_v37, %v2205_v0 }
 0x58d   :  { %2250 = vmatmul.f32.gmra.mxu0 %v2218_v3  ;;  %2273 = vmatmul.f32.gmra.mxu1 %v2218_v3 }
 0x58e   :  { %2296 = vmatmul.f32.gmra.mxu2 %v2218_v3  ;;  %2319 = vmatmul.f32.gmra.mxu3 %v2218_v3 }
 0x595   :  { %2538 = vmatmul.f32.vlgmr.msrb.gmra.mxu0 %v5856_v39  ;;  %2603 = vmatmul.f32.vlgmr.msrb.gmra.mxu1 %v5856_v39 }
 0x59d   :  { %2541 = vmatmul.f32.gmra.mxu0 %v5857_v9  ;;  %2606 = vmatmul.f32.gmra.mxu1 %v5857_v9 }
 0x5a5   :  { %2544 = vmatmul.f32.gmra.mxu0 %v5858_v14  ;;  %2609 = vmatmul.f32.gmra.mxu1 %v5858_v14 }
 0x5ad   :  { %2547 = vmatmul.f32.gmra.mxu0 %v5859_v27  ;;  %2612 = vmatmul.f32.gmra.mxu1 %v5859_v27 }
 0x5b5   :  { %2550 = vmatmul.f32.gmra.mxu0 %v5860_v63  ;;  %2615 = vmatmul.f32.gmra.mxu1 %v5860_v63 }
 0x5bd   :  { %2553 = vmatmul.f32.gmra.mxu0 %v5861_v4  ;;  %2618 = vmatmul.f32.gmra.mxu1 %v5861_v4 }
 0x5c5   :  { %2556 = vmatmul.f32.gmra.mxu0 %v4940_v21  ;;  %2621 = vmatmul.f32.gmra.mxu1 %v4940_v21  ;;  %v5862_v21 = vld [vmem:[#allocation27_spill] sm:$0xff] }
 0x5c6   :  { %v226_v54 = vadd.f32 %v5862_v21, %v5819_v30  ;;  %v5868_v30 = vld [vmem:[#allocation82_spill] sm:$0xff] }
 0x5c7   :  { %v359_v62 = vadd.f32 %v5868_v30, %v5823_v19 }
 0x5cd   :  { %2559 = vmatmul.f32.gmra.mxu0 %v5019_v44  ;;  %2624 = vmatmul.f32.gmra.mxu1 %v5019_v44  ;;  %v5863_v44 = vld [vmem:[#allocation45_spill] sm:$0xff] }
 0x5ce   :  { %v291_v48 = vadd.f32 %v5863_v44, %v5821_v5 }
 0x5d5   :  { %2562 = vmatmul.f32.gmra.mxu0 %v5140_v50  ;;  %2627 = vmatmul.f32.gmra.mxu1 %v5140_v50 }
 0x5dd   :  { %2565 = vmatmul.f32.gmra.mxu0 %v5189_v18  ;;  %2630 = vmatmul.f32.gmra.mxu1 %v5189_v18 }
 0x5e5   :  { %2568 = vmatmul.f32.gmra.mxu0 %v5226_v58  ;;  %2633 = vmatmul.f32.gmra.mxu1 %v5226_v58 }
 0x5ed   :  { %2571 = vmatmul.f32.gmra.mxu0 %v5236_v20  ;;  %2636 = vmatmul.f32.gmra.mxu1 %v5236_v20  ;;  %v356_v20 = vadd.f32 %v5864_v29, %v5823_v19 }
 0x5f5   :  { %2574 = vmatmul.f32.gmra.mxu0 %v5339_v26  ;;  %2639 = vmatmul.f32.gmra.mxu1 %v5339_v26  ;;  %v5865_v26 = vld [vmem:[#allocation81_spill] sm:$0xff] }
 0x5f6   :  { %v421_v16 = vadd.f32 %v5865_v26, %v5806_v61 }
 0x5f7   :  { %v2248_v50 = vpop.f32.mrf.mxu0  ;;  %v2271_v18 = vpop.f32.mrf.mxu1 }
 0x5f8   :  { %v2323_v56 = vadd.f32 %v2248_v50, %v226_v54  ;;  %v2324_v34 = vadd.f32 %v2271_v18, %v291_v48 }
 0x5fa   :  { %v2919_v17 = vmul.f32 -1.442695, %v2323_v56  ;;  %v2920_v58 = vmul.f32 -1.442695, %v2324_v34 }
 0x5fc   :  { %3166 = vpow2.f32 %v2919_v17 }
 0x5fd   :  { %3168 = vpow2.f32 %v2920_v58  ;;  %2577 = vmatmul.f32.gmra.mxu0 %v2218_v3  ;;  %2642 = vmatmul.f32.gmra.mxu1 %v2218_v3 }
 0x5fe   :  { %v2294_v6 = vpop.f32.mrf.mxu2  ;;  %v2317_v43 = vpop.f32.mrf.mxu3 }
 0x5ff   :  { %v2325_v24 = vadd.f32 %v2294_v6, %v356_v20  ;;  %v2326_v47 = vadd.f32 %v2317_v43, %v421_v16  ;;  %v5869_v43 = vld [vmem:[#allocation83_spill] sm:$0xff] }
 0x601   :  { %v2921_v15 = vmul.f32 -1.442695, %v2325_v24 }
 0x602   :  { %v3167_v8 = vpop.eup %3166 }
 0x603   :  { %v3169_v36 = vpop.eup %3168  ;;  %v2349_v35 = vadd.f32 1.0, %v3167_v8  ;;  %3170 = vpow2.f32 %v2921_v15 }
 0x604   :  { %v2350_v7 = vadd.f32 1.0, %v3169_v36 }
 0x605   :  { %3172 = vrcp.f32 %v2349_v35  ;;  %v2364_v28 = vand.u32 2147483647, %v2349_v35  ;;  %v2366_v13 = vand.u32 2147483648, %v2349_v35  ;;  %vm2360_vm12 = vweird.f32 %v2349_v35 }
 0x606   :  { %3174 = vrcp.f32 %v2350_v7  ;;  %v2381_v12 = vand.u32 2147483648, %v2350_v7  ;;  %v2379_v19 = vand.u32 2147483647, %v2350_v7  ;;  %vm2375_vm11 = vweird.f32 %v2350_v7 }
 0x607   :  { %vm2365_vm13 = vcmp.eq.f32.partialorder %v2364_v28, 8.507059e+37  ;;  %v2367_v9 = vor.u32 1.1754944e-38, %v2366_v13 }
 0x608   :  { %v2382_v21 = vor.u32 1.1754944e-38, %v2381_v12  ;;  %vm2380_vm0 = vcmp.eq.f32.partialorder %v2379_v19, 8.507059e+37 }
 0x609   :  { %v3171_v53 = vpop.eup %3170 }
 0x60a   :  { %v5395_v40 = vadd.f32 1.0, %v3171_v53  ;;  %v2251_v41 = vpop.f32.mrf.mxu0  ;;  %v2274_v31 = vpop.f32.mrf.mxu1  ;;  %v424_v53 = vadd.f32 %v5869_v43, %v5806_v61 }
 0x60b   :  { %v3173_v45 = vpop.eup %3172  ;;  %v2327_v51 = vadd.f32 %v2251_v41, %v229_v32  ;;  %v2328_v57 = vadd.f32 %v2274_v31, %v294_v52 }
 0x60c   :  { %v3175_v22 = vpop.eup %3174  ;;  %v2356_v42 = vmul.f32 %v3173_v45, %v2349_v35  ;;  %3176 = vrcp.f32 %v5395_v40  ;;  %vm2361_vm9 = vweird.f32 %v3173_v45  ;;  %v2396_v38 = vand.u32 2147483648, %v5395_v40 }
 0x60d   :  { %v2371_v55 = vmul.f32 %v3175_v22, %v2350_v7  ;;  %v2922_v2 = vmul.f32 -1.442695, %v2327_v51  ;;  %3178 = vtanh.f32 %v2326_v47  ;;  %v2923_v59 = vmul.f32 -1.442695, %v2328_v57  ;;  %vm2362_vm14 = vmor %vm2360_vm12, %vm2361_vm9 }
 0x60e   :  { %v2357_v33 = vsub.f32 1.0, %v2356_v42  ;;  %vm2376_vm10 = vweird.f32 %v3175_v22  ;;  %vm2390_vm2 = vweird.f32 %v5395_v40  ;;  %v2397_v31 = vor.u32 1.1754944e-38, %v2396_v38 }
 0x60f   :  { %v2372_v5 = vsub.f32 1.0, %v2371_v55  ;;  %3180 = vpow2.f32 %v2922_v2  ;;  %vm2377_vm15 = vmor %vm2375_vm11, %vm2376_vm10 }
 0x610   :  { %v2358_v60 = vmul.f32 %v3173_v45, %v2357_v33  ;;  %3182 = vpow2.f32 %v2923_v59 }
 0x611   :  { %v2373_v25 = vmul.f32 %v3175_v22, %v2372_v5  ;;  %v2297_v3 = vpop.f32.mrf.mxu2  ;;  %v2320_v7 = vpop.f32.mrf.mxu3 }
 0x612   :  { %v5409_v37 = vpop.eup %3176  ;;  %v2359_v0 = vadd.f32 %v3173_v45, %v2358_v60  ;;  %v2329_v27 = vadd.f32 %v2297_v3, %v359_v62  ;;  %v2539_v63 = vpop.f32.mrf.mxu0  ;;  %v2330_v61 = vadd.f32 %v2320_v7, %v424_v53 }
 0x613   :  { %v2386_v39 = vmul.f32 %v5409_v37, %v5395_v40  ;;  %v2374_v14 = vadd.f32 %v3175_v22, %v2373_v25  ;;  %v2604_v4 = vpop.f32.mrf.mxu1  ;;  %v2540_v48 = vadd.f32 %v2539_v63, %v5407_v46  ;;  %v3179_v50 = vpop.eup %3178  ;;  %vm2391_vm1 = vweird.f32 %v5409_v37 }
 0x614   :  { %v2363_v54 = vsel %vm2362_vm14, %v3173_v45, %v2359_v0  ;;  %v2605_v44 = vadd.f32 %v2604_v4, %v5405_v23  ;;  %v2924_v34 = vmul.f32 -1.442695, %v2329_v27  ;;  %v2394_v45 = vand.u32 2147483647, %v5395_v40  ;;  %vm2392_vm3 = vmor %vm2390_vm2, %vm2391_vm1 }
 0x615   :  { %v2368_v18 = vsel %vm2365_vm13, %v2367_v9, %v2363_v54  ;;  %v2378_v56 = vsel %vm2377_vm15, %v3175_v22, %v2374_v14  ;;  %v3181_v17 = vpop.eup %3180  ;;  %2652 = vxpose.xlu0.b32.start [1/16] (narrow) %v2540_v48, 8  ;;  %v2387_v20 = vsub.f32 1.0, %v2386_v39  ;;  %vm2735_vm1 = vcmask 1043456  }
 0x616   :  { %v2383_v58 = vsel %vm2380_vm0, %v2382_v21, %v2378_v56  ;;  %v2449_v29 = vmul.f32 %v3179_v50, %v2368_v18  ;;  %2684 = vxpose.xlu1.b32.start [1/16] (narrow) %v2605_v44, 8  ;;  %v3183_v6 = vpop.eup %3182  ;;  %v5417_v15 = vadd.f32 1.0, %v3181_v17  ;;  %3184 = vpow2.f32 %v2924_v34 }
 0x617   :  { %v2447_v24 = vmul.f32 %v2383_v58, %v5313_v49  ;;  %v5419_v8 = vadd.f32 1.0, %v3183_v6  ;;  %v2388_v36 = vmul.f32 %v5409_v37, %v2387_v20  ;;  %vm2395_vm4 = vcmp.eq.f32.partialorder %v2394_v45, 8.507059e+37 }
 0x618   :  { %3186 = vrcp.f32 %v5417_v15  ;;  %v2409_v55 = vand.u32 2147483647, %v5417_v15  ;;  %v2411_v2 = vand.u32 2147483648, %v5417_v15  ;;  %vm2405_vm7 = vweird.f32 %v5417_v15 }
 0x619   :  { %v2451_v35 = vadd.f32 %v2449_v29, %v2447_v24  ;;  %3188 = vrcp.f32 %v5419_v8  ;;  %v2389_v16 = vadd.f32 %v5409_v37, %v2388_v36  ;;  %v2426_v28 = vand.u32 2147483648, %v5419_v8 }
 0x61a   :  { %v2542_v49 = vpop.f32.mrf.mxu0  ;;  %v2424_v19 = vand.u32 2147483647, %v5419_v8  ;;  %vm2420_vm8 = vweird.f32 %v5419_v8  ;;  %v2412_v39 = vor.u32 1.1754944e-38, %v2411_v2  ;;  %vm2410_vm11 = vcmp.eq.f32.partialorder %v2409_v55, 8.507059e+37 }
 0x61b   :  { %2466 = vst [vmem:[#allocation15] sm:$0xff] %v2451_v35  ;;  %v2607_v26 = vpop.f32.mrf.mxu1  ;;  %3190 = vtanh.f32 %v2451_v35  ;;  %v2543_v32 = vadd.f32 %v2542_v49, %v5407_v46  ;;  %v2393_v47 = vsel %vm2392_vm3, %v5409_v37, %v2389_v16  ;;  %v2427_v27 = vor.u32 1.1754944e-38, %v2426_v28 }
 0x61c   :  { %v2608_v1 = vadd.f32 %v2607_v26, %v5405_v23  ;;  %v3185_v11 = vpop.eup %3184  ;;  %v2398_v30 = vsel %vm2395_vm4, %v2397_v31, %v2393_v47  ;;  %vm2425_vm12 = vcmp.eq.f32.partialorder %v2424_v19, 8.507059e+37 }
 0x61d   :  { %v5433_v52 = vadd.f32 1.0, %v3185_v11  ;;  %2653 = vxpose.xlu0.b32.cont [2/16] (narrow) %v2543_v32, 8 }
 0x61e   :  { %2685 = vxpose.xlu1.b32.cont [2/16] (narrow) %v2608_v1, 8  ;;  %v3187_v41 = vpop.eup %3186 }
 0x61f   :  { %v3189_v22 = vpop.eup %3188  ;;  %v2401_v42 = vmul.f32 %v3187_v41, %v5417_v15  ;;  %3192 = vrcp.f32 %v5433_v52  ;;  %vm2406_vm5 = vweird.f32 %v3187_v41  ;;  %v2441_v6 = vand.u32 2147483648, %v5433_v52 }
 0x620   :  { %v2416_v40 = vmul.f32 %v3189_v22, %v5419_v8  ;;  %3194 = vtanh.f32 %v2330_v61  ;;  %vm2421_vm6 = vweird.f32 %v3189_v22  ;;  %vm2407_vm9 = vmor %vm2405_vm7, %vm2406_vm5  ;;  %vm2435_vm14 = vweird.f32 %v5433_v52 }
 0x621   :  { %v3191_v51 = vpop.eup %3190  ;;  %v2402_v62 = vsub.f32 1.0, %v2401_v42  ;;  %vm2422_vm10 = vmor %vm2420_vm8, %vm2421_vm6  ;;  %v2442_v36 = vor.u32 1.1754944e-38, %v2441_v6 }
 0x622   :  { %v2455_v57 = vmul.f32 %v3191_v51, %v2398_v30  ;;  %v2417_v33 = vsub.f32 1.0, %v2416_v40  ;;  %v2545_v5 = vpop.f32.mrf.mxu0 }
 0x623   :  { %v2610_v13 = vpop.f32.mrf.mxu1  ;;  %v2403_v59 = vmul.f32 %v3187_v41, %v2402_v62  ;;  %v2546_v12 = vadd.f32 %v2545_v5, %v5407_v46 }
 0x624   :  { %v2611_v60 = vadd.f32 %v2610_v13, %v5405_v23  ;;  %2464 = vst [vmem:[#allocation14] sm:$0xff] %v2455_v57  ;;  %2580 = vmatmul.f32.gmra.mxu0 %v2455_v57  ;;  %2645 = vmatmul.f32.gmra.mxu1 %v2455_v57  ;;  %v2418_v25 = vmul.f32 %v3189_v22, %v2417_v33 }
 0x625   :  { %v3193_v37 = vpop.eup %3192  ;;  %v2404_v0 = vadd.f32 %v3187_v41, %v2403_v59  ;;  %2654 = vxpose.xlu0.b32.cont [3/16] (narrow) %v2546_v12, 8 }
 0x626   :  { %2686 = vxpose.xlu1.b32.cont [3/16] (narrow) %v2611_v60, 8  ;;  %v2431_v3 = vmul.f32 %v3193_v37, %v5433_v52  ;;  %v2419_v9 = vadd.f32 %v3189_v22, %v2418_v25  ;;  %v3195_v14 = vpop.eup %3194  ;;  %vm2436_vm13 = vweird.f32 %v3193_v37 }
 0x627   :  { %v2408_v63 = vsel %vm2407_vm9, %v3187_v41, %v2404_v0  ;;  %vm2437_vm15 = vmor %vm2435_vm14, %vm2436_vm13 }
 0x628   :  { %v2413_v4 = vsel %vm2410_vm11, %v2412_v39, %v2408_v63  ;;  %v2423_v21 = vsel %vm2422_vm10, %v3189_v22, %v2419_v9  ;;  %v2432_v54 = vsub.f32 1.0, %v2431_v3 }
 0x629   :  { %v2428_v44 = vsel %vm2425_vm12, %v2427_v27, %v2423_v21  ;;  %v2450_v48 = vmul.f32 %v3195_v14, %v2413_v4 }
 0x62a   :  { %v2448_v50 = vmul.f32 %v2428_v44, %v5353_v10  ;;  %v2548_v18 = vpop.f32.mrf.mxu0  ;;  %v2433_v34 = vmul.f32 %v3193_v37, %v2432_v54  ;;  %v2439_v10 = vand.u32 2147483647, %v5433_v52 }
 0x62b   :  { %v2613_v56 = vpop.f32.mrf.mxu1  ;;  %v2549_v17 = vadd.f32 %v2548_v18, %v5407_v46 }
 0x62c   :  { %v2614_v58 = vadd.f32 %v2613_v56, %v5405_v23  ;;  %v2452_v29 = vadd.f32 %v2450_v48, %v2448_v50  ;;  %v2434_v20 = vadd.f32 %v3193_v37, %v2433_v34  ;;  %vm2440_vm0 = vcmp.eq.f32.partialorder %v2439_v10, 8.507059e+37 }
 0x62d   :  { %2655 = vxpose.xlu0.b32.cont [4/16] (narrow) %v2549_v17, 8 }
 0x62e   :  { %2687 = vxpose.xlu1.b32.cont [4/16] (narrow) %v2614_v58, 8  ;;  %2467 = vst [vmem:[#allocation15 + $0x8] sm:$0xff] %v2452_v29  ;;  %3196 = vtanh.f32 %v2452_v29  ;;  %v2438_v24 = vsel %vm2437_vm15, %v3193_v37, %v2434_v20  ;;  %v2720_v29 = vld [vmem:[%s5501_s1] sm:$0xf]  ;;  %s3496_s1 = smov [#allocation12]  }
 0x62f   :  { %v2443_v53 = vsel %vm2440_vm0, %v2442_v36, %v2438_v24  ;;  %2791 = dma.vmem_to_hbm [thread:$0]  %s2784_s14, 256, %s2786_s30, [#allocation16], %s3493_s15, %s3493_s15, %s3494_s16   ;;  %v2724_v24 = vmul.f32 -0.5, %v2720_v29 }
 0x630   :  { %s2760_s9 = sshll.u32 %s3496_s1, 4  ;;  %s2761_s9 = int_to_ptr.vmem [resolvable:$true] %s2760_s9 }
 0x631   :  { %v2725_v36 = vmul.f32 %v2724_v24, %v2720_v29 }
 0x632   :  { %v2551_v15 = vpop.f32.mrf.mxu0 }
 0x633   :  { %v2616_v8 = vpop.f32.mrf.mxu1  ;;  %v2552_v35 = vadd.f32 %v2551_v15, %v5407_v46 }
 0x634   :  { %v2617_v7 = vadd.f32 %v2616_v8, %v5405_v23  ;;  %v3197_v43 = vpop.eup %3196 }
 0x635   :  { %2656 = vxpose.xlu0.b32.cont [5/16] (narrow) %v2552_v35, 8  ;;  %v2456_v49 = vmul.f32 %v3197_v43, %v2443_v53 }
 0x636   :  { %2688 = vxpose.xlu1.b32.cont [5/16] (narrow) %v2617_v7, 8 }
 0x637   :  { %2465 = vst [vmem:[#allocation14 + $0x8] sm:$0xff] %v2456_v49  ;;  %2583 = vmatmul.f32.gmra.mxu0 %v2456_v49  ;;  %2648 = vmatmul.f32.gmra.mxu1 %v2456_v49 }
 0x63a   :  { %v2554_v26 = vpop.f32.mrf.mxu0 }
 0x63b   :  { %v2619_v16 = vpop.f32.mrf.mxu1  ;;  %v2555_v38 = vadd.f32 %v2554_v26, %v5407_v46 }
 0x63c   :  { %v2620_v32 = vadd.f32 %v2619_v16, %v5405_v23 }
 0x63d   :  { %2657 = vxpose.xlu0.b32.cont [6/16] (narrow) %v2555_v38, 8 }
 0x63e   :  { %2689 = vxpose.xlu1.b32.cont [6/16] (narrow) %v2620_v32, 8 }
 0x642   :  { %v2557_v1 = vpop.f32.mrf.mxu0 }
 0x643   :  { %v2622_v45 = vpop.f32.mrf.mxu1  ;;  %v2558_v11 = vadd.f32 %v2557_v1, %v5407_v46 }
 0x644   :  { %v2623_v52 = vadd.f32 %v2622_v45, %v5405_v23 }
 0x645   :  { %2658 = vxpose.xlu0.b32.cont [7/16] (narrow) %v2558_v11, 8 }
 0x646   :  { %2690 = vxpose.xlu1.b32.cont [7/16] (narrow) %v2623_v52, 8 }
 0x64a   :  { %v2560_v61 = vpop.f32.mrf.mxu0 }
 0x64b   :  { %v2625_v47 = vpop.f32.mrf.mxu1  ;;  %v2561_v41 = vadd.f32 %v2560_v61, %v5407_v46 }
 0x64c   :  { %v2626_v31 = vadd.f32 %v2625_v47, %v5405_v23 }
 0x64d   :  { %2659 = vxpose.xlu0.b32.cont [8/16] (narrow) %v2561_v41, 8 }
 0x64e   :  { %2691 = vxpose.xlu1.b32.cont [8/16] (narrow) %v2626_v31, 8 }
 0x652   :  { %v2563_v22 = vpop.f32.mrf.mxu0 }
 0x653   :  { %v2628_v42 = vpop.f32.mrf.mxu1  ;;  %v2564_v51 = vadd.f32 %v2563_v22, %v5407_v46 }
 0x654   :  { %v2629_v40 = vadd.f32 %v2628_v42, %v5405_v23 }
 0x655   :  { %2660 = vxpose.xlu0.b32.cont [9/16] (narrow) %v2564_v51, 8 }
 0x656   :  { %2692 = vxpose.xlu1.b32.cont [9/16] (narrow) %v2629_v40, 8 }
 0x65a   :  { %v2566_v30 = vpop.f32.mrf.mxu0 }
 0x65b   :  { %v2631_v62 = vpop.f32.mrf.mxu1  ;;  %v2567_v55 = vadd.f32 %v2566_v30, %v5407_v46 }
 0x65c   :  { %v2632_v57 = vadd.f32 %v2631_v62, %v5405_v23 }
 0x65d   :  { %2661 = vxpose.xlu0.b32.cont [10/16] (narrow) %v2567_v55, 8 }
 0x65e   :  { %2693 = vxpose.xlu1.b32.cont [10/16] (narrow) %v2632_v57, 8 }
 0x662   :  { %v2569_v33 = vpop.f32.mrf.mxu0 }
 0x663   :  { %v2634_v28 = vpop.f32.mrf.mxu1  ;;  %v2570_v2 = vadd.f32 %v2569_v33, %v5407_v46 }
 0x664   :  { %v2635_v5 = vadd.f32 %v2634_v28, %v5405_v23 }
 0x665   :  { %2662 = vxpose.xlu0.b32.cont [11/16] (narrow) %v2570_v2, 8 }
 0x666   :  { %2694 = vxpose.xlu1.b32.cont [11/16] (narrow) %v2635_v5, 8 }
 0x66a   :  { %v2572_v13 = vpop.f32.mrf.mxu0 }
 0x66b   :  { %v2637_v59 = vpop.f32.mrf.mxu1  ;;  %v2573_v12 = vadd.f32 %v2572_v13, %v5407_v46 }
 0x66c   :  { %v2638_v60 = vadd.f32 %v2637_v59, %v5405_v23 }
 0x66d   :  { %2663 = vxpose.xlu0.b32.cont [12/16] (narrow) %v2573_v12, 8 }
 0x66e   :  { %2695 = vxpose.xlu1.b32.cont [12/16] (narrow) %v2638_v60, 8 }
 0x672   :  { %v2575_v25 = vpop.f32.mrf.mxu0 }
 0x673   :  { %v2640_v19 = vpop.f32.mrf.mxu1  ;;  %v2576_v37 = vadd.f32 %v2575_v25, %v5407_v46 }
 0x674   :  { %v2641_v0 = vadd.f32 %v2640_v19, %v5405_v23 }
 0x675   :  { %2664 = vxpose.xlu0.b32.cont [13/16] (narrow) %v2576_v37, 8 }
 0x676   :  { %2696 = vxpose.xlu1.b32.cont [13/16] (narrow) %v2641_v0, 8 }
 0x67a   :  { %v2578_v3 = vpop.f32.mrf.mxu0 }
 0x67b   :  { %v2643_v39 = vpop.f32.mrf.mxu1  ;;  %v2579_v9 = vadd.f32 %v2578_v3, %v5407_v46 }
 0x67c   :  { %v2644_v14 = vadd.f32 %v2643_v39, %v5405_v23 }
 0x67d   :  { %2665 = vxpose.xlu0.b32.cont [14/16] (narrow) %v2579_v9, 8 }
 0x67e   :  { %2697 = vxpose.xlu1.b32.cont [14/16] (narrow) %v2644_v14, 8 }
 0x6a1   :  { %v2581_v27 = vpop.f32.mrf.mxu0  ;;  %v2646_v63 = vpop.f32.mrf.mxu1 }
 0x6a2   :  { %v2582_v4 = vadd.f32 %v2581_v27, %v5407_v46  ;;  %v2647_v21 = vadd.f32 %v2646_v63, %v5405_v23 }
 0x6a4   :  { %2698 = vxpose.xlu1.b32.cont [15/16] (narrow) %v2647_v21, 8  ;;  %2666 = vxpose.xlu0.b32.cont [15/16] (narrow) %v2582_v4, 8 }
 0x6b4   :  { %v2584_v54 = vpop.f32.mrf.mxu0  ;;  %v2649_v44 = vpop.f32.mrf.mxu1 }
 0x6b5   :  { %v2585_v48 = vadd.f32 %v2584_v54, %v5407_v46  ;;  %v2650_v50 = vadd.f32 %v2649_v44, %v5405_v23 }
 0x6b7   :  { %2699 = vxpose.xlu1.b32.end [16/16] (narrow) %v2650_v50, 8  ;;  %2667 = vxpose.xlu0.b32.end [16/16] (narrow) %v2585_v48, 8 }
 0x6e3   :  { %v2700_v18 = vpop.trf.xlu1  ;;  %v2668_v20 = vpop.trf.xlu0 }
 0x6e4   :  { %v2716_v56 = vmax.f32 %v2700_v18, -20.0 }
 0x6e6   :  { %v2717_v34 = vmin.f32 %v2716_v56, 2.0 }
 0x6e8   :  { %v2718_v17 = vmul.f32 1.442695, %v2717_v34  ;;  %v2726_v35 = vsub.f32 %v2725_v36, %v2717_v34 }
 0x6ea   :  { %3198 = vpow2.f32 %v2718_v17  ;;  %v2925_v43 = vadd.f32 -0.9189385, %v2726_v35 }
 0x6f0   :  { %v3199_v58 = vpop.eup %3198 }
 0x6f1   :  { %v2721_v6 = vmul.f32 %v3199_v58, %v2720_v29 }
 0x6f3   :  { %v2722_v10 = vadd.f32 %v2721_v6, %v2668_v20 }
 0x6f5   :  { %3200 = vtanh.f32 %v2722_v10 }
 0x6fb   :  { %v3201_v23 = vpop.eup %3200 }
 0x6fc   :  { %v2728_v46 = vmul.f32 %v3201_v23, %v3201_v23  ;;  %2734 = vst [vmem:[#allocation11] sm:$0xf] %v3201_v23 }
 0x6fd   :  { %2754 = dma.vmem_to_hbm [thread:$0]  %s2750_s18, 64, %s2752_s19, [#allocation8]  }
 0x6fe   :  { %v2729_v15 = vsub.f32 1.0, %v2728_v46 }
 0x700   :  { %v2730_v8 = vadd.f32 1e-06, %v2729_v15 }
 0x702   :  { %3202 = vlog2.f32 %v2730_v8 }
 0x708   :  { %v3203_v7 = vpop.eup %3202 }
 0x709   :  { %v2732_v53 = vmul.f32 0.6931472, %v3203_v7 }
 0x70b   :  { %v2733_v49 = vsub.f32 %v2925_v43, %v2732_v53 }
 0x70d   :  { %v2736_v26 = vsel %vm2735_vm1, %v2733_v49, 0.0 }
 0x70e   :  { %v2737_v16 = vrot.slane %v2736_v26, 4 }
 0x710   :  { %v2738_v38 = vadd.f32 %v2737_v16, %v2736_v26 }
 0x712   :  { %v2739_v32 = vrot.slane %v2738_v38, 2 }
 0x714   :  { %v2740_v1 = vadd.f32 %v2739_v32, %v2738_v38 }
 0x716   :  { %v2741_v45 = vrot.slane %v2740_v1, 1 }
 0x718   :  { %v2742_v11 = vadd.f32 %v2741_v45, %v2740_v1 }
 0x71a   :  { %2743 = vst [vmem:[#allocation12] sm:$0x1] %v2742_v11 }
 0x71b   :  { %2765 = dma.vmem_to_hbm [thread:$0]  %s2761_s9, 16, %s2763_s21, [#allocation13]  }
 0x71c   :  { %2778 = dma.vmem_to_hbm [thread:$0]  %s2771_s23, 256, %s2773_s6, [#allocation13], %s3493_s15, %s3493_s15, %s3494_s16  }
 0x71d   :  { %3480 = dma.done.wait [#allocation8], 64  }
 0x71e   :  { %3481 = vsyncadd [#allocation8], 4294967232 }
 0x71f   :  { %3482 = dma.done.wait [#allocation13], 272  }
 0x720   :  { %3483 = vsyncadd [#allocation13], 4294967024 }
 0x721   :  { %3484 = dma.done.wait [#allocation16], 256  }
 0x722   :  { %3485 = vsyncadd [#allocation16], 4294967040 }
 0x723   :  { %2808 = vsyncpa [#allocation7], 1 }
 0x724   :  { %2809 = vsyncpa [#allocation10], 1 }
 0x725   :  { %2810 = vsyncpa [#allocation8], 1 }
 0x726   :  { %2811 = vsyncpa [#allocation13], 1 }
 0x727   :  { %2812 = vsyncpa [#allocation16], 1 }

</bundles_post_ra>
